<compile_context>
chip_gen: v6e
topology: v6e:2x2x1
jax: 0.10.0
libtpu: 0.0.40
codegen_flags: <defaults>
</compile_context>

<pallas_src>
import jax
import jax.numpy as jnp
from jax import lax
from jax.experimental import pallas as pl
from jax.experimental.pallas import tpu as pltpu

NUM_INPUT_CHANNELS = 109   # input_channels['vector']
NUM_HIDDEN_UNITS = 256
NUM_OUTPUTS = 1
LANE = 128
F_PAD = 128                # 109 (+1 folded-bias column) padded up to a lane width
MAX_TILE_B = 4096          # VMEM budget cap (safe on v7x's 64 MiB physical VMEM)
VMEM_LIMIT_BYTES = 48 * 1024 * 1024


def _round_up(x, m):
    return (x + m - 1) // m * m


def _swish(x):
    # x * sigmoid(x) with sigmoid(x) = 0.5 * (tanh(0.5 x) + 1):
    # exactly one EUP push (tanh); the scale/offset/multiply ride on VPU slack.
    return x * (0.5 * jnp.tanh(0.5 * x) + 0.5)


def mlp2_kernel(x_ref,
                w1_ref,
                w2_ref, b2_ref,
                w3_ref, b3_ref,
                w4_ref, b4_ref,
                w5_ref, b5_ref,
                o_ref):
    cdt = w1_ref.dtype  # bf16 MXU operand dtype

    # Layer 1 (bias folded into column 109 of W1 / the 1.0 column of x):
    # contract W1's dim 1 (128) against x's dim 1 (128) -> (256, TB), f32 acc.
    h = lax.dot_general(w1_ref[...], x_ref[...],
                        dimension_numbers=(((1,), (1,)), ((), ())),
                        preferred_element_type=jnp.float32)
    h = _swish(h)

    # Hidden layers 2-4: (256, 256) @ (256, TB) -> (256, TB).
    for w_ref, b_ref in ((w2_ref, b2_ref), (w3_ref, b3_ref), (w4_ref, b4_ref)):
        h = jnp.dot(w_ref[...], h.astype(cdt),
                    preferred_element_type=jnp.float32) + b_ref[...]
        h = _swish(h)

    # Output layer: (1, 256) @ (256, TB) -> (1, TB), then Tanh.
    # Result is lane-dense -> unmasked full-width stores.
    out = jnp.dot(w5_ref[...], h.astype(cdt),
                  preferred_element_type=jnp.float32) + b5_ref[...]
    o_ref[...] = jnp.tanh(out)


def mlp2_forward(x_grid, x_grid_vector, x_vector, params, *,
                 tile_b=2048, compute_dtype=jnp.bfloat16):
    """Pallas implementation of MLP2.forward.

    x_grid / x_grid_vector are ignored, matching the PyTorch module.
    params: list of (w, b) in PyTorch nn.Linear layout, w: (out, in), b: (out,).
    Returns f32 output of shape (B, 1).
    """
    del x_grid, x_grid_vector  # unused by MLP2.forward
    (w1, b1), (w2, b2), (w3, b3), (w4, b4), (w5, b5) = params

    B, F = x_vector.shape
    assert F == NUM_INPUT_CHANNELS
    H = NUM_HIDDEN_UNITS

    # ---- batch tiling ------------------------------------------------------
    # Batch sits on the lane axis -> tile must be a multiple of 128.
    tile_b = max(LANE, min(tile_b, MAX_TILE_B) // LANE * LANE)
    b_lane = _round_up(B, LANE)
    tile_b = min(tile_b, b_lane)                    # don't over-pad tiny batches
    if b_lane >= 2 * LANE:
        # Keep >= 2 grid steps so a v7x chip can feed both TensorCores.
        tile_b = min(tile_b, max(LANE, (b_lane // 2) // LANE * LANE))
    B_pad = _round_up(B, tile_b)

    # ---- wrapper-side layout plumbing (cheap, no HBM transpose pass) -------
    # x: (B, 109) f32 -> append a 1.0 column (folded layer-1 bias) -> zero-pad
    # to (B_pad, 128) bf16.  Per-tile DMA is one contiguous (tile_b, 128) slab.
    ones_col = jnp.ones((B, 1), x_vector.dtype)
    x_aug = jnp.concatenate([x_vector, ones_col], axis=1)            # (B, 110)
    x_pad = jnp.pad(x_aug, ((0, B_pad - B), (0, F_PAD - F - 1)))     # (B_pad, 128)
    x_pad = x_pad.astype(compute_dtype)

    # Weights stay in PyTorch (out, in) layout; W1 gains a bias column + zero pad.
    w1_aug = jnp.concatenate([w1, b1.reshape(H, 1)], axis=1)         # (256, 110)
    w1p = jnp.pad(w1_aug, ((0, 0), (0, F_PAD - F - 1))).astype(compute_dtype)
    w2p = w2.astype(compute_dtype)                                   # (256, 256)
    w3p = w3.astype(compute_dtype)
    w4p = w4.astype(compute_dtype)
    w5p = w5.astype(compute_dtype)                                   # (1, 256)

    # Remaining biases stay f32 (added to the f32 accumulator), as columns.
    b2c = b2.reshape(H, 1).astype(jnp.float32)
    b3c = b3.reshape(H, 1).astype(jnp.float32)
    b4c = b4.reshape(H, 1).astype(jnp.float32)
    b5c = b5.reshape(NUM_OUTPUTS, 1).astype(jnp.float32)             # (1, 1)

    def const_spec(shape):
        # Same (whole-array) block every grid step -> weights resident in VMEM.
        return pl.BlockSpec(shape, lambda i: (0,) * len(shape))

    grid = (B_pad // tile_b,)
    out_T = pl.pallas_call(
        mlp2_kernel,
        out_shape=jax.ShapeDtypeStruct((NUM_OUTPUTS, B_pad), jnp.float32),
        grid_spec=pltpu.PrefetchScalarGridSpec(
            num_scalar_prefetch=0,
            grid=grid,
            in_specs=[
                pl.BlockSpec((tile_b, F_PAD), lambda i: (i, 0)),
                const_spec((H, F_PAD)),
                const_spec((H, H)), const_spec((H, 1)),
                const_spec((H, H)), const_spec((H, 1)),
                const_spec((H, H)), const_spec((H, 1)),
                const_spec((NUM_OUTPUTS, H)), const_spec((NUM_OUTPUTS, 1)),
            ],
            out_specs=pl.BlockSpec((NUM_OUTPUTS, tile_b), lambda i: (0, i)),
        ),
        compiler_params=pltpu.CompilerParams(
            # Batch tiles are independent -> megacore-shardable on v7x.
            dimension_semantics=("parallel",),
            vmem_limit_bytes=VMEM_LIMIT_BYTES),
    )(x_pad, w1p, w2p, b2c, w3p, b3c, w4p, b4c, w5p, b5c)

    # Back to the module's (B, 1) output; drop the batch padding.
    return out_T[:, :B].T


def init_params(key):
    """Deterministic init mirroring nn.Linear defaults, PyTorch (out, in) layout."""
    sizes = [
        (NUM_INPUT_CHANNELS, NUM_HIDDEN_UNITS),
        (NUM_HIDDEN_UNITS, NUM_HIDDEN_UNITS),
        (NUM_HIDDEN_UNITS, NUM_HIDDEN_UNITS),
        (NUM_HIDDEN_UNITS, NUM_HIDDEN_UNITS),
        (NUM_HIDDEN_UNITS, NUM_OUTPUTS),
    ]
    params = []
    for fan_in, fan_out in sizes:
        key, kw, kb = jax.random.split(key, 3)
        bound = 1.0 / jnp.sqrt(float(fan_in))
        w = jax.random.uniform(kw, (fan_out, fan_in), jnp.float32, -bound, bound)
        b = jax.random.uniform(kb, (fan_out,), jnp.float32, -bound, bound)
        params.append((w, b))
    return params


def mlp2_reference(x_vector, params, compute_dtype=jnp.bfloat16):
    """Pure-JAX reference using the same bf16-operand / f32-accumulation dots."""
    h = x_vector
    n = len(params)
    for i, (w, b) in enumerate(params):
        h = jnp.dot(h.astype(compute_dtype), w.T.astype(compute_dtype),
                    preferred_element_type=jnp.float32) + b
        if i < n - 1:
            h = h * jax.nn.sigmoid(h)   # Swish
        else:
            h = jnp.tanh(h)             # final Tanh
    return h


if __name__ == "__main__":
    key = jax.random.PRNGKey(0)
    key, kx = jax.random.split(key)

    # Deliberately NOT a multiple of 128 -> exercises batch padding AND the
    # >=2-grid-step clamp (tile_b collapses to 128 -> 2 "parallel" steps).
    B = 200
    x_vector = jax.random.normal(kx, (B, NUM_INPUT_CHANNELS), jnp.float32)
    # x_grid / x_grid_vector are unused by MLP2.forward; pass placeholders.
    x_grid = None
    x_grid_vector = None

    params = init_params(jax.random.PRNGKey(42))

    out = mlp2_forward(x_grid, x_grid_vector, x_vector, params)
    out = jax.block_until_ready(out)

    ref = mlp2_reference(x_vector, params)
    assert out.shape == (B, NUM_OUTPUTS), out.shape
    err = float(jnp.max(jnp.abs(out - ref)))
    # bf16 MXU operands (and a bf16 folded layer-1 bias) vs the bf16-matched
    # f32-bias reference -> small gap; a structural bug would be O(0.1-1).
    assert err < 2e-2, err

    print("KERNEL_OK")
</pallas_src>

<mosaic_0001>
module attributes {stable_mosaic.version = 11 : i64} {
  func.func @mlp2_kernel(%arg0: i32, %arg1: memref<128x128xbf16, #tpu.memory_space<vmem>>, %arg2: memref<256x128xbf16, #tpu.memory_space<vmem>>, %arg3: memref<256x256xbf16, #tpu.memory_space<vmem>>, %arg4: memref<256x1xf32, #tpu.memory_space<vmem>>, %arg5: memref<256x256xbf16, #tpu.memory_space<vmem>>, %arg6: memref<256x1xf32, #tpu.memory_space<vmem>>, %arg7: memref<256x256xbf16, #tpu.memory_space<vmem>>, %arg8: memref<256x1xf32, #tpu.memory_space<vmem>>, %arg9: memref<1x256xbf16, #tpu.memory_space<vmem>>, %arg10: memref<1x1xf32, #tpu.memory_space<vmem>>, %arg11: memref<1x128xf32, #tpu.memory_space<vmem>>) attributes {dimension_semantics = [#tpu.dimension_semantics<parallel>], iteration_bounds = array<i64: 2>, scalar_prefetch = 0 : i64, scratch_operands = 0 : i64, tpu.core_type = #tpu.core_type<tc>, window_params = [{transform_indices = @transform_0, window_bounds = array<i64: 128, 128>}, {pipeline_mode = #tpu.pipeline_mode<synchronous>, transform_indices = @transform_1, window_bounds = array<i64: 256, 128>}, {pipeline_mode = #tpu.pipeline_mode<synchronous>, transform_indices = @transform_2, window_bounds = array<i64: 256, 256>}, {pipeline_mode = #tpu.pipeline_mode<synchronous>, transform_indices = @transform_3, window_bounds = array<i64: 256, 1>}, {pipeline_mode = #tpu.pipeline_mode<synchronous>, transform_indices = @transform_4, window_bounds = array<i64: 256, 256>}, {pipeline_mode = #tpu.pipeline_mode<synchronous>, transform_indices = @transform_5, window_bounds = array<i64: 256, 1>}, {pipeline_mode = #tpu.pipeline_mode<synchronous>, transform_indices = @transform_6, window_bounds = array<i64: 256, 256>}, {pipeline_mode = #tpu.pipeline_mode<synchronous>, transform_indices = @transform_7, window_bounds = array<i64: 256, 1>}, {pipeline_mode = #tpu.pipeline_mode<synchronous>, transform_indices = @transform_8, window_bounds = array<i64: 1, 256>}, {pipeline_mode = #tpu.pipeline_mode<synchronous>, transform_indices = @transform_9, window_bounds = array<i64: 1, 1>}, {transform_indices = @transform_10, window_bounds = array<i64: 1, 128>}]} {
    %c0 = arith.constant 0 : index
    %c0_0 = arith.constant 0 : index
    %0 = vector.load %arg2[%c0, %c0_0] : memref<256x128xbf16, #tpu.memory_space<vmem>>, vector<256x128xbf16>
    %c0_1 = arith.constant 0 : index
    %c0_2 = arith.constant 0 : index
    %1 = vector.load %arg1[%c0_1, %c0_2] : memref<128x128xbf16, #tpu.memory_space<vmem>>, vector<128x128xbf16>
    %cst = arith.constant dense<0.000000e+00> : vector<256x128xf32>
    %2 = tpu.matmul %0, %1, %cst {dimension_numbers = #tpu.dot_dimension_numbers<[1], [1], [0], [0], [0, 0, 1, 0], [], []>} : vector<256x128xbf16>, vector<128x128xbf16>, vector<256x128xf32> -> vector<256x128xf32>
    %cst_3 = arith.constant 5.000000e-01 : f32
    %3 = vector.broadcast %cst_3 : f32 to vector<256x128xf32>
    %4 = arith.mulf %3, %2 : vector<256x128xf32>
    %5 = math.tanh %4 : vector<256x128xf32>
    %cst_4 = arith.constant 5.000000e-01 : f32
    %6 = vector.broadcast %cst_4 : f32 to vector<256x128xf32>
    %7 = arith.mulf %6, %5 : vector<256x128xf32>
    %cst_5 = arith.constant 5.000000e-01 : f32
    %8 = vector.broadcast %cst_5 : f32 to vector<256x128xf32>
    %9 = arith.addf %7, %8 : vector<256x128xf32>
    %10 = arith.mulf %2, %9 : vector<256x128xf32>
    %c0_6 = arith.constant 0 : index
    %c0_7 = arith.constant 0 : index
    %11 = vector.load %arg3[%c0_6, %c0_7] : memref<256x256xbf16, #tpu.memory_space<vmem>>, vector<256x256xbf16>
    %12 = arith.truncf %10 : vector<256x128xf32> to vector<256x128xbf16>
    %cst_8 = arith.constant dense<0.000000e+00> : vector<256x128xf32>
    %13 = tpu.matmul %11, %12, %cst_8 {dimension_numbers = #tpu.dot_dimension_numbers<[1], [0], [0], [1], [0, 0, 1, 1], [], []>} : vector<256x256xbf16>, vector<256x128xbf16>, vector<256x128xf32> -> vector<256x128xf32>
    %c0_9 = arith.constant 0 : index
    %c0_10 = arith.constant 0 : index
    %14 = vector.load %arg4[%c0_9, %c0_10] : memref<256x1xf32, #tpu.memory_space<vmem>>, vector<256x1xf32>
    %15 = vector.broadcast %14 : vector<256x1xf32> to vector<256x128xf32>
    %16 = arith.addf %13, %15 : vector<256x128xf32>
    %cst_11 = arith.constant 5.000000e-01 : f32
    %17 = vector.broadcast %cst_11 : f32 to vector<256x128xf32>
    %18 = arith.mulf %17, %16 : vector<256x128xf32>
    %19 = math.tanh %18 : vector<256x128xf32>
    %cst_12 = arith.constant 5.000000e-01 : f32
    %20 = vector.broadcast %cst_12 : f32 to vector<256x128xf32>
    %21 = arith.mulf %20, %19 : vector<256x128xf32>
    %cst_13 = arith.constant 5.000000e-01 : f32
    %22 = vector.broadcast %cst_13 : f32 to vector<256x128xf32>
    %23 = arith.addf %21, %22 : vector<256x128xf32>
    %24 = arith.mulf %16, %23 : vector<256x128xf32>
    %c0_14 = arith.constant 0 : index
    %c0_15 = arith.constant 0 : index
    %25 = vector.load %arg5[%c0_14, %c0_15] : memref<256x256xbf16, #tpu.memory_space<vmem>>, vector<256x256xbf16>
    %26 = arith.truncf %24 : vector<256x128xf32> to vector<256x128xbf16>
    %cst_16 = arith.constant dense<0.000000e+00> : vector<256x128xf32>
    %27 = tpu.matmul %25, %26, %cst_16 {dimension_numbers = #tpu.dot_dimension_numbers<[1], [0], [0], [1], [0, 0, 1, 1], [], []>} : vector<256x256xbf16>, vector<256x128xbf16>, vector<256x128xf32> -> vector<256x128xf32>
    %c0_17 = arith.constant 0 : index
    %c0_18 = arith.constant 0 : index
    %28 = vector.load %arg6[%c0_17, %c0_18] : memref<256x1xf32, #tpu.memory_space<vmem>>, vector<256x1xf32>
    %29 = vector.broadcast %28 : vector<256x1xf32> to vector<256x128xf32>
    %30 = arith.addf %27, %29 : vector<256x128xf32>
    %cst_19 = arith.constant 5.000000e-01 : f32
    %31 = vector.broadcast %cst_19 : f32 to vector<256x128xf32>
    %32 = arith.mulf %31, %30 : vector<256x128xf32>
    %33 = math.tanh %32 : vector<256x128xf32>
    %cst_20 = arith.constant 5.000000e-01 : f32
    %34 = vector.broadcast %cst_20 : f32 to vector<256x128xf32>
    %35 = arith.mulf %34, %33 : vector<256x128xf32>
    %cst_21 = arith.constant 5.000000e-01 : f32
    %36 = vector.broadcast %cst_21 : f32 to vector<256x128xf32>
    %37 = arith.addf %35, %36 : vector<256x128xf32>
    %38 = arith.mulf %30, %37 : vector<256x128xf32>
    %c0_22 = arith.constant 0 : index
    %c0_23 = arith.constant 0 : index
    %39 = vector.load %arg7[%c0_22, %c0_23] : memref<256x256xbf16, #tpu.memory_space<vmem>>, vector<256x256xbf16>
    %40 = arith.truncf %38 : vector<256x128xf32> to vector<256x128xbf16>
    %cst_24 = arith.constant dense<0.000000e+00> : vector<256x128xf32>
    %41 = tpu.matmul %39, %40, %cst_24 {dimension_numbers = #tpu.dot_dimension_numbers<[1], [0], [0], [1], [0, 0, 1, 1], [], []>} : vector<256x256xbf16>, vector<256x128xbf16>, vector<256x128xf32> -> vector<256x128xf32>
    %c0_25 = arith.constant 0 : index
    %c0_26 = arith.constant 0 : index
    %42 = vector.load %arg8[%c0_25, %c0_26] : memref<256x1xf32, #tpu.memory_space<vmem>>, vector<256x1xf32>
    %43 = vector.broadcast %42 : vector<256x1xf32> to vector<256x128xf32>
    %44 = arith.addf %41, %43 : vector<256x128xf32>
    %cst_27 = arith.constant 5.000000e-01 : f32
    %45 = vector.broadcast %cst_27 : f32 to vector<256x128xf32>
    %46 = arith.mulf %45, %44 : vector<256x128xf32>
    %47 = math.tanh %46 : vector<256x128xf32>
    %cst_28 = arith.constant 5.000000e-01 : f32
    %48 = vector.broadcast %cst_28 : f32 to vector<256x128xf32>
    %49 = arith.mulf %48, %47 : vector<256x128xf32>
    %cst_29 = arith.constant 5.000000e-01 : f32
    %50 = vector.broadcast %cst_29 : f32 to vector<256x128xf32>
    %51 = arith.addf %49, %50 : vector<256x128xf32>
    %52 = arith.mulf %44, %51 : vector<256x128xf32>
    %c0_30 = arith.constant 0 : index
    %c0_31 = arith.constant 0 : index
    %53 = vector.load %arg9[%c0_30, %c0_31] : memref<1x256xbf16, #tpu.memory_space<vmem>>, vector<1x256xbf16>
    %54 = arith.truncf %52 : vector<256x128xf32> to vector<256x128xbf16>
    %cst_32 = arith.constant dense<0.000000e+00> : vector<1x128xf32>
    %55 = tpu.matmul %53, %54, %cst_32 {dimension_numbers = #tpu.dot_dimension_numbers<[1], [0], [0], [1], [0, 0, 1, 1], [], []>} : vector<1x256xbf16>, vector<256x128xbf16>, vector<1x128xf32> -> vector<1x128xf32>
    %c0_33 = arith.constant 0 : index
    %c0_34 = arith.constant 0 : index
    %56 = vector.load %arg10[%c0_33, %c0_34] : memref<1x1xf32, #tpu.memory_space<vmem>>, vector<1x1xf32>
    %57 = vector.broadcast %56 : vector<1x1xf32> to vector<1x128xf32>
    %58 = arith.addf %55, %57 : vector<1x128xf32>
    %59 = math.tanh %58 : vector<1x128xf32>
    %c0_35 = arith.constant 0 : index
    %c0_36 = arith.constant 0 : index
    %60 = vector.load %arg11[%c0_35, %c0_36] : memref<1x128xf32, #tpu.memory_space<vmem>>, vector<1x128xf32>
    tpu.vector_store %arg11[%c0_35, %c0_36], %59 {strides = array<i32>} : memref<1x128xf32, #tpu.memory_space<vmem>>, vector<1x128xf32>,
    return
  }
  func.func @transform_0(%arg0: i32) -> (i32, i32) {
    %c0_i32 = arith.constant 0 : i32
    %c0_i32_0 = arith.constant 0 : i32
    return %arg0, %c0_i32 : i32, i32
  }
  func.func @transform_1(%arg0: i32) -> (i32, i32) {
    %c0_i32 = arith.constant 0 : i32
    %c0_i32_0 = arith.constant 0 : i32
    %c0_i32_1 = arith.constant 0 : i32
    return %c0_i32, %c0_i32_0 : i32, i32
  }
  func.func @transform_2(%arg0: i32) -> (i32, i32) {
    %c0_i32 = arith.constant 0 : i32
    %c0_i32_0 = arith.constant 0 : i32
    %c0_i32_1 = arith.constant 0 : i32
    return %c0_i32, %c0_i32_0 : i32, i32
  }
  func.func @transform_3(%arg0: i32) -> (i32, i32) {
    %c0_i32 = arith.constant 0 : i32
    %c0_i32_0 = arith.constant 0 : i32
    %c0_i32_1 = arith.constant 0 : i32
    return %c0_i32, %c0_i32_0 : i32, i32
  }
  func.func @transform_4(%arg0: i32) -> (i32, i32) {
    %c0_i32 = arith.constant 0 : i32
    %c0_i32_0 = arith.constant 0 : i32
    %c0_i32_1 = arith.constant 0 : i32
    return %c0_i32, %c0_i32_0 : i32, i32
  }
  func.func @transform_5(%arg0: i32) -> (i32, i32) {
    %c0_i32 = arith.constant 0 : i32
    %c0_i32_0 = arith.constant 0 : i32
    %c0_i32_1 = arith.constant 0 : i32
    return %c0_i32, %c0_i32_0 : i32, i32
  }
  func.func @transform_6(%arg0: i32) -> (i32, i32) {
    %c0_i32 = arith.constant 0 : i32
    %c0_i32_0 = arith.constant 0 : i32
    %c0_i32_1 = arith.constant 0 : i32
    return %c0_i32, %c0_i32_0 : i32, i32
  }
  func.func @transform_7(%arg0: i32) -> (i32, i32) {
    %c0_i32 = arith.constant 0 : i32
    %c0_i32_0 = arith.constant 0 : i32
    %c0_i32_1 = arith.constant 0 : i32
    return %c0_i32, %c0_i32_0 : i32, i32
  }
  func.func @transform_8(%arg0: i32) -> (i32, i32) {
    %c0_i32 = arith.constant 0 : i32
    %c0_i32_0 = arith.constant 0 : i32
    %c0_i32_1 = arith.constant 0 : i32
    return %c0_i32, %c0_i32_0 : i32, i32
  }
  func.func @transform_9(%arg0: i32) -> (i32, i32) {
    %c0_i32 = arith.constant 0 : i32
    %c0_i32_0 = arith.constant 0 : i32
    %c0_i32_1 = arith.constant 0 : i32
    return %c0_i32, %c0_i32_0 : i32, i32
  }
  func.func @transform_10(%arg0: i32) -> (i32, i32) {
    %c0_i32 = arith.constant 0 : i32
    %c0_i32_0 = arith.constant 0 : i32
    return %c0_i32, %arg0 : i32, i32
  }
}

</mosaic_0001>

<bundles_post_ra>
// kernel: tpu_custom_call.1
= control target key start
LH: loop header
LB: loop body
LE: loop exit
PB: predicated region body
PF: predicated region fallthrough
CT: control target
= control target key end

     0   :  { %s6192_s0 = inlined_call_operand.hbm [shape: bf16[256,128], index: 0, kind: input, shape index: {}]   ;;  %s6193_s1 = inlined_call_operand.hbm [shape: bf16[256,128], index: 1, kind: input, shape index: {}]   ;;  %s6194_s2 = inlined_call_operand.vmem [shape: bf16[256,256], index: 2, kind: input, shape index: {}]   ;;  %s6195_s3 = inlined_call_operand.vmem [shape: f32[256,1], index: 3, kind: input, shape index: {}]   ;;  %s6196_s4 = inlined_call_operand.vmem [shape: bf16[256,256], index: 4, kind: input, shape index: {}]   ;;  %s6197_s5 = inlined_call_operand.vmem [shape: f32[256,1], index: 5, kind: input, shape index: {}]   ;;  %s6198_s6 = inlined_call_operand.vmem [shape: bf16[256,256], index: 6, kind: input, shape index: {}]   ;;  %s6199_s7 = inlined_call_operand.vmem [shape: f32[256,1], index: 7, kind: input, shape index: {}]   ;;  %s6200_s8 = inlined_call_operand.vmem [shape: bf16[1,256], index: 8, kind: input, shape index: {}]   ;;  %s6201_s9 = inlined_call_operand.<no memory space> [shape: f32[1,1], index: 9, kind: input, shape index: {}]   ;;  %s6202_s10 = inlined_call_operand.hbm [shape: f32[1,256], index: 10, kind: output, shape index: {}]  }
   0x1   :  { %6214 = sst [smem:[#allocation16_spill]] %s6193_s1  ;;  %v15_v0 = vstv %s6201_s9 }
   0x2   :  { %16 = vst [vmem:[#allocation2] sm:$0x1] %v15_v0 }
   0x3   :  { %17 = vsyncpa [#allocation4], 0 }
   0x4   :  { %19 = vsyncpa [#allocation4 + $0x1], 0 }
   0x5   :  { %20 = vsyncpa [#allocation7], 0 }
   0x6   :  { %21 = vsyncpa [#allocation5], 0 }
   0x7   :  { %23 = vsyncpa [#allocation5 + $0x1], 0  ;;  %s4498_s15 = smov 0   ;;  %s4500_s16 = smov 0  }
   0x8   :  { %s4502_s17 = smov 0   ;;  %s4504_s18 = smov 0  }
   0x9 LB: > { %s4519_s9 = sadd.s32 4294967295, %s4431_s18   ;;  %s3255_s19 = sadd.s32 4294967294, %s4431_s18   ;;  %s4431_s18 = sphi %s4504_s18, %s6270_s18   ;;  %s4427_s17 = sphi %s4502_s17, %s6273_s17   ;;  %s4423_s16 = sphi %s4500_s16, %s6272_s16   ;;  %s4419_s15 = sphi %s4498_s15, %s6271_s15  }
   0xa   : > { %p49_p0 = scmp.ne.s32.totalorder %s4423_s16, %s4419_s15  ;;  %p6207_p1 = scmp.eq.s32.totalorder %s4519_s9, 0 }
   0xb   : > { %p268_p3 = scmp.eq.s32.totalorder %s3255_s19, 1  ;;  %p3256_p5 = scmp.ge.s32.totalorder %s4431_s18, 1 }
   0xc   : > { %p4528_p4 = por %p6207_p1, %p49_p0  ;;  %p275_p7 = scmp.lt.s32.totalorder %s4431_s18, 3 }
   0xd   : > { %p4533_p6 = por %p268_p3, %p49_p0  ;;  %s4433_s23 = smov [#allocation6]  }
   0xe   : > { %s6215_s20 = scalar_select %p4528_p4, 1, 0 }
   0xf   : > { %s6216_s21 = scalar_select %p4533_p6, 1, 0 }
  0x10   : > { %p4538_p8 = pnand %p3256_p5, %p275_p7  ;;  %s287_s24 = sshll.u32 %s4433_s23, 4  ;;  %s288_s24 = int_to_ptr.vmem [resolvable:$true] %s287_s24 }
  0x11   : > { %6217 = sst [smem:[#allocation12_spill]] %s6216_s21  ;;  %s4552_s26 = sadd.s32 1, %s4431_s18  }
  0x12   : > { %s6218_s22 = scalar_select %p4538_p8, 1, 0 }
  0x13   : > { %p3828_p9 = pneg %p4538_p8  ;;  %6220 = sst [smem:[#allocation13_spill]] %s4552_s26 }
  0x14   : > { %s36_s27 = sadd.s32 1, %s4427_s17  ;;  %s33_s28 = ssub.s32 %s4431_s18, %s4552_s26 }
  0x15   : > { %p4547_p11 = pnand %p3828_p9, %p6207_p1  ;;  %s4320_s29 = scalar_lea.vmem %s288_s24, 2048 }
  0x16   : > { %p4321_p13 = scmp.ne.s32.totalorder %s288_s24, %s4320_s29  ;;  %p4328_p5 = scmp.lt.s32.totalorder %s288_s24, %s288_s24 }
  0x17   : > { %p4311_p12 = pneg %p4547_p11  ;;  %p4329_p7 = scmp.lt.s32.totalorder %s4320_s29, %s4320_s29 }
  0x19   : > { %p4323_p0 = pnand %p4321_p13, %p4311_p12  ;;  %p4330_p10 = por %p4329_p7, %p4328_p5 }
  0x1b   : > { %p4324_p3 = pneg %p4323_p0 }
  0x1d   : > { %p4331_p2 = pnand %p4330_p10, %p4324_p3 }
  0x1f   : > { %4334 = shalt.err (!%p4331_p2)
}
  0x20   : > { %s6206_s30 = smov 64   ;;  %s6208_s11 = smov 4  }
  0x21   : > { %s6221_s1 = sld [smem:[#allocation16_spill]]  ;;  %p34_p2 = scmp.eq.s32.totalorder %s33_s28, 0 }
  0x22   : > { %p43_p9 = scmp.ne.s32.totalorder %s4427_s17, %s4423_s16  ;;  %p44_p10 = scmp.eq.s32.totalorder %s4431_s18, 0 }
  0x23   : > { %p3841_p12 = scmp.lt.s32.totalorder %s4431_s18, 2  ;;  %p6222_p0 = scmp.eq.s32.totalorder %s4519_s9, 1 }
  0x24   : > { %s4572_s14 = scalar_select %p34_p2, %s4427_s17, %s36_s27  }
  0x25   : > { %p45_p13 = por %p44_p10, %p43_p9  ;;  %p4576_p3 = por %p6222_p0, %p43_p9 }
  0x26   : > { %s325_s23 = sand.u32 1, %s4427_s17   ;;  %s3389_s25 = sshll.u32 %s4431_s18, 10 }
  0x27   : > { %3831 = dma.hbm_to_vmem [thread:$0]  (!%p4547_p11), %s6221_s1, 2048, %s288_s24, [#allocation7], %s6206_s30, %s6206_s30, %s6208_s11  }
  0x28   : > { %s6223_s19 = scalar_select %p4576_p3, 1, 0 }
  0x29   : > { %s3259_s29 = sshll.u32 %s325_s23, 6  ;;  %s4585_s12 = scalar_lea.hbm %s6192_s0, %s3389_s25 }
  0x2a   : > { %s329_s24 = scalar_lea.vmem [#allocation3], %s3259_s29  ;;  %p4587_p11 = pnand %p3841_p12, %p45_p13 }
  0x2b   : > { %s336_s27 = sshll.u32 %s329_s24, 4  ;;  %s4593_s13 = scalar_lea.sflag [#allocation4], %s325_s23  ;;  %s4591_s27 = int_to_ptr.vmem [resolvable:$true] %s336_s27 }
  0x2c   : > { %s4335_s30 = scalar_lea.hbm %s4585_s12, 1024  ;;  %p4337_p7 = pneg %p4587_p11 }
  0x2d   : > { %p4336_p5 = scmp.ne.s32.totalorder %s4585_s12, %s4335_s30  ;;  %s4340_s25 = scalar_lea.hbm %s6192_s0, 2048 }
  0x2e   : > { %p4341_p10 = scmp.lt.s32.totalorder %s4585_s12, %s6192_s0  ;;  %p4342_p12 = scmp.lt.s32.totalorder %s4340_s25, %s4335_s30 }
  0x2f   : > { %p4338_p2 = pnand %p4337_p7, %p4336_p5 }
  0x30   : > { %p4343_p13 = por %p4342_p12, %p4341_p10 }
  0x31   : > { %p4339_p9 = pneg %p4338_p2 }
  0x33   : > { %p4344_p0 = pnand %p4343_p13, %p4339_p9 }
  0x35   : > { %4347 = shalt.err (!%p4344_p0)
}
  0x36   : > { %s4348_s23 = scalar_lea.vmem %s4591_s27, 1024  ;;  %s4436_s11 = smov [#allocation3]  }
  0x37   : > { %p4349_p1 = scmp.ne.s32.totalorder %s4591_s27, %s4348_s23  ;;  %s4353_s1 = sshll.u32 %s4436_s11, 4  ;;  %s4354_s1 = int_to_ptr.vmem [resolvable:$false] %s4353_s1 }
  0x38   : > { %s4355_s21 = scalar_lea.vmem %s4354_s1, 2048  ;;  %p4356_p2 = scmp.lt.s32.totalorder %s4591_s27, %s4354_s1 }
  0x39   : > { %p4351_p6 = pnand %p4349_p1, %p4337_p7  ;;  %p4357_p3 = scmp.lt.s32.totalorder %s4355_s21, %s4348_s23 }
  0x3b   : > { %p4352_p5 = pneg %p4351_p6  ;;  %p4358_p4 = por %p4357_p3, %p4356_p2 }
  0x3d   : > { %p4359_p8 = pnand %p4358_p4, %p4352_p5 }
  0x3f   : > { %4362 = shalt.err (!%p4359_p8)
}
  0x40   : > { %s6225_s30 = smov 4   ;;  %s6226_s26 = smov 64  }
  0x41   : > { %3835 = dma.hbm_to_vmem [thread:$0]  (!%p4587_p11), %s4585_s12, 1024, %s4591_s27, %s4593_s13, %s6226_s26, %s6226_s26, %s6225_s30  }
  0x42   : > { %p6227_p1 = scmp.ne.s32.totalorder %s6218_s22, 0 }
  0x44   : > { %348 = sbr.rel (%p6227_p1) target bundleno = 1817 (0x719), region = 60 }
  0x49   : > { %s4620_s11 = sand.u32 1, %s4423_s16   ;;  %p6228_p4 = scmp.ne.s32.totalorder %s6215_s20, 0 }
  0x4a   : > { %s3263_s1 = sshll.u32 %s4620_s11, 6  ;;  %s351_s25 = scalar_lea.sflag [#allocation4], %s4620_s11 }
  0x4b   : > { %s354_s29 = scalar_lea.vmem [#allocation3], %s3263_s1 }
  0x4c   : > { %4406 = dma.done.wait (%p6228_p4), %s351_s25, 1024  }
  0x4d   : > { %4408 = vsyncadd (%p6228_p4), %s351_s25, 4294966272  ;;  %p6229_p6 = scmp.eq.s32.totalorder %s4519_s9, 0 }
  0x4f   : > { %4410 = dma.done.wait (%p6229_p6), [#allocation7], 2048   ;;  %p6230_p8 = pmov %p6229_p6 }
  0x50   : > { %v3883_v1 = vld [vmem:[%s354_s29 + $0x38] sm:$0xff]   ;;  %v3884_v2 = vld [vmem:[%s354_s29 + $0x30] sm:$0xff]   ;;  %v3885_v3 = vld [vmem:[%s354_s29 + $0x28] sm:$0xff]   ;;  %v4437_v25 = vmov 0   ;;  %s3386_s21 = sshll.u32 %s4519_s9, 4  ;;  %s393_s30 = scalar_lea.vmem [#allocation8], %s4620_s11 }
  0x51   : > { %4412 = vsyncadd (%p6230_p8), [#allocation7], 4294965248  ;;  %3772 = vmatprep.subr.bf16.mxu0 %v3883_v1  ;;  %v3891_v4 = vld [vmem:[#allocation6] sm:$0xff]   ;;  %v3887_v6 = vld [vmem:[%s354_s29 + $0x18] sm:$0xff]   ;;  %3881 = vset.pattern.permute.xlu0 %v4437_v25  ;;  %s3179_s26 = sshll.u32 %s393_s30, 4  ;;  %s3167_s20 = scalar_lea.sflag [#allocation5], %s4620_s11  ;;  %s3180_s26 = int_to_ptr.vmem [resolvable:$true] %s3179_s26 }
  0x52   : > { %3773 = vmatpush3.bf16.xpose.msra.mxu0 %v3883_v1  ;;  %3788 = vmatprep.mubr.bf16.mxu0 %v3891_v4  ;;  %v3886_v5 = vld [vmem:[%s354_s29 + $0x20] sm:$0xff]   ;;  %v3888_v7 = vld [vmem:[%s354_s29 + $0x10] sm:$0xff]   ;;  %v3889_v8 = vld [vmem:[%s354_s29 + $0x8] sm:$0xff]   ;;  %s4363_s22 = scalar_lea.vmem %s3180_s26, 16  ;;  %p6266_p11 = scmp.ne.s32.totalorder %s6223_s19, 0 }
  0x53   : > { %3774 = vmatprep.subr.bf16.mxu0 %v3884_v2  ;;  %v3890_v9 = vld [vmem:[%s354_s29] sm:$0xff]   ;;  %v3892_v10 = vld [vmem:[#allocation6 + $0x8] sm:$0xff]   ;;  %v3893_v11 = vld [vmem:[#allocation6 + $0x10] sm:$0xff]   ;;  %3882 = vset.pattern.permute.xlu1 %v4437_v25  ;;  %s6155_s29 = scalar_lea.hbm %s6202_s10, %s3386_s21  ;;  %p4364_p3 = scmp.ne.s32.totalorder %s3180_s26, %s4363_s22 }
  0x54   : > { %v3894_v12 = vld [vmem:[#allocation6 + $0x18] sm:$0xff]   ;;  %v3895_v13 = vld [vmem:[#allocation6 + $0x20] sm:$0xff]   ;;  %v3896_v14 = vld [vmem:[#allocation6 + $0x28] sm:$0xff]   ;;  %s4439_s12 = smov [#allocation8]  }
  0x55   : > { %v3897_v15 = vld [vmem:[#allocation6 + $0x30] sm:$0xff]   ;;  %v3898_v16 = vld [vmem:[#allocation6 + $0x38] sm:$0xff]   ;;  %v3899_v17 = vld [vmem:[#allocation6 + $0x40] sm:$0xff]   ;;  %p4365_p7 = pnand %p4364_p3, %p6266_p11  ;;  %s4367_s27 = sshll.u32 %s4439_s12, 4  ;;  %s4368_s27 = int_to_ptr.vmem [resolvable:$false] %s4367_s27 }
  0x56   : > { %v3900_v18 = vld [vmem:[#allocation6 + $0x48] sm:$0xff]   ;;  %v3901_v19 = vld [vmem:[#allocation6 + $0x50] sm:$0xff]   ;;  %v3902_v20 = vld [vmem:[#allocation6 + $0x58] sm:$0xff]   ;;  %s4369_s9 = scalar_lea.vmem %s4368_s27, 32  ;;  %p4370_p10 = scmp.lt.s32.totalorder %s3180_s26, %s4368_s27 }
  0x57   : > { %v3903_v21 = vld [vmem:[#allocation6 + $0x60] sm:$0xff]   ;;  %v3904_v22 = vld [vmem:[#allocation6 + $0x68] sm:$0xff]   ;;  %v3905_v23 = vld [vmem:[#allocation6 + $0x70] sm:$0xff]   ;;  %p4366_p9 = pneg %p4365_p7  ;;  %p4371_p12 = scmp.lt.s32.totalorder %s4369_s9, %s4363_s22 }
  0x58   : > { %v3906_v24 = vld [vmem:[#allocation6 + $0x78] sm:$0xff]   ;;  %v987_v26 = vld [vmem:[%s6195_s3 + $0xf0] sm:$0xff]  ;;  %v986_v31 = vld [vmem:[%s6195_s3 + $0xe8] sm:$0xff] }
  0x59   : > { %1141 = vperm.xlu0 %3881, %v987_v26   ;;  %v988_v27 = vld [vmem:[%s6195_s3 + $0xf8] sm:$0xff]  ;;  %v971_v28 = vld [vmem:[%s6195_s3 + $0x70] sm:$0xff]  ;;  %v985_v29 = vld [vmem:[%s6195_s3 + $0xe0] sm:$0xff]  ;;  %p4372_p13 = por %p4371_p12, %p4370_p10 }
  0x5a   : > { %3775 = vmatpush3.bf16.xpose.msra.mxu0 %v3884_v2  ;;  %1061 = vperm.xlu1 %3882, %v971_v28   ;;  %v972_v30 = vld [vmem:[%s6195_s3 + $0x78] sm:$0xff]  ;;  %v969_v32 = vld [vmem:[%s6195_s3 + $0x60] sm:$0xff]  ;;  %v970_v33 = vld [vmem:[%s6195_s3 + $0x68] sm:$0xff] }
  0x5b   : > { %3776 = vmatprep.subr.bf16.mxu0 %v3885_v3  ;;  %v983_v34 = vld [vmem:[%s6195_s3 + $0xd0] sm:$0xff]  ;;  %v984_v35 = vld [vmem:[%s6195_s3 + $0xd8] sm:$0xff]  ;;  %v981_v38 = vld [vmem:[%s6195_s3 + $0xc0] sm:$0xff]  ;;  %p4373_p0 = pnand %p4372_p13, %p4366_p9 }
  0x5c   : > { %v967_v36 = vld [vmem:[%s6195_s3 + $0x50] sm:$0xff]  ;;  %v968_v37 = vld [vmem:[%s6195_s3 + $0x58] sm:$0xff]  ;;  %v3909_v39 = vld [vmem:[%s6194_s2 + $0x4] ss:$8 sps:$4 sm:$0xff]  }
  0x5d   : > { %1146 = vperm.xlu0 %3881, %v988_v27   ;;  %1341 = vmatprep.mubr.bf16.mxu1 %v3909_v39  ;;  %v982_v40 = vld [vmem:[%s6195_s3 + $0xc8] sm:$0xff]  ;;  %v965_v41 = vld [vmem:[%s6195_s3 + $0x40] sm:$0xff]  ;;  %v979_v43 = vld [vmem:[%s6195_s3 + $0xb0] sm:$0xff] }
  0x5e   : > { %1066 = vperm.xlu1 %3882, %v972_v30   ;;  %v966_v42 = vld [vmem:[%s6195_s3 + $0x48] sm:$0xff]  ;;  %v980_v44 = vld [vmem:[%s6195_s3 + $0xb8] sm:$0xff]  ;;  %v963_v45 = vld [vmem:[%s6195_s3 + $0x30] sm:$0xff] }
  0x5f   : > { %v964_v48 = vld [vmem:[%s6195_s3 + $0x38] sm:$0xff]  ;;  %v977_v49 = vld [vmem:[%s6195_s3 + $0xa0] sm:$0xff]  ;;  %v978_v55 = vld [vmem:[%s6195_s3 + $0xa8] sm:$0xff] }
  0x60   : > { %v961_v56 = vld [vmem:[%s6195_s3 + $0x20] sm:$0xff]  ;;  %v962_v60 = vld [vmem:[%s6195_s3 + $0x28] sm:$0xff]  ;;  %v975_v61 = vld [vmem:[%s6195_s3 + $0x90] sm:$0xff] }
  0x61   : > { %1131 = vperm.xlu0 %3881, %v985_v29   ;;  %v959_v4 = vld [vmem:[%s6195_s3 + $0x10] sm:$0xff] }
  0x62   : > { %3777 = vmatpush3.bf16.xpose.msra.mxu0 %v3885_v3  ;;  %1136 = vperm.xlu1 %3882, %v986_v31   ;;  %v976_v3 = vld [vmem:[%s6195_s3 + $0x98] sm:$0xff] }
  0x63   : > { %3778 = vmatprep.subr.bf16.mxu0 %v3886_v5 }
  0x65   : > { %1051 = vperm.xlu0 %3881, %v969_v32  }
  0x66   : > { %1056 = vperm.xlu1 %3882, %v970_v33  }
  0x69   : > { %1121 = vperm.xlu0 %3881, %v983_v34  }
  0x6a   : > { %3779 = vmatpush3.bf16.xpose.msra.mxu0 %v3886_v5  ;;  %1126 = vperm.xlu1 %3882, %v984_v35   ;;  %v958_v35 = vld [vmem:[%s6195_s3 + $0x8] sm:$0xff] }
  0x6b   : > { %3780 = vmatprep.subr.bf16.mxu0 %v3887_v6 }
  0x6d   : > { %1041 = vperm.xlu0 %3881, %v967_v36   ;;  %v1708_v36 = vld [vmem:[%s6197_s5 + $0xf0] sm:$0xff] }
  0x6e   : > { %1046 = vperm.xlu1 %3882, %v968_v37  }
  0x71   : > { %1111 = vperm.xlu0 %3881, %v981_v38  }
  0x72   : > { %3781 = vmatpush3.bf16.xpose.msra.mxu0 %v3887_v6  ;;  %1116 = vperm.xlu1 %3882, %v982_v40  }
  0x73   : > { %3782 = vmatprep.subr.bf16.mxu0 %v3888_v7 }
  0x75   : > { %1031 = vperm.xlu0 %3881, %v965_v41  }
  0x76   : > { %1036 = vperm.xlu1 %3882, %v966_v42  }
  0x79   : > { %1101 = vperm.xlu0 %3881, %v979_v43  }
  0x7a   : > { %3783 = vmatpush3.bf16.xpose.msra.mxu0 %v3888_v7  ;;  %1106 = vperm.xlu1 %3882, %v980_v44  }
  0x7b   : > { %3784 = vmatprep.subr.bf16.mxu0 %v3889_v8 }
  0x7d   : > { %1021 = vperm.xlu0 %3881, %v963_v45  }
  0x7e   : > { %1026 = vperm.xlu1 %3882, %v964_v48  }
  0x81   : > { %1091 = vperm.xlu0 %3881, %v977_v49  }
  0x82   : > { %3785 = vmatpush3.bf16.xpose.msra.mxu0 %v3889_v8  ;;  %1096 = vperm.xlu1 %3882, %v978_v55  }
  0x83   : > { %3786 = vmatprep.subr.bf16.mxu0 %v3890_v9 }
  0x85   : > { %1011 = vperm.xlu0 %3881, %v961_v56  }
  0x86   : > { %1016 = vperm.xlu1 %3882, %v962_v60  }
  0x89   : > { %1081 = vperm.xlu0 %3881, %v975_v61   ;;  %v1693_v61 = vld [vmem:[%s6197_s5 + $0x78] sm:$0xff] }
  0x8a   : > { %3787 = vmatpush3.bf16.xpose.msra.mxu0 %v3890_v9  ;;  %1086 = vperm.xlu1 %3882, %v976_v3  }
  0x8d   : > { %1001 = vperm.xlu0 %3881, %v959_v4  }
  0x91   : > { %3789 = vmatmul.mubr.bf16.vlgmr.msra.gmra.mxu0 %v3892_v10  ;;  %v960_v10 = vld [vmem:[%s6195_s3 + $0x18] sm:$0xff] }
  0x92   : > { %3792 = vmatprep.mubr.bf16.mxu0 %v3893_v11  ;;  %v973_v11 = vld [vmem:[%s6195_s3 + $0x80] sm:$0xff]  ;;  %1006 = vperm.xlu1 %3882, %v960_v10  }
  0x93   : > { %1071 = vperm.xlu0 %3881, %v973_v11  }
  0x99   : > { %3793 = vmatmul.mubr.bf16.gmra.mxu0 %v3894_v12 }
  0x9a   : > { %3796 = vmatprep.mubr.bf16.mxu0 %v3895_v13 }
  0xa1   : > { %3797 = vmatmul.mubr.bf16.gmra.mxu0 %v3896_v14 }
  0xa2   : > { %3800 = vmatprep.mubr.bf16.mxu0 %v3897_v15 }
  0xa9   : > { %3801 = vmatmul.mubr.bf16.gmra.mxu0 %v3898_v16 }
  0xaa   : > { %3804 = vmatprep.mubr.bf16.mxu0 %v3899_v17 }
  0xb1   : > { %3805 = vmatmul.mubr.bf16.gmra.mxu0 %v3900_v18 }
  0xb2   : > { %3808 = vmatprep.mubr.bf16.mxu0 %v3901_v19 }
  0xb9   : > { %3809 = vmatmul.mubr.bf16.gmra.mxu0 %v3902_v20 }
  0xba   : > { %3812 = vmatprep.mubr.bf16.mxu0 %v3903_v21 }
  0xc1   : > { %3813 = vmatmul.mubr.bf16.gmra.mxu0 %v3904_v22 }
  0xc2   : > { %3816 = vmatprep.mubr.bf16.mxu0 %v3905_v23  ;;  %v974_v23 = vld [vmem:[%s6195_s3 + $0x88] sm:$0xff] }
  0xc3   : > { %1076 = vperm.xlu1 %3882, %v974_v23  }
  0xc7   : > { %996 = vperm.xlu1 %3882, %v958_v35  }
  0xc9   : > { %3817 = vmatmul.mubr.bf16.gmra.mxu0 %v3906_v24  ;;  %v957_v24 = vld [vmem:[%s6195_s3] sm:$0xff] }
  0xca   : > { %991 = vperm.xlu0 %3881, %v957_v24  }
  0xce   : > { %1862 = vperm.xlu0 %3881, %v1708_v36  }
 0x151   : > { %v4692_v46 = vpop.f32.mrf.mxu0 }
 0x152   : > { %v751_v47 = vmul.f32 0.5, %v4692_v46 }
 0x153   : > { %v4701_v50 = vpop.f32.mrf.mxu0 }
 0x154   : > { %4051 = vtanh.f32 %v751_v47  ;;  %v749_v51 = vmul.f32 0.5, %v4701_v50 }
 0x155   : > { %v4704_v52 = vpop.f32.mrf.mxu0 }
 0x156   : > { %4053 = vtanh.f32 %v749_v51  ;;  %v752_v53 = vmul.f32 0.5, %v4704_v52  ;;  %v1692_v51 = vld [vmem:[%s6197_s5 + $0x70] sm:$0xff] }
 0x157   : > { %v4707_v54 = vpop.f32.mrf.mxu0  ;;  %1782 = vperm.xlu0 %3881, %v1692_v51  }
 0x158   : > { %4055 = vtanh.f32 %v752_v53  ;;  %v750_v57 = vmul.f32 0.5, %v4707_v54 }
 0x159   : > { %v4716_v58 = vpop.f32.mrf.mxu0 }
 0x15a   : > { %4057 = vtanh.f32 %v750_v57  ;;  %v755_v59 = vmul.f32 0.5, %v4716_v58 }
 0x15b   : > { %v4725_v62 = vpop.f32.mrf.mxu0 }
 0x15c   : > { %4059 = vtanh.f32 %v755_v59  ;;  %v753_v63 = vmul.f32 0.5, %v4725_v62 }
 0x15d   : > { %v4728_v0 = vpop.f32.mrf.mxu0 }
 0x15e   : > { %4061 = vtanh.f32 %v753_v63  ;;  %v756_v1 = vmul.f32 0.5, %v4728_v0  ;;  %v1706_v63 = vld [vmem:[%s6197_s5 + $0xe0] sm:$0xff] }
 0x15f   : > { %v4731_v2 = vpop.f32.mrf.mxu0  ;;  %1852 = vperm.xlu0 %3881, %v1706_v63  }
 0x160   : > { %4063 = vtanh.f32 %v756_v1  ;;  %v754_v5 = vmul.f32 0.5, %v4731_v2 }
 0x161   : > { %v4052_v6 = vpop.eup %4051  ;;  %v4740_v7 = vpop.f32.mrf.mxu0 }
 0x162   : > { %v815_v8 = vmul.f32 0.5, %v4052_v6  ;;  %4065 = vtanh.f32 %v754_v5  ;;  %v759_v9 = vmul.f32 0.5, %v4740_v7 }
 0x163   : > { %v4054_v12 = vpop.eup %4053  ;;  %v4749_v13 = vpop.f32.mrf.mxu0 }
 0x164   : > { %v813_v14 = vmul.f32 0.5, %v4054_v12  ;;  %4067 = vtanh.f32 %v759_v9  ;;  %v757_v15 = vmul.f32 0.5, %v4749_v13  ;;  %v847_v17 = vadd.f32 0.5, %v815_v8 }
 0x165   : > { %v4056_v16 = vpop.eup %4055  ;;  %v4752_v18 = vpop.f32.mrf.mxu0 }
 0x166   : > { %v816_v19 = vmul.f32 0.5, %v4056_v16  ;;  %4069 = vtanh.f32 %v757_v15  ;;  %v760_v21 = vmul.f32 0.5, %v4752_v18  ;;  %v845_v25 = vadd.f32 0.5, %v813_v14 }
 0x167   : > { %v4058_v20 = vpop.eup %4057  ;;  %v4755_v22 = vpop.f32.mrf.mxu0  ;;  %v4765_v30 = vmul.f32 %v4692_v46, %v847_v17  ;;  %v1707_v17 = vld [vmem:[%s6197_s5 + $0xe8] sm:$0xff] }
 0x168   : > { %v848_v26 = vadd.f32 0.5, %v816_v19  ;;  %v814_v27 = vmul.f32 0.5, %v4058_v20  ;;  %v758_v28 = vmul.f32 0.5, %v4755_v22  ;;  %4071 = vtanh.f32 %v760_v21  ;;  %v1690_v19 = vld [vmem:[%s6197_s5 + $0x60] sm:$0xff] }
 0x169   : > { %v4060_v29 = vpop.eup %4059  ;;  %v4767_v31 = vpop.f32.mrf.mxu0  ;;  %v4781_v39 = vmul.f32 %v845_v25, %v4701_v50  ;;  %v1709_v50 = vld [vmem:[%s6197_s5 + $0xf8] sm:$0xff]  ;;  %1772 = vperm.xlu0 %3881, %v1690_v19  }
 0x16a   : > { %v4770_v32 = vmul.f32 %v4704_v52, %v848_v26  ;;  %v846_v33 = vadd.f32 0.5, %v814_v27  ;;  %v819_v34 = vmul.f32 0.5, %v4060_v29  ;;  %4073 = vtanh.f32 %v758_v28  ;;  %1867 = vperm.xlu1 %3882, %v1709_v50   ;;  %v1691_v27 = vld [vmem:[%s6197_s5 + $0x68] sm:$0xff]  ;;  %v1704_v28 = vld [vmem:[%s6197_s5 + $0xd0] sm:$0xff] }
 0x16b   : > { %v4062_v37 = vpop.eup %4061  ;;  %v4778_v38 = vpop.f32.mrf.mxu0  ;;  %v763_v50 = vmul.f32 0.5, %v4767_v31 }
 0x16c   : > { %v942_v40 = vpack.c.bf16 %v4770_v32, %v4765_v30  ;;  %v4786_v41 = vmul.f32 %v846_v33, %v4707_v54  ;;  %v817_v42 = vmul.f32 0.5, %v4062_v37  ;;  %v851_v46 = vadd.f32 0.5, %v819_v34  ;;  %v3910_v32 = vld [vmem:[%s6194_s2 + $0x14] ss:$8 sps:$4 sm:$0xff]  }
 0x16d   : > { %v4064_v43 = vpop.eup %4063  ;;  %v4788_v44 = vpop.f32.mrf.mxu0  ;;  %1842 = vperm.xlu0 %3881, %v1704_v28  }
 0x16e   : > { %v820_v47 = vmul.f32 0.5, %v4064_v43  ;;  %v849_v52 = vadd.f32 0.5, %v817_v42  ;;  %v4803_v57 = vmul.f32 %v4716_v58, %v851_v46  ;;  %1787 = vperm.xlu1 %3882, %v1693_v61   ;;  %v6232_v30 = vpack.c.bf16 %v4786_v41, %v4781_v39  ;;  %v2408_v39 = vld [vmem:[%s6199_s7 + $0x48] sm:$0xff]  ;;  %v3912_v41 = vld [vmem:[%s6194_s2 + $0x10] ss:$8 sps:$4 sm:$0xff]  }
 0x16f   : > { %v4066_v48 = vpop.eup %4065  ;;  %v4792_v49 = vpop.f32.mrf.mxu0 }
 0x170   : > { %v852_v53 = vadd.f32 0.5, %v820_v47  ;;  %v818_v54 = vmul.f32 0.5, %v4066_v48  ;;  %v4818_v58 = vmul.f32 %v849_v52, %v4725_v62  ;;  %v1689_v47 = vld [vmem:[%s6197_s5 + $0x58] sm:$0xff]  ;;  %v1702_v48 = vld [vmem:[%s6197_s5 + $0xc0] sm:$0xff] }
 0x171   : > { %v4068_v55 = vpop.eup %4067  ;;  %v4800_v56 = vpop.f32.mrf.mxu0 }
 0x172   : > { %v4806_v59 = vmul.f32 %v4728_v0, %v852_v53  ;;  %v850_v60 = vadd.f32 0.5, %v818_v54  ;;  %v823_v3 = vmul.f32 0.5, %v4068_v55  ;;  %v767_v4 = vmul.f32 0.5, %v4800_v56  ;;  %1857 = vperm.xlu1 %3882, %v1707_v17  }
 0x173   : > { %v4070_v1 = vpop.eup %4069  ;;  %v4815_v5 = vpop.f32.mrf.mxu0  ;;  %v761_v54 = vmul.f32 0.5, %v4778_v38 }
 0x174   : > { %v944_v0 = vpack.c.bf16 %v4806_v59, %v4803_v57  ;;  %v4823_v6 = vmul.f32 %v850_v60, %v4731_v2  ;;  %v821_v8 = vmul.f32 0.5, %v4070_v1  ;;  %4075 = vtanh.f32 %v767_v4  ;;  %v2426_v57 = vld [vmem:[%s6199_s7 + $0xd8] sm:$0xff]  ;;  %v2409_v59 = vld [vmem:[%s6199_s7 + $0x50] sm:$0xff] }
 0x175   : > { %v765_v9 = vmul.f32 0.5, %v4815_v5  ;;  %v4826_v10 = vpop.f32.mrf.mxu0  ;;  %v4072_v11 = vpop.eup %4071  ;;  %v855_v15 = vadd.f32 0.5, %v823_v3  ;;  %v764_v60 = vmul.f32 0.5, %v4788_v44 }
 0x176   : > { %v943_v12 = vpack.c.bf16 %v4823_v6, %v4818_v58  ;;  %v768_v62 = vmul.f32 0.5, %v4826_v10  ;;  %v824_v16 = vmul.f32 0.5, %v4072_v11  ;;  %v853_v20 = vadd.f32 0.5, %v821_v8  ;;  %1777 = vperm.xlu1 %3882, %v1691_v27   ;;  %v1703_v11 = vld [vmem:[%s6197_s5 + $0xc8] sm:$0xff] }
 0x177   : > { %v4074_v14 = vpop.eup %4073  ;;  %4077 = vtanh.f32 %v765_v9  ;;  %v4831_v2 = vpop.f32.mrf.mxu0  ;;  %v4849_v29 = vmul.f32 %v4740_v7, %v855_v15  ;;  %v762_v8 = vmul.f32 0.5, %v4792_v49  ;;  %v3907_v6 = vld [vmem:[%s6194_s2] ss:$8 sps:$4 sm:$0xff]  }
 0x178   : > { %v822_v21 = vmul.f32 0.5, %v4074_v14  ;;  %4079 = vtanh.f32 %v768_v62  ;;  %v766_v23 = vmul.f32 0.5, %v4831_v2  ;;  %v856_v24 = vadd.f32 0.5, %v824_v16  ;;  %v1686_v62 = vld [vmem:[%s6197_s5 + $0x40] sm:$0xff] }
 0x179   : > { %v4840_v25 = vpop.f32.mrf.mxu0  ;;  %v4857_v35 = vmul.f32 %v853_v20, %v4749_v13  ;;  %v1705_v13 = vld [vmem:[%s6197_s5 + $0xd8] sm:$0xff] }
 0x17a   : > { %v854_v26 = vadd.f32 0.5, %v822_v21  ;;  %4081 = vtanh.f32 %v766_v23  ;;  %v4852_v33 = vmul.f32 %v4752_v18, %v856_v24  ;;  %1847 = vperm.xlu1 %3882, %v1705_v13   ;;  %v1687_v24 = vld [vmem:[%s6197_s5 + $0x48] sm:$0xff] }
 0x17b   : > { %v4854_v34 = vpop.f32.mrf.mxu0  ;;  %4083 = vtanh.f32 %v763_v50 }
 0x17c   : > { %v4860_v36 = vmul.f32 %v854_v26, %v4755_v22  ;;  %v946_v37 = vpack.c.bf16 %v4852_v33, %v4849_v29  ;;  %v1688_v22 = vld [vmem:[%s6197_s5 + $0x50] sm:$0xff]  ;;  %4085 = vtanh.f32 %v761_v54  ;;  %v2428_v33 = vld [vmem:[%s6199_s7 + $0xe8] sm:$0xff] }
 0x17d   : > { %v4864_v42 = vpop.f32.mrf.mxu0  ;;  %1762 = vperm.xlu0 %3881, %v1688_v22   ;;  %4087 = vtanh.f32 %v764_v60  ;;  %v1700_v26 = vld [vmem:[%s6197_s5 + $0xb0] sm:$0xff]  ;;  %v1685_v60 = vld [vmem:[%s6197_s5 + $0x38] sm:$0xff] }
 0x17e   : > { %v945_v7 = vpack.c.bf16 %v4860_v36, %v4857_v35  ;;  %1767 = vperm.xlu1 %3882, %v1689_v47   ;;  %4089 = vtanh.f32 %v762_v8  ;;  %v771_v8 = vmul.f32 0.5, %v4840_v25  ;;  %v2425_v35 = vld [vmem:[%s6199_s7 + $0xd0] sm:$0xff]  ;;  %v2407_v36 = vld [vmem:[%s6199_s7 + $0x40] sm:$0xff] }
 0x17f   : > { %v4868_v18 = vpop.f32.mrf.mxu0 }
 0x181   : > { %v4876_v43 = vpop.f32.mrf.mxu0  ;;  %v4076_v46 = vpop.eup %4075  ;;  %1832 = vperm.xlu0 %3881, %v1702_v48  }
 0x182   : > { %v831_v51 = vmul.f32 0.5, %v4076_v46  ;;  %1837 = vperm.xlu1 %3882, %v1703_v11   ;;  %v775_v22 = vmul.f32 0.5, %v4876_v43 }
 0x183   : > { %v4885_v52 = vpop.f32.mrf.mxu0 }
 0x184   : > { %v4078_v53 = vpop.eup %4077  ;;  %v863_v1 = vadd.f32 0.5, %v831_v51  ;;  %v1701_v51 = vld [vmem:[%s6197_s5 + $0xb8] sm:$0xff] }
 0x185   : > { %v4080_v55 = vpop.eup %4079  ;;  %v829_v61 = vmul.f32 0.5, %v4078_v53  ;;  %v4889_v63 = vpop.f32.mrf.mxu0  ;;  %1752 = vperm.xlu0 %3881, %v1686_v62   ;;  %v1684_v53 = vld [vmem:[%s6197_s5 + $0x30] sm:$0xff]  ;;  %v770_v62 = vmul.f32 0.5, %v4868_v18 }
 0x186   : > { %v832_v3 = vmul.f32 0.5, %v4080_v55  ;;  %v4903_v19 = vmul.f32 %v4800_v56, %v863_v1  ;;  %v776_v23 = vmul.f32 0.5, %v4889_v63  ;;  %1757 = vperm.xlu1 %3882, %v1687_v24   ;;  %v773_v55 = vmul.f32 0.5, %v4885_v52 }
 0x187   : > { %v4082_v4 = vpop.eup %4081  ;;  %v4892_v9 = vpop.f32.mrf.mxu0  ;;  %v861_v14 = vadd.f32 0.5, %v829_v61  ;;  %v1698_v61 = vld [vmem:[%s6197_s5 + $0xa0] sm:$0xff]  ;;  %v772_v1 = vmul.f32 0.5, %v4864_v42 }
 0x188   : > { %v864_v15 = vadd.f32 0.5, %v832_v3  ;;  %v830_v16 = vmul.f32 0.5, %v4082_v4  ;;  %v4084_v3 = vpop.eup %4083 }
 0x189   : > { %v4900_v17 = vpop.f32.mrf.mxu0  ;;  %v4919_v56 = vmul.f32 %v861_v14, %v4815_v5  ;;  %1822 = vperm.xlu0 %3881, %v1700_v26   ;;  %v774_v5 = vmul.f32 0.5, %v4892_v9  ;;  %v4086_v4 = vpop.eup %4085  ;;  %v1699_v14 = vld [vmem:[%s6197_s5 + $0xa8] sm:$0xff] }
 0x18a   : > { %v4906_v20 = vmul.f32 %v4826_v10, %v864_v15  ;;  %v862_v21 = vadd.f32 0.5, %v830_v16  ;;  %v779_v27 = vmul.f32 0.5, %v4900_v17  ;;  %1827 = vperm.xlu1 %3882, %v1701_v51   ;;  %v4088_v11 = vpop.eup %4087  ;;  %v1682_v15 = vld [vmem:[%s6197_s5 + $0x20] sm:$0xff]  ;;  %v1683_v26 = vld [vmem:[%s6197_s5 + $0x28] sm:$0xff] }
 0x18b   : > { %v4916_v28 = vpop.f32.mrf.mxu0  ;;  %v4090_v16 = vpop.eup %4089  ;;  %v828_v24 = vmul.f32 0.5, %v4088_v11 }
 0x18c   : > { %v950_v10 = vpack.c.bf16 %v4906_v20, %v4903_v19  ;;  %v4924_v13 = vmul.f32 %v862_v21, %v4831_v2  ;;  %4091 = vtanh.f32 %v779_v27  ;;  %v777_v46 = vmul.f32 0.5, %v4916_v28  ;;  %v1696_v27 = vld [vmem:[%s6197_s5 + $0x90] sm:$0xff]  ;;  %v2422_v19 = vld [vmem:[%s6199_s7 + $0xb8] sm:$0xff] }
 0x18d   : > { %v4928_v47 = vpop.f32.mrf.mxu0  ;;  %4093 = vtanh.f32 %v776_v23  ;;  %1742 = vperm.xlu0 %3881, %v1684_v53   ;;  %v769_v21 = vmul.f32 0.5, %v4854_v34  ;;  %v2405_v20 = vld [vmem:[%s6199_s7 + $0x30] sm:$0xff] }
 0x18e   : > { %4095 = vtanh.f32 %v777_v46  ;;  %v780_v50 = vmul.f32 0.5, %v4928_v47  ;;  %1747 = vperm.xlu1 %3882, %v1685_v60   ;;  %v826_v60 = vmul.f32 0.5, %v4090_v16  ;;  %v6231_v58 = vpack.c.bf16 %v4924_v13, %v4919_v56  ;;  %v2406_v56 = vld [vmem:[%s6199_s7 + $0x38] sm:$0xff]  ;;  %v2419_v13 = vld [vmem:[%s6199_s7 + $0xa0] sm:$0xff] }
 0x18f   : > { %v4934_v2 = vpop.f32.mrf.mxu0  ;;  %4097 = vtanh.f32 %v775_v22 }
 0x190   : > { %v778_v54 = vmul.f32 0.5, %v4934_v2  ;;  %4099 = vtanh.f32 %v780_v50  ;;  %v827_v50 = vmul.f32 0.5, %v4084_v3  ;;  %v1680_v3 = vld [vmem:[%s6197_s5 + $0x10] sm:$0xff] }
 0x191   : > { %1812 = vperm.xlu0 %3881, %v1698_v61  }
 0x192   : > { %4101 = vtanh.f32 %v778_v54  ;;  %1817 = vperm.xlu1 %3882, %v1699_v14   ;;  %v1697_v14 = vld [vmem:[%s6197_s5 + $0x98] sm:$0xff] }
 0x193   : > { %4103 = vtanh.f32 %v774_v5 }
 0x194   : > { %4105 = vtanh.f32 %v773_v55  ;;  %v860_v55 = vadd.f32 0.5, %v828_v24 }
 0x195   : > { %4107 = vtanh.f32 %v772_v1  ;;  %1732 = vperm.xlu0 %3881, %v1682_v15   ;;  %v859_v15 = vadd.f32 0.5, %v827_v50  ;;  %v1694_v50 = vld [vmem:[%s6197_s5 + $0x80] sm:$0xff] }
 0x196   : > { %4109 = vtanh.f32 %v771_v8  ;;  %1737 = vperm.xlu1 %3882, %v1683_v26  }
 0x197   : > { %4111 = vtanh.f32 %v770_v62 }
 0x198   : > { %4113 = vtanh.f32 %v769_v21  ;;  %v825_v21 = vmul.f32 0.5, %v4086_v4 }
 0x199   : > { %v4092_v23 = vpop.eup %4091  ;;  %1802 = vperm.xlu0 %3881, %v1696_v27  }
 0x19a   : > { %v4094_v22 = vpop.eup %4093  ;;  %v843_v46 = vmul.f32 0.5, %v4092_v23  ;;  %1807 = vperm.xlu1 %3882, %v1697_v14   ;;  %v891_v14 = vmul.f32 %v4767_v31, %v859_v15  ;;  %v1695_v31 = vld [vmem:[%s6197_s5 + $0x88] sm:$0xff] }
 0x19b   : > { %v4096_v5 = vpop.eup %4095  ;;  %v840_v1 = vmul.f32 0.5, %v4094_v22  ;;  %v892_v22 = vmul.f32 %v4788_v44, %v860_v55  ;;  %v857_v44 = vadd.f32 0.5, %v825_v21 }
 0x19c   : > { %v4098_v51 = vpop.eup %4097  ;;  %v841_v53 = vmul.f32 0.5, %v4096_v5  ;;  %v875_v8 = vadd.f32 0.5, %v843_v46  ;;  %v858_v46 = vadd.f32 0.5, %v826_v60 }
 0x19d   : > { %v4100_v54 = vpop.eup %4099  ;;  %v839_v27 = vmul.f32 0.5, %v4098_v51  ;;  %1722 = vperm.xlu0 %3881, %v1680_v3   ;;  %v872_v4 = vadd.f32 0.5, %v840_v1  ;;  %v889_v15 = vmul.f32 %v857_v44, %v4778_v38  ;;  %v2429_v38 = vld [vmem:[%s6199_s7 + $0xf0] sm:$0xff]  ;;  %v2427_v44 = vld [vmem:[%s6199_s7 + $0xe0] sm:$0xff] }
 0x19e   : > { %v844_v11 = vmul.f32 0.5, %v4100_v54  ;;  %v873_v23 = vadd.f32 0.5, %v841_v53  ;;  %v1681_v54 = vld [vmem:[%s6197_s5 + $0x18] sm:$0xff]  ;;  %v907_v51 = vmul.f32 %v4900_v17, %v875_v8  ;;  %v890_v1 = vmul.f32 %v858_v46, %v4792_v49 }
 0x19f   : > { %v4102_v61 = vpop.eup %4101  ;;  %v871_v3 = vadd.f32 0.5, %v839_v27  ;;  %1727 = vperm.xlu1 %3882, %v1681_v54   ;;  %v948_v17 = vpack.c.bf16 %v892_v22, %v891_v14  ;;  %v1679_v27 = vld [vmem:[%s6197_s5 + $0x8] sm:$0xff] }
 0x1a0   : > { %v4104_v62 = vpop.eup %4103  ;;  %v842_v26 = vmul.f32 0.5, %v4102_v61  ;;  %v876_v24 = vadd.f32 0.5, %v844_v11  ;;  %v905_v55 = vmul.f32 %v873_v23, %v4916_v28  ;;  %v1678_v28 = vld [vmem:[%s6197_s5] sm:$0xff] }
 0x1a1   : > { %v4106_v16 = vpop.eup %4105  ;;  %v838_v53 = vmul.f32 0.5, %v4104_v62  ;;  %1792 = vperm.xlu0 %3881, %v1694_v50   ;;  %v903_v21 = vmul.f32 %v4876_v43, %v871_v3  ;;  %v2403_v3 = vld [vmem:[%s6199_s7 + $0x20] sm:$0xff] }
 0x1a2   : > { %v874_v5 = vadd.f32 0.5, %v842_v26  ;;  %v908_v61 = vmul.f32 %v4928_v47, %v876_v24  ;;  %v4108_v11 = vpop.eup %4107  ;;  %v837_v26 = vmul.f32 0.5, %v4106_v16  ;;  %v904_v47 = vmul.f32 %v4889_v63, %v872_v4 }
 0x1a3   : > { %v4110_v48 = vpop.eup %4109  ;;  %v836_v8 = vmul.f32 0.5, %v4108_v11  ;;  %v870_v24 = vadd.f32 0.5, %v838_v53  ;;  %1797 = vperm.xlu1 %3882, %v1695_v31   ;;  %v3921_v31 = vld [vmem:[%s6194_s2 + $0x40] ss:$8 sps:$4 sm:$0xff]  }
 0x1a4   : > { %v906_v60 = vmul.f32 %v874_v5, %v4934_v2  ;;  %v956_v45 = vpack.c.bf16 %v908_v61, %v907_v51  ;;  %v4112_v2 = vpop.eup %4111  ;;  %v835_v49 = vmul.f32 0.5, %v4110_v48  ;;  %v869_v23 = vadd.f32 0.5, %v837_v26  ;;  %v2413_v51 = vld [vmem:[%s6199_s7 + $0x70] sm:$0xff]  ;;  %v2404_v26 = vld [vmem:[%s6199_s7 + $0x28] sm:$0xff] }
 0x1a5   : > { %v4114_v63 = vpop.eup %4113  ;;  %1712 = vperm.xlu0 %3881, %v1678_v28   ;;  %v868_v16 = vadd.f32 0.5, %v836_v8  ;;  %v834_v22 = vmul.f32 0.5, %v4112_v2  ;;  %v954_v46 = vpack.c.bf16 %v904_v47, %v903_v21  ;;  %v902_v5 = vmul.f32 %v870_v24, %v4892_v9  ;;  %v2430_v9 = vld [vmem:[%s6199_s7 + $0xf8] sm:$0xff]  ;;  %v2401_v47 = vld [vmem:[%s6199_s7 + $0x10] sm:$0xff]  ;;  %v2415_v28 = vld [vmem:[%s6199_s7 + $0x80] sm:$0xff] }
 0x1a6   : > { %v955_v62 = vpack.c.bf16 %v906_v60, %v905_v55  ;;  %3414 = vmatprep.subr.bf16.mxu1 %v956_v45  ;;  %v947_v45 = vpack.c.bf16 %v890_v1, %v889_v15  ;;  %v867_v43 = vadd.f32 0.5, %v835_v49  ;;  %v833_v48 = vmul.f32 0.5, %v4114_v63  ;;  %v3916_v55 = vld [vmem:[%s6194_s2 + $0x34] ss:$8 sps:$4 sm:$0xff]   ;;  %v2420_v60 = vld [vmem:[%s6199_s7 + $0xa8] sm:$0xff]  ;;  %v2399_v49 = vld [vmem:[%s6199_s7] sm:$0xff] }
 0x1a7   : > { %3415 = vmatpush3.bf16.msra.mxu1 %v948_v17  ;;  %v901_v54 = vmul.f32 %v869_v23, %v4885_v52  ;;  %1717 = vperm.xlu1 %3882, %v1679_v27   ;;  %v900_v50 = vmul.f32 %v4864_v42, %v868_v16  ;;  %v866_v4 = vadd.f32 0.5, %v834_v22  ;;  %v2414_v42 = vld [vmem:[%s6199_s7 + $0x78] sm:$0xff]  ;;  %v3919_v17 = vld [vmem:[%s6194_s2 + $0x44] ss:$8 sps:$4 sm:$0xff]   ;;  %v3089_v63 = vld [vmem:[#allocation2] sm:$0x1] }
 0x1a8   : > { %3416 = vmatprep.subr.bf16.mxu1 %v955_v62  ;;  %v899_v52 = vmul.f32 %v4840_v25, %v867_v43  ;;  %v865_v61 = vadd.f32 0.5, %v833_v48  ;;  %v3918_v1 = vld [vmem:[%s6194_s2 + $0x30] ss:$8 sps:$4 sm:$0xff]   ;;  %v3922_v2 = vld [vmem:[%s6194_s2 + $0x54] ss:$8 sps:$4 sm:$0xff]   ;;  %v2416_v15 = vld [vmem:[%s6199_s7 + $0x88] sm:$0xff] }
 0x1a9   : > { %2583 = vperm.xlu0 %3881, %v2429_v38   ;;  %v953_v53 = vpack.c.bf16 %v902_v5, %v901_v54  ;;  %v898_v14 = vmul.f32 %v866_v4, %v4868_v18  ;;  %v3913_v18 = vld [vmem:[%s6194_s2 + $0x24] ss:$8 sps:$4 sm:$0xff]   ;;  %v2417_v62 = vld [vmem:[%s6199_s7 + $0x90] sm:$0xff]  ;;  %v2418_v8 = vld [vmem:[%s6199_s7 + $0x98] sm:$0xff] }
 0x1aa   : > { %v952_v11 = vpack.c.bf16 %v900_v50, %v899_v52  ;;  %v897_v25 = vmul.f32 %v865_v61, %v4854_v34  ;;  %v2412_v34 = vld [vmem:[%s6199_s7 + $0x68] sm:$0xff]  ;;  %v2402_v24 = vld [vmem:[%s6199_s7 + $0x18] sm:$0xff] }
 0x1ab   : > { %3417 = vmatpush3.bf16.msra.mxu1 %v947_v45  ;;  %2588 = vperm.xlu1 %3882, %v2430_v9   ;;  %v2400_v21 = vld [vmem:[%s6199_s7 + $0x8] sm:$0xff]  ;;  %v3924_v23 = vld [vmem:[%s6194_s2 + $0x50] ss:$8 sps:$4 sm:$0xff]   ;;  %v3928_v16 = vld [vmem:[%s6194_s2 + $0x74] ss:$8 sps:$4 sm:$0xff]  }
 0x1ac   : > { %3418 = vmatprep.subr.bf16.mxu1 %v954_v46  ;;  %v951_v29 = vpack.c.bf16 %v898_v14, %v897_v25  ;;  %v3925_v45 = vld [vmem:[%s6194_s2 + $0x64] ss:$8 sps:$4 sm:$0xff]   ;;  %v3927_v27 = vld [vmem:[%s6194_s2 + $0x60] ss:$8 sps:$4 sm:$0xff]   ;;  %v3930_v22 = vld [vmem:[%s6194_s2 + $0x70] ss:$8 sps:$4 sm:$0xff]  }
 0x1ad   : > { %2503 = vperm.xlu0 %3881, %v2413_v51   ;;  %v3931_v46 = vld [vmem:[%s6194_s2 + $0x84] ss:$8 sps:$4 sm:$0xff]   ;;  %v3933_v5 = vld [vmem:[%s6194_s2 + $0x80] ss:$8 sps:$4 sm:$0xff]   ;;  %v3934_v38 = vld [vmem:[%s6194_s2 + $0x94] ss:$8 sps:$4 sm:$0xff]  }
 0x1ae   : > { %v3936_v43 = vld [vmem:[%s6194_s2 + $0x90] ss:$8 sps:$4 sm:$0xff]   ;;  %v3937_v48 = vld [vmem:[%s6194_s2 + $0xa4] ss:$8 sps:$4 sm:$0xff]   ;;  %v3939_v54 = vld [vmem:[%s6194_s2 + $0xa0] ss:$8 sps:$4 sm:$0xff]  }
 0x1af   : > { %3419 = vmatpush3.bf16.msra.mxu1 %v946_v37  ;;  %2508 = vperm.xlu1 %3882, %v2414_v42   ;;  %v2411_v37 = vld [vmem:[%s6199_s7 + $0x60] sm:$0xff]  ;;  %v3940_v50 = vld [vmem:[%s6194_s2 + $0xb4] ss:$8 sps:$4 sm:$0xff]   ;;  %v3942_v4 = vld [vmem:[%s6194_s2 + $0xb0] ss:$8 sps:$4 sm:$0xff]   ;;  %v5207_v42 = vpop.permute.xlu0 %1141 }
 0x1b0   : > { %3420 = vmatprep.subr.bf16.mxu1 %v953_v53  ;;  %v3943_v53 = vld [vmem:[%s6194_s2 + $0xc4] ss:$8 sps:$4 sm:$0xff]   ;;  %v3945_v9 = vld [vmem:[%s6194_s2 + $0xc0] ss:$8 sps:$4 sm:$0xff]   ;;  %v3946_v51 = vld [vmem:[%s6194_s2 + $0xd4] ss:$8 sps:$4 sm:$0xff]  }
 0x1b1   : > { %2573 = vperm.xlu0 %3881, %v2427_v44   ;;  %v3948_v52 = vld [vmem:[%s6194_s2 + $0xd0] ss:$8 sps:$4 sm:$0xff]   ;;  %v3949_v61 = vld [vmem:[%s6194_s2 + $0xe4] ss:$8 sps:$4 sm:$0xff]   ;;  %v3952_v14 = vld [vmem:[%s6194_s2 + $0xf4] ss:$8 sps:$4 sm:$0xff]   ;;  %v5215_v44 = vpop.permute.xlu1 %1061 }
 0x1b3   : > { %3421 = vmatpush3.bf16.msra.mxu1 %v945_v7  ;;  %2578 = vperm.xlu1 %3882, %v2428_v33   ;;  %v2421_v7 = vld [vmem:[%s6199_s7 + $0xb0] sm:$0xff]  ;;  %v5217_v25 = vpop.permute.xlu0 %1146 }
 0x1b4   : > { %3422 = vmatprep.subr.bf16.mxu1 %v952_v11  ;;  %v3951_v11 = vld [vmem:[%s6194_s2 + $0xe0] ss:$8 sps:$4 sm:$0xff]   ;;  %v3954_v33 = vld [vmem:[%s6194_s2 + $0xf0] ss:$8 sps:$4 sm:$0xff]  }
 0x1b5   : > { %2493 = vperm.xlu0 %3881, %v2411_v37  }
 0x1b7   : > { %3423 = vmatpush3.bf16.msra.mxu1 %v944_v0  ;;  %2498 = vperm.xlu1 %3882, %v2412_v34   ;;  %v2410_v0 = vld [vmem:[%s6199_s7 + $0x58] sm:$0xff]  ;;  %v5224_v37 = vpop.permute.xlu0 %1131 }
 0x1b8   : > { %3424 = vmatprep.subr.bf16.mxu1 %v951_v29  ;;  %v5219_v29 = vpop.permute.xlu1 %1066 }
 0x1b9   : > { %2563 = vperm.xlu0 %3881, %v2425_v35  }
 0x1bb   : > { %3425 = vmatpush3.bf16.msra.mxu1 %v943_v12  ;;  %2568 = vperm.xlu1 %3882, %v2426_v57   ;;  %v2423_v12 = vld [vmem:[%s6199_s7 + $0xc0] sm:$0xff]  ;;  %v5228_v35 = vpop.permute.xlu0 %1051 }
 0x1bc   : > { %3426 = vmatprep.subr.bf16.mxu1 %v950_v10  ;;  %v3915_v10 = vld [vmem:[%s6194_s2 + $0x20] ss:$8 sps:$4 sm:$0xff]   ;;  %v5226_v34 = vpop.permute.xlu1 %1136 }
 0x1bd   : > { %2483 = vperm.xlu0 %3881, %v2409_v59  }
 0x1bf   : > { %3427 = vmatpush3.bf16.msra.mxu1 %v942_v40  ;;  %2488 = vperm.xlu1 %3882, %v2410_v0   ;;  %v2424_v40 = vld [vmem:[%s6199_s7 + $0xc8] sm:$0xff]  ;;  %v5232_v59 = vpop.permute.xlu0 %1121 }
 0x1c0   : > { %3428 = vmatprep.subr.bf16.mxu1 %v6231_v58  ;;  %v5230_v57 = vpop.permute.xlu1 %1056 }
 0x1c1   : > { %2553 = vperm.xlu0 %3881, %v2423_v12  }
 0x1c3   : > { %3429 = vmatpush3.bf16.msra.mxu1 %v6232_v30  ;;  %2558 = vperm.xlu1 %3882, %v2424_v40   ;;  %v5236_v0 = vpop.permute.xlu0 %1041 }
 0x1c4   : > { %v5234_v58 = vpop.permute.xlu1 %1126 }
 0x1c5   : > { %2473 = vperm.xlu0 %3881, %v2407_v36  }
 0x1c6   : > { %1342 = vmatmul.mubr.bf16.vlgmr.msra.gmra.mxu1 %v3907_v6 }
 0x1c7   : > { %1349 = vmatprep.mubr.bf16.mxu1 %v3910_v32  ;;  %2478 = vperm.xlu1 %3882, %v2408_v39   ;;  %v5240_v12 = vpop.permute.xlu0 %1111 }
 0x1c8   : > { %v5238_v6 = vpop.permute.xlu1 %1046 }
 0x1c9   : > { %2543 = vperm.xlu0 %3881, %v2421_v7  }
 0x1cb   : > { %2548 = vperm.xlu1 %3882, %v2422_v19   ;;  %v5244_v32 = vpop.permute.xlu0 %1031 }
 0x1cc   : > { %v5242_v30 = vpop.permute.xlu1 %1116 }
 0x1cd   : > { %2463 = vperm.xlu0 %3881, %v2405_v20  }
 0x1ce   : > { %1350 = vmatmul.mubr.bf16.gmra.mxu1 %v3912_v41 }
 0x1cf   : > { %1357 = vmatprep.mubr.bf16.mxu1 %v3913_v18  ;;  %2468 = vperm.xlu1 %3882, %v2406_v56   ;;  %v5248_v36 = vpop.permute.xlu0 %1101 }
 0x1d0   : > { %v5246_v40 = vpop.permute.xlu1 %1036 }
 0x1d1   : > { %2533 = vperm.xlu0 %3881, %v2419_v13  }
 0x1d3   : > { %2538 = vperm.xlu1 %3882, %v2420_v60   ;;  %v1022_v41 = vpop.permute.xlu0 %1021 }
 0x1d4   : > { %v5250_v39 = vpop.permute.xlu1 %1106 }
 0x1d5   : > { %2453 = vperm.xlu0 %3881, %v2403_v3  }
 0x1d6   : > { %1358 = vmatmul.mubr.bf16.gmra.mxu1 %v3915_v10 }
 0x1d7   : > { %1365 = vmatprep.mubr.bf16.mxu1 %v3916_v55  ;;  %2458 = vperm.xlu1 %3882, %v2404_v26   ;;  %v5254_v18 = vpop.permute.xlu0 %1091 }
 0x1d8   : > { %v5252_v7 = vpop.permute.xlu1 %1026 }
 0x1d9   : > { %2523 = vperm.xlu0 %3881, %v2417_v62  }
 0x1db   : > { %2528 = vperm.xlu1 %3882, %v2418_v8   ;;  %v1012_v20 = vpop.permute.xlu0 %1011 }
 0x1dc   : > { %v5256_v19 = vpop.permute.xlu1 %1096 }
 0x1dd   : > { %2443 = vperm.xlu0 %3881, %v2401_v47  }
 0x1de   : > { %1366 = vmatmul.mubr.bf16.gmra.mxu1 %v3918_v1 }
 0x1df   : > { %1373 = vmatprep.mubr.bf16.mxu1 %v3919_v17  ;;  %2448 = vperm.xlu1 %3882, %v2402_v24   ;;  %v5258_v10 = vpop.permute.xlu0 %1081 }
 0x1e0   : > { %v1017_v56 = vpop.permute.xlu1 %1016 }
 0x1e1   : > { %2513 = vperm.xlu0 %3881, %v2415_v28  }
 0x1e3   : > { %2518 = vperm.xlu1 %3882, %v2416_v15   ;;  %v1002_v55 = vpop.permute.xlu0 %1001 }
 0x1e4   : > { %v5260_v13 = vpop.permute.xlu1 %1086 }
 0x1e5   : > { %2433 = vperm.xlu0 %3881, %v2399_v49  }
 0x1e6   : > { %1374 = vmatmul.mubr.bf16.gmra.mxu1 %v3921_v31 }
 0x1e7   : > { %1381 = vmatprep.mubr.bf16.mxu1 %v3922_v2  ;;  %2438 = vperm.xlu1 %3882, %v2400_v21   ;;  %v5262_v3 = vpop.permute.xlu0 %1071 }
 0x1e8   : > { %v1007_v60 = vpop.permute.xlu1 %1006 }
 0x1e9   : > { %3092 = vperm.xlu0 %3881, %v3089_v63  }
 0x1eb   : > { %v992_v8 = vpop.permute.xlu0 %991 }
 0x1ec   : > { %v5264_v1 = vpop.permute.xlu1 %1076 }
 0x1ee   : > { %1382 = vmatmul.mubr.bf16.gmra.mxu1 %v3924_v23 }
 0x1ef   : > { %1389 = vmatprep.mubr.bf16.mxu1 %v3925_v45 }
 0x1f0   : > { %v997_v15 = vpop.permute.xlu1 %996 }
 0x1f6   : > { %1390 = vmatmul.mubr.bf16.gmra.mxu1 %v3927_v27 }
 0x1f7   : > { %1397 = vmatprep.mubr.bf16.mxu1 %v3928_v16 }
 0x1fe   : > { %1398 = vmatmul.mubr.bf16.gmra.mxu1 %v3930_v22 }
 0x1ff   : > { %1405 = vmatprep.mubr.bf16.mxu1 %v3931_v46 }
 0x206   : > { %1406 = vmatmul.mubr.bf16.gmra.mxu1 %v3933_v5 }
 0x207   : > { %1413 = vmatprep.mubr.bf16.mxu1 %v3934_v38 }
 0x20e   : > { %1414 = vmatmul.mubr.bf16.gmra.mxu1 %v3936_v43 }
 0x20f   : > { %1421 = vmatprep.mubr.bf16.mxu1 %v3937_v48 }
 0x216   : > { %1422 = vmatmul.mubr.bf16.gmra.mxu1 %v3939_v54 }
 0x217   : > { %1429 = vmatprep.mubr.bf16.mxu1 %v3940_v50 }
 0x21e   : > { %1430 = vmatmul.mubr.bf16.gmra.mxu1 %v3942_v4 }
 0x21f   : > { %1437 = vmatprep.mubr.bf16.mxu1 %v3943_v53 }
 0x226   : > { %1438 = vmatmul.mubr.bf16.gmra.mxu1 %v3945_v9 }
 0x227   : > { %1445 = vmatprep.mubr.bf16.mxu1 %v3946_v51 }
 0x22e   : > { %1446 = vmatmul.mubr.bf16.gmra.mxu1 %v3948_v52 }
 0x22f   : > { %1453 = vmatprep.mubr.bf16.mxu1 %v3949_v61 }
 0x236   : > { %1454 = vmatmul.mubr.bf16.gmra.mxu1 %v3951_v11 }
 0x237   : > { %1461 = vmatprep.mubr.bf16.mxu1 %v3952_v14 }
 0x23e   : > { %1462 = vmatmul.mubr.bf16.gmra.mxu1 %v3954_v33 }
 0x286   : > { %v3430_v26 = vpop.f32.mrf.mxu1 }
 0x288   : > { %v3431_v62 = vpop.f32.mrf.mxu1 }
 0x289   : > { %v3432_v17 = vadd.f32 %v3431_v62, %v3430_v26 }
 0x28a   : > { %v3433_v47 = vpop.f32.mrf.mxu1 }
 0x28b   : > { %v1344_v24 = vadd.f32 %v3432_v17, %v992_v8 }
 0x28c   : > { %v3434_v31 = vpop.f32.mrf.mxu1 }
 0x28d   : > { %v1470_v28 = vmul.f32 0.5, %v1344_v24  ;;  %v3435_v2 = vadd.f32 %v3434_v31, %v3433_v47 }
 0x28e   : > { %v3436_v49 = vpop.f32.mrf.mxu1 }
 0x28f   : > { %4115 = vtanh.f32 %v1470_v28  ;;  %v1347_v21 = vadd.f32 %v3435_v2, %v997_v15 }
 0x290   : > { %v3437_v23 = vpop.f32.mrf.mxu1 }
 0x291   : > { %v1471_v63 = vmul.f32 0.5, %v1347_v21  ;;  %v3438_v45 = vadd.f32 %v3437_v23, %v3436_v49 }
 0x292   : > { %v3439_v27 = vpop.f32.mrf.mxu1 }
 0x293   : > { %4117 = vtanh.f32 %v1471_v63  ;;  %v1352_v16 = vadd.f32 %v3438_v45, %v1002_v55 }
 0x294   : > { %v3440_v22 = vpop.f32.mrf.mxu1 }
 0x295   : > { %v1472_v46 = vmul.f32 0.5, %v1352_v16  ;;  %v3441_v5 = vadd.f32 %v3440_v22, %v3439_v27 }
 0x296   : > { %v3442_v38 = vpop.f32.mrf.mxu1 }
 0x297   : > { %4119 = vtanh.f32 %v1472_v46  ;;  %v1355_v43 = vadd.f32 %v3441_v5, %v1007_v60 }
 0x298   : > { %v3443_v48 = vpop.f32.mrf.mxu1 }
 0x299   : > { %v1473_v54 = vmul.f32 0.5, %v1355_v43  ;;  %v3444_v50 = vadd.f32 %v3443_v48, %v3442_v38 }
 0x29a   : > { %v3445_v4 = vpop.f32.mrf.mxu1 }
 0x29b   : > { %4121 = vtanh.f32 %v1473_v54  ;;  %v1360_v53 = vadd.f32 %v3444_v50, %v1012_v20 }
 0x29c   : > { %v4116_v9 = vpop.eup %4115  ;;  %v3446_v51 = vpop.f32.mrf.mxu1 }
 0x29d   : > { %v1534_v52 = vmul.f32 0.5, %v4116_v9  ;;  %v1474_v61 = vmul.f32 0.5, %v1360_v53  ;;  %v3447_v11 = vadd.f32 %v3446_v51, %v3445_v4 }
 0x29e   : > { %v3448_v14 = vpop.f32.mrf.mxu1 }
 0x29f   : > { %4123 = vtanh.f32 %v1474_v61  ;;  %v1363_v33 = vadd.f32 %v3447_v11, %v1017_v56  ;;  %v1566_v26 = vadd.f32 0.5, %v1534_v52 }
 0x2a0   : > { %v4118_v55 = vpop.eup %4117  ;;  %v3449_v62 = vpop.f32.mrf.mxu1 }
 0x2a1   : > { %v1535_v17 = vmul.f32 0.5, %v4118_v55  ;;  %v1475_v8 = vmul.f32 0.5, %v1363_v33  ;;  %v3450_v60 = vadd.f32 %v3449_v62, %v3448_v14  ;;  %v5268_v2 = vmul.f32 %v1566_v26, %v1344_v24 }
 0x2a2   : > { %v3451_v47 = vpop.f32.mrf.mxu1 }
 0x2a3   : > { %v1567_v31 = vadd.f32 0.5, %v1535_v17  ;;  %4125 = vtanh.f32 %v1475_v8  ;;  %v5266_v28 = vadd.f32 %v3450_v60, %v1022_v41 }
 0x2a4   : > { %v4120_v20 = vpop.eup %4119  ;;  %v3452_v15 = vpop.f32.mrf.mxu1 }
 0x2a5   : > { %v5270_v49 = vmul.f32 %v1567_v31, %v1347_v21  ;;  %v1536_v23 = vmul.f32 0.5, %v4120_v20  ;;  %v1476_v56 = vmul.f32 0.5, %v5266_v28  ;;  %v3453_v63 = vadd.f32 %v3452_v15, %v3451_v47 }
 0x2a6   : > { %v3454_v45 = vpop.f32.mrf.mxu1 }
 0x2a7   : > { %4127 = vtanh.f32 %v1476_v56  ;;  %v1371_v27 = vadd.f32 %v3453_v63, %v5252_v7  ;;  %v1568_v41 = vadd.f32 0.5, %v1536_v23 }
 0x2a8   : > { %v4122_v46 = vpop.eup %4121  ;;  %v3455_v5 = vpop.f32.mrf.mxu1 }
 0x2a9   : > { %v1537_v38 = vmul.f32 0.5, %v4122_v46  ;;  %v1477_v24 = vmul.f32 0.5, %v1371_v27  ;;  %v3456_v48 = vadd.f32 %v3455_v5, %v3454_v45  ;;  %v5279_v9 = vmul.f32 %v1568_v41, %v1352_v16 }
 0x2aa   : > { %v3457_v54 = vpop.f32.mrf.mxu1 }
 0x2ab   : > { %v1569_v21 = vadd.f32 0.5, %v1537_v38  ;;  %4129 = vtanh.f32 %v1477_v24  ;;  %v5277_v50 = vadd.f32 %v3456_v48, %v5244_v32 }
 0x2ac   : > { %v4124_v4 = vpop.eup %4123  ;;  %v3458_v51 = vpop.f32.mrf.mxu1 }
 0x2ad   : > { %v5281_v7 = vmul.f32 %v1569_v21, %v1355_v43  ;;  %v1538_v52 = vmul.f32 0.5, %v4124_v4  ;;  %v1478_v61 = vmul.f32 0.5, %v5277_v50  ;;  %v3459_v11 = vadd.f32 %v3458_v51, %v3457_v54 }
 0x2ae   : > { %v3460_v14 = vpop.f32.mrf.mxu1 }
 0x2af   : > { %4131 = vtanh.f32 %v1478_v61  ;;  %v1379_v55 = vadd.f32 %v3459_v11, %v5246_v40  ;;  %v1570_v32 = vadd.f32 0.5, %v1538_v52 }
 0x2b0   : > { %v4126_v62 = vpop.eup %4125  ;;  %v3461_v17 = vpop.f32.mrf.mxu1 }
 0x2b1   : > { %v1539_v8 = vmul.f32 0.5, %v4126_v62  ;;  %v1479_v16 = vmul.f32 0.5, %v1379_v55  ;;  %v3462_v60 = vadd.f32 %v3461_v17, %v3460_v14  ;;  %v5290_v15 = vmul.f32 %v1570_v32, %v1360_v53  ;;  %v3957_v17 = vld [vmem:[%s6196_s4 + $0x4] ss:$8 sps:$4 sm:$0xff]  }
 0x2b2   : > { %v3463_v47 = vpop.f32.mrf.mxu1  ;;  %2062 = vmatprep.mubr.bf16.mxu0 %v3957_v17 }
 0x2b3   : > { %v1571_v43 = vadd.f32 0.5, %v1539_v8  ;;  %4133 = vtanh.f32 %v1479_v16  ;;  %v5288_v31 = vadd.f32 %v3462_v60, %v5236_v0 }
 0x2b4   : > { %v4128_v20 = vpop.eup %4127  ;;  %v3464_v23 = vpop.f32.mrf.mxu1 }
 0x2b5   : > { %v5292_v40 = vmul.f32 %v1571_v43, %v1363_v33  ;;  %v1540_v56 = vmul.f32 0.5, %v4128_v20  ;;  %v1480_v63 = vmul.f32 0.5, %v5288_v31  ;;  %v3465_v45 = vadd.f32 %v3464_v23, %v3463_v47 }
 0x2b6   : > { %v3466_v46 = vpop.f32.mrf.mxu1 }
 0x2b7   : > { %4135 = vtanh.f32 %v1480_v63  ;;  %v1387_v41 = vadd.f32 %v3465_v45, %v5238_v6  ;;  %v1572_v0 = vadd.f32 0.5, %v1540_v56 }
 0x2b8   : > { %v4130_v38 = vpop.eup %4129  ;;  %v3467_v24 = vpop.f32.mrf.mxu1 }
 0x2b9   : > { %v1541_v48 = vmul.f32 0.5, %v4130_v38  ;;  %v1481_v53 = vmul.f32 0.5, %v1387_v41  ;;  %v3468_v54 = vadd.f32 %v3467_v24, %v3466_v46  ;;  %v5302_v52 = vmul.f32 %v1572_v0, %v5266_v28 }
 0x2ba   : > { %v3469_v21 = vpop.f32.mrf.mxu1 }
 0x2bb   : > { %v1573_v33 = vadd.f32 0.5, %v1541_v48  ;;  %4137 = vtanh.f32 %v1481_v53  ;;  %v5299_v4 = vadd.f32 %v3468_v54, %v5228_v35 }
 0x2bc   : > { %v4132_v51 = vpop.eup %4131  ;;  %v3470_v6 = vpop.f32.mrf.mxu1 }
 0x2bd   : > { %v5304_v61 = vmul.f32 %v1573_v33, %v1371_v27  ;;  %v1542_v11 = vmul.f32 0.5, %v4132_v51  ;;  %v1482_v14 = vmul.f32 0.5, %v5299_v4  ;;  %v3471_v62 = vadd.f32 %v3470_v6, %v3469_v21 }
 0x2be   : > { %v3472_v32 = vpop.f32.mrf.mxu1 }
 0x2bf   : > { %4139 = vtanh.f32 %v1482_v14  ;;  %v1395_v35 = vadd.f32 %v3471_v62, %v5230_v57  ;;  %v1574_v16 = vadd.f32 0.5, %v1542_v11 }
 0x2c0   : > { %v4134_v28 = vpop.eup %4133  ;;  %v3473_v60 = vpop.f32.mrf.mxu1 }
 0x2c1   : > { %v1543_v27 = vmul.f32 0.5, %v4134_v28  ;;  %v1483_v47 = vmul.f32 0.5, %v1395_v35  ;;  %v3474_v43 = vadd.f32 %v3473_v60, %v3472_v32  ;;  %v5317_v45 = vmul.f32 %v1574_v16, %v5277_v50 }
 0x2c2   : > { %v3475_v20 = vpop.f32.mrf.mxu1 }
 0x2c3   : > { %v1575_v23 = vadd.f32 0.5, %v1543_v27  ;;  %4141 = vtanh.f32 %v1483_v47  ;;  %v5314_v56 = vadd.f32 %v3474_v43, %v5215_v44 }
 0x2c4   : > { %v4136_v63 = vpop.eup %4135  ;;  %v3476_v57 = vpop.f32.mrf.mxu1 }
 0x2c5   : > { %v5319_v46 = vmul.f32 %v1575_v23, %v1379_v55  ;;  %v1544_v38 = vmul.f32 0.5, %v4136_v63  ;;  %v1484_v0 = vmul.f32 0.5, %v5314_v56  ;;  %v3477_v24 = vadd.f32 %v3476_v57, %v3475_v20 }
 0x2c6   : > { %v3478_v48 = vpop.f32.mrf.mxu1 }
 0x2c7   : > { %4143 = vtanh.f32 %v1484_v0  ;;  %v1403_v54 = vadd.f32 %v3477_v24, %v5219_v29  ;;  %v1576_v21 = vadd.f32 0.5, %v1544_v38 }
 0x2c8   : > { %v4138_v44 = vpop.eup %4137  ;;  %v3479_v33 = vpop.f32.mrf.mxu1 }
 0x2c9   : > { %v1545_v51 = vmul.f32 0.5, %v4138_v44  ;;  %v1485_v50 = vmul.f32 0.5, %v1403_v54  ;;  %v3480_v6 = vadd.f32 %v3479_v33, %v3478_v48  ;;  %v5327_v32 = vmul.f32 %v1576_v21, %v5288_v31 }
 0x2ca   : > { %v3481_v11 = vpop.f32.mrf.mxu1 }
 0x2cb   : > { %v1577_v55 = vadd.f32 0.5, %v1545_v51  ;;  %4145 = vtanh.f32 %v1485_v50  ;;  %v1408_v14 = vadd.f32 %v3480_v6, %v5262_v3 }
 0x2cc   : > { %v4140_v62 = vpop.eup %4139  ;;  %v3482_v17 = vpop.f32.mrf.mxu1 }
 0x2cd   : > { %v5329_v28 = vmul.f32 %v1577_v55, %v1387_v41  ;;  %v1546_v16 = vmul.f32 0.5, %v4140_v62  ;;  %v1486_v29 = vmul.f32 0.5, %v1408_v14  ;;  %v3483_v60 = vadd.f32 %v3482_v17, %v3481_v11 }
 0x2ce   : > { %v3484_v27 = vpop.f32.mrf.mxu1 }
 0x2cf   : > { %4147 = vtanh.f32 %v1486_v29  ;;  %v1411_v43 = vadd.f32 %v3483_v60, %v5264_v1  ;;  %v1578_v23 = vadd.f32 0.5, %v1546_v16 }
 0x2d0   : > { %v4142_v20 = vpop.eup %4141  ;;  %v3485_v3 = vpop.f32.mrf.mxu1 }
 0x2d1   : > { %v1547_v63 = vmul.f32 0.5, %v4142_v20  ;;  %v1487_v57 = vmul.f32 0.5, %v1411_v43  ;;  %v3486_v31 = vadd.f32 %v3485_v3, %v3484_v27  ;;  %v5336_v48 = vmul.f32 %v1578_v23, %v5299_v4 }
 0x2d2   : > { %v3487_v38 = vpop.f32.mrf.mxu1 }
 0x2d3   : > { %v1579_v0 = vadd.f32 0.5, %v1547_v63  ;;  %4149 = vtanh.f32 %v1487_v57  ;;  %v1416_v41 = vadd.f32 %v3486_v31, %v5258_v10 }
 0x2d4   : > { %v4144_v24 = vpop.eup %4143  ;;  %v3488_v44 = vpop.f32.mrf.mxu1 }
 0x2d5   : > { %v5338_v21 = vmul.f32 %v1579_v0, %v1395_v35  ;;  %v1548_v33 = vmul.f32 0.5, %v4144_v24  ;;  %v1488_v1 = vmul.f32 0.5, %v1416_v41  ;;  %v3489_v51 = vadd.f32 %v3488_v44, %v3487_v38 }
 0x2d6   : > { %v5340_v50 = vpop.f32.mrf.mxu1 }
 0x2d7   : > { %4151 = vtanh.f32 %v1488_v1  ;;  %v1419_v11 = vadd.f32 %v3489_v51, %v5260_v13  ;;  %v1580_v62 = vadd.f32 0.5, %v1548_v33 }
 0x2d8   : > { %v4146_v55 = vpop.eup %4145  ;;  %v5345_v10 = vpop.f32.mrf.mxu1 }
 0x2d9   : > { %v1549_v4 = vmul.f32 0.5, %v4146_v55  ;;  %v1489_v17 = vmul.f32 0.5, %v1419_v11  ;;  %v5352_v27 = vmul.f32 %v1580_v62, %v5314_v56 }
 0x2da   : > { %v5347_v16 = vpop.f32.mrf.mxu1 }
 0x2db   : > { %v1581_v35 = vadd.f32 0.5, %v1549_v4  ;;  %4153 = vtanh.f32 %v1489_v17 }
 0x2dc   : > { %v4148_v29 = vpop.eup %4147  ;;  %v5349_v60 = vpop.f32.mrf.mxu1 }
 0x2dd   : > { %v5354_v20 = vmul.f32 %v1581_v35, %v1403_v54  ;;  %v1550_v23 = vmul.f32 0.5, %v4148_v29 }
 0x2de   : > { %v3496_v13 = vpop.f32.mrf.mxu1 }
 0x2df   : > { %v1669_v3 = vpack.c.bf16 %v5354_v20, %v5352_v27  ;;  %v1582_v31 = vadd.f32 0.5, %v1550_v23 }
 0x2e0   : > { %v4150_v63 = vpop.eup %4149  ;;  %v3497_v57 = vpop.f32.mrf.mxu1 }
 0x2e1   : > { %v1551_v38 = vmul.f32 0.5, %v4150_v63  ;;  %v5358_v1 = vmul.f32 %v1582_v31, %v1408_v14 }
 0x2e2   : > { %v3499_v0 = vpop.f32.mrf.mxu1 }
 0x2e3   : > { %v1583_v24 = vadd.f32 0.5, %v1551_v38 }
 0x2e4   : > { %v4152_v44 = vpop.eup %4151  ;;  %v3500_v33 = vpop.f32.mrf.mxu1 }
 0x2e5   : > { %v5360_v51 = vmul.f32 %v1583_v24, %v1411_v43  ;;  %v1552_v56 = vmul.f32 0.5, %v4152_v44 }
 0x2e6   : > { %v3502_v54 = vpop.f32.mrf.mxu1 }
 0x2e7   : > { %v1584_v17 = vadd.f32 0.5, %v1552_v56 }
 0x2e8   : > { %v4154_v62 = vpop.eup %4153  ;;  %v3503_v4 = vpop.f32.mrf.mxu1 }
 0x2e9   : > { %v1553_v35 = vmul.f32 0.5, %v4154_v62  ;;  %v5364_v22 = vmul.f32 %v1584_v17, %v1416_v41 }
 0x2ea   : > { %v3505_v29 = vpop.f32.mrf.mxu1 }
 0x2eb   : > { %v1585_v23 = vadd.f32 0.5, %v1553_v35 }
 0x2ec   : > { %v3506_v63 = vpop.f32.mrf.mxu1 }
 0x2ed   : > { %v5366_v38 = vmul.f32 %v1585_v23, %v1419_v11  ;;  %v3507_v23 = vadd.f32 %v3506_v63, %v3505_v29 }
 0x2ee   : > { %v3508_v14 = vpop.f32.mrf.mxu1 }
 0x2f0   : > { %v3509_v31 = vpop.f32.mrf.mxu1 }
 0x2f1   : > { %v3510_v35 = vadd.f32 %v3509_v31, %v3508_v14  ;;  %v3501_v31 = vadd.f32 %v3500_v33, %v3499_v0 }
 0x2f2   : > { %v3511_v24 = vpop.f32.mrf.mxu1 }
 0x2f3   : > { %v5398_v33 = vadd.f32 %v3501_v31, %v5250_v39 }
 0x2f4   : > { %v3512_v44 = vpop.f32.mrf.mxu1 }
 0x2f5   : > { %v3513_v62 = vadd.f32 %v3512_v44, %v3511_v24 }
 0x2f6   : > { %v3514_v26 = vpop.f32.mrf.mxu1 }
 0x2f7   : > { %v5377_v47 = vadd.f32 %v3513_v62, %v5234_v58 }
 0x2f8   : > { %v3515_v55 = vpop.f32.mrf.mxu1 }
 0x2f9   : > { %v3516_v5 = vadd.f32 %v3515_v55, %v3514_v26  ;;  %v5381_v55 = vadd.f32 %v3510_v35, %v5232_v59  ;;  %v1497_v58 = vmul.f32 0.5, %v5377_v47  ;;  %v3498_v59 = vadd.f32 %v3497_v57, %v3496_v13 }
 0x2fa   : > { %v3517_v8 = vpop.f32.mrf.mxu1  ;;  %v3492_v13 = vadd.f32 %v5345_v10, %v5340_v50 }
 0x2fb   : > { %v5371_v41 = vadd.f32 %v3516_v5, %v5224_v37  ;;  %v3504_v37 = vadd.f32 %v3503_v4, %v3502_v54 }
 0x2fc   : > { %v3518_v56 = vpop.f32.mrf.mxu1  ;;  %v5411_v39 = vadd.f32 %v3492_v13, %v5254_v18 }
 0x2fd   : > { %v3519_v53 = vadd.f32 %v3518_v56, %v3517_v8  ;;  %v1498_v8 = vmul.f32 0.5, %v5371_v41  ;;  %v5391_v24 = vadd.f32 %v3504_v37, %v5240_v12  ;;  %v5403_v12 = vadd.f32 %v3498_v59, %v5248_v36 }
 0x2fe   : > { %v3520_v11 = vpop.f32.mrf.mxu1  ;;  %v1490_v54 = vmul.f32 0.5, %v5411_v39 }
 0x2ff   : > { %v5374_v17 = vadd.f32 %v3519_v53, %v5226_v34  ;;  %v5386_v34 = vadd.f32 %v3507_v23, %v5242_v30  ;;  %v3495_v30 = vadd.f32 %v5349_v60, %v5347_v16  ;;  %v1494_v57 = vmul.f32 0.5, %v5391_v24 }
 0x300   : > { %v3521_v43 = vpop.f32.mrf.mxu1  ;;  %v1493_v16 = vmul.f32 0.5, %v5398_v33  ;;  %v1492_v60 = vmul.f32 0.5, %v5403_v12 }
 0x301   : > { %v1499_v6 = vmul.f32 0.5, %v5374_v17  ;;  %v3522_v26 = vadd.f32 %v3521_v43, %v3520_v11  ;;  %v1496_v43 = vmul.f32 0.5, %v5381_v55  ;;  %v1495_v0 = vmul.f32 0.5, %v5386_v34 }
 0x302   : > { %v3523_v14 = vpop.f32.mrf.mxu1 }
 0x303   : > { %v1464_v5 = vadd.f32 %v3522_v26, %v5207_v42  ;;  %4155 = vtanh.f32 %v1499_v6 }
 0x304   : > { %v3524_v53 = vpop.f32.mrf.mxu1  ;;  %4157 = vtanh.f32 %v1498_v8 }
 0x305   : > { %v1500_v29 = vmul.f32 0.5, %v1464_v5  ;;  %v3525_v63 = vadd.f32 %v3524_v53, %v3523_v14 }
 0x307   : > { %4159 = vtanh.f32 %v1500_v29  ;;  %v1467_v42 = vadd.f32 %v3525_v63, %v5217_v25  ;;  %v5407_v25 = vadd.f32 %v3495_v30, %v5256_v19 }
 0x308   : > { %4161 = vtanh.f32 %v1497_v58 }
 0x309   : > { %v1501_v6 = vmul.f32 0.5, %v1467_v42  ;;  %4163 = vtanh.f32 %v1496_v43  ;;  %v1491_v50 = vmul.f32 0.5, %v5407_v25 }
 0x30b   : > { %4165 = vtanh.f32 %v1501_v6 }
 0x30c   : > { %4167 = vtanh.f32 %v1495_v0 }
 0x30d   : > { %4169 = vtanh.f32 %v1494_v57 }
 0x30e   : > { %4171 = vtanh.f32 %v1493_v16 }
 0x30f   : > { %4173 = vtanh.f32 %v1492_v60 }
 0x310   : > { %v4156_v36 = vpop.eup %4155  ;;  %4175 = vtanh.f32 %v1491_v50 }
 0x311   : > { %v4158_v10 = vpop.eup %4157  ;;  %v1563_v19 = vmul.f32 0.5, %v4156_v36  ;;  %4177 = vtanh.f32 %v1490_v54 }
 0x312   : > { %v1562_v18 = vmul.f32 0.5, %v4158_v10 }
 0x313   : > { %v1595_v26 = vadd.f32 0.5, %v1563_v19 }
 0x314   : > { %v4160_v4 = vpop.eup %4159  ;;  %v1594_v31 = vadd.f32 0.5, %v1562_v18 }
 0x315   : > { %v1564_v44 = vmul.f32 0.5, %v4160_v4  ;;  %v4162_v56 = vpop.eup %4161  ;;  %v1627_v43 = vmul.f32 %v1595_v26, %v5374_v17  ;;  %v6235_v26 = vpack.c.bf16 %v5319_v46, %v5317_v45  ;;  %v6239_v45 = vpack.c.bf16 %v5281_v7, %v5279_v9  ;;  %v3960_v9 = vld [vmem:[%s6196_s4 + $0x10] ss:$8 sps:$4 sm:$0xff]   ;;  %v3961_v7 = vld [vmem:[%s6196_s4 + $0x24] ss:$8 sps:$4 sm:$0xff]  }
 0x316   : > { %v4164_v62 = vpop.eup %4163  ;;  %v1561_v23 = vmul.f32 0.5, %v4162_v56  ;;  %v1626_v57 = vmul.f32 %v1594_v31, %v5371_v41  ;;  %v6240_v46 = vpack.c.bf16 %v5360_v51, %v5358_v1  ;;  %v3969_v1 = vld [vmem:[%s6196_s4 + $0x40] ss:$8 sps:$4 sm:$0xff]   ;;  %v3970_v51 = vld [vmem:[%s6196_s4 + $0x54] ss:$8 sps:$4 sm:$0xff]  }
 0x317   : > { %v1596_v8 = vadd.f32 0.5, %v1564_v44  ;;  %v1560_v37 = vmul.f32 0.5, %v4164_v62  ;;  %v3981_v31 = vld [vmem:[%s6196_s4 + $0x80] ss:$8 sps:$4 sm:$0xff]  }
 0x318   : > { %v4166_v35 = vpop.eup %4165  ;;  %v1593_v63 = vadd.f32 0.5, %v1561_v23  ;;  %v1676_v54 = vpack.c.bf16 %v1627_v43, %v1626_v57  ;;  %v3988_v43 = vld [vmem:[%s6196_s4 + $0xb4] ss:$8 sps:$4 sm:$0xff]   ;;  %v3997_v57 = vld [vmem:[%s6196_s4 + $0xe4] ss:$8 sps:$4 sm:$0xff]  }
 0x319   : > { %v4168_v11 = vpop.eup %4167  ;;  %v1565_v14 = vmul.f32 0.5, %v4166_v35  ;;  %v1628_v59 = vmul.f32 %v1596_v8, %v1464_v5  ;;  %v1592_v13 = vadd.f32 0.5, %v1560_v37  ;;  %v6236_v8 = vpack.c.bf16 %v5304_v61, %v5302_v52  ;;  %v3955_v52 = vld [vmem:[%s6196_s4] ss:$8 sps:$4 sm:$0xff]   ;;  %v3967_v61 = vld [vmem:[%s6196_s4 + $0x44] ss:$8 sps:$4 sm:$0xff]  }
 0x31a   : > { %v4170_v58 = vpop.eup %4169  ;;  %v1559_v29 = vmul.f32 0.5, %v4168_v11  ;;  %v1625_v10 = vmul.f32 %v1593_v63, %v5377_v47  ;;  %v6233_v47 = vpack.c.bf16 %v5338_v21, %v5336_v48  ;;  %v6234_v11 = vpack.c.bf16 %v5329_v28, %v5327_v32  ;;  %v3979_v37 = vld [vmem:[%s6196_s4 + $0x84] ss:$8 sps:$4 sm:$0xff]   ;;  %v3987_v63 = vld [vmem:[%s6196_s4 + $0xa0] ss:$8 sps:$4 sm:$0xff]  }
 0x31b   : > { %v1597_v53 = vadd.f32 0.5, %v1565_v14  ;;  %v4172_v30 = vpop.eup %4171  ;;  %v1558_v6 = vmul.f32 0.5, %v4170_v58  ;;  %v6237_v32 = vpack.c.bf16 %v5292_v40, %v5290_v15  ;;  %v6238_v28 = vpack.c.bf16 %v5366_v38, %v5364_v22  ;;  %v3958_v22 = vld [vmem:[%s6196_s4 + $0x14] ss:$8 sps:$4 sm:$0xff]   ;;  %v3966_v40 = vld [vmem:[%s6196_s4 + $0x30] ss:$8 sps:$4 sm:$0xff]  }
 0x31c   : > { %v4174_v60 = vpop.eup %4173  ;;  %v1557_v50 = vmul.f32 0.5, %v4172_v30  ;;  %v1591_v36 = vadd.f32 0.5, %v1559_v29  ;;  %v6241_v15 = vpack.c.bf16 %v5270_v49, %v5268_v2  ;;  %v3963_v2 = vld [vmem:[%s6196_s4 + $0x20] ss:$8 sps:$4 sm:$0xff]   ;;  %v3964_v49 = vld [vmem:[%s6196_s4 + $0x34] ss:$8 sps:$4 sm:$0xff]  }
 0x31d   : > { %v1629_v0 = vmul.f32 %v1597_v53, %v1467_v42  ;;  %v4176_v4 = vpop.eup %4175  ;;  %v1556_v17 = vmul.f32 0.5, %v4174_v60  ;;  %v1590_v5 = vadd.f32 0.5, %v1558_v6  ;;  %v1624_v42 = vmul.f32 %v1592_v13, %v5381_v55  ;;  %v3972_v38 = vld [vmem:[%s6196_s4 + $0x50] ss:$8 sps:$4 sm:$0xff]   ;;  %v3982_v53 = vld [vmem:[%s6196_s4 + $0x94] ss:$8 sps:$4 sm:$0xff]  }
 0x31e   : > { %v4178_v19 = vpop.eup %4177  ;;  %v1555_v41 = vmul.f32 0.5, %v4176_v4  ;;  %v1589_v44 = vadd.f32 0.5, %v1557_v50  ;;  %v1623_v56 = vmul.f32 %v1591_v36, %v5386_v34  ;;  %v3978_v14 = vld [vmem:[%s6196_s4 + $0x70] ss:$8 sps:$4 sm:$0xff]   ;;  %v3985_v29 = vld [vmem:[%s6196_s4 + $0xa4] ss:$8 sps:$4 sm:$0xff]   ;;  %v5548_v36 = vpop.permute.xlu1 %1867 }
 0x31f   : > { %v1677_v16 = vpack.c.bf16 %v1629_v0, %v1628_v59  ;;  %v1675_v62 = vpack.c.bf16 %v1625_v10, %v1624_v42  ;;  %v1554_v18 = vmul.f32 0.5, %v4178_v19  ;;  %v1588_v35 = vadd.f32 0.5, %v1556_v17  ;;  %v3984_v58 = vld [vmem:[%s6196_s4 + $0x90] ss:$8 sps:$4 sm:$0xff]   ;;  %v3991_v0 = vld [vmem:[%s6196_s4 + $0xc4] ss:$8 sps:$4 sm:$0xff]  }
 0x320   : > { %v1622_v27 = vmul.f32 %v1590_v5, %v5391_v24  ;;  %v1587_v20 = vadd.f32 0.5, %v1555_v41  ;;  %v3990_v59 = vld [vmem:[%s6196_s4 + $0xb0] ss:$8 sps:$4 sm:$0xff]   ;;  %v3993_v30 = vld [vmem:[%s6196_s4 + $0xc0] ss:$8 sps:$4 sm:$0xff]  }
 0x321   : > { %3526 = vmatprep.subr.bf16.mxu0 %v1677_v16  ;;  %v1586_v23 = vadd.f32 0.5, %v1554_v18  ;;  %v1620_v34 = vmul.f32 %v1588_v35, %v5403_v12  ;;  %v3973_v12 = vld [vmem:[%s6196_s4 + $0x64] ss:$8 sps:$4 sm:$0xff]   ;;  %v3994_v6 = vld [vmem:[%s6196_s4 + $0xd4] ss:$8 sps:$4 sm:$0xff]   ;;  %v5540_v16 = vpop.permute.xlu0 %1862 }
 0x322   : > { %3527 = vmatpush3.bf16.msra.mxu0 %v1669_v3  ;;  %v1621_v3 = vmul.f32 %v1589_v44, %v5398_v33  ;;  %v1674_v55 = vpack.c.bf16 %v1623_v56, %v1622_v27  ;;  %v1619_v48 = vmul.f32 %v1587_v20, %v5407_v25  ;;  %v3975_v25 = vld [vmem:[%s6196_s4 + $0x60] ss:$8 sps:$4 sm:$0xff]   ;;  %v3996_v13 = vld [vmem:[%s6196_s4 + $0xd0] ss:$8 sps:$4 sm:$0xff]   ;;  %v4000_v50 = vld [vmem:[%s6196_s4 + $0xf4] ss:$8 sps:$4 sm:$0xff]  }
 0x323   : > { %3528 = vmatprep.subr.bf16.mxu0 %v1676_v54  ;;  %v1618_v24 = vmul.f32 %v1586_v23, %v5411_v39  ;;  %v3976_v39 = vld [vmem:[%s6196_s4 + $0x74] ss:$8 sps:$4 sm:$0xff]   ;;  %v3999_v60 = vld [vmem:[%s6196_s4 + $0xe0] ss:$8 sps:$4 sm:$0xff]   ;;  %v5552_v54 = vpop.permute.xlu1 %1787  ;;  %v4002_v4 = vld [vmem:[%s6196_s4 + $0xf0] ss:$8 sps:$4 sm:$0xff]  }
 0x324   : > { %v1673_v21 = vpack.c.bf16 %v1621_v3, %v1620_v34 }
 0x325   : > { %v1672_v33 = vpack.c.bf16 %v1619_v48, %v1618_v24  ;;  %v5550_v10 = vpop.permute.xlu0 %1782 }
 0x326   : > { %3529 = vmatpush3.bf16.msra.mxu0 %v6233_v47 }
 0x327   : > { %3530 = vmatprep.subr.bf16.mxu0 %v1675_v62  ;;  %v5559_v5 = vpop.permute.xlu1 %1857 }
 0x329   : > { %v5557_v17 = vpop.permute.xlu0 %1852 }
 0x32a   : > { %3531 = vmatpush3.bf16.msra.mxu0 %v6234_v11 }
 0x32b   : > { %3532 = vmatprep.subr.bf16.mxu0 %v1674_v55  ;;  %v5563_v19 = vpop.permute.xlu1 %1777 }
 0x32d   : > { %v5561_v42 = vpop.permute.xlu0 %1772 }
 0x32e   : > { %3533 = vmatpush3.bf16.msra.mxu0 %v6235_v26 }
 0x32f   : > { %3534 = vmatprep.subr.bf16.mxu0 %v1673_v21  ;;  %v5567_v44 = vpop.permute.xlu1 %1847 }
 0x331   : > { %v5565_v41 = vpop.permute.xlu0 %1842 }
 0x332   : > { %3535 = vmatpush3.bf16.msra.mxu0 %v6236_v8 }
 0x333   : > { %3536 = vmatprep.subr.bf16.mxu0 %v1672_v33  ;;  %v5571_v62 = vpop.permute.xlu1 %1767 }
 0x335   : > { %v5569_v56 = vpop.permute.xlu0 %1762 }
 0x336   : > { %3537 = vmatpush3.bf16.msra.mxu0 %v6237_v32 }
 0x337   : > { %3538 = vmatprep.subr.bf16.mxu0 %v6238_v28  ;;  %v5575_v18 = vpop.permute.xlu1 %1837 }
 0x339   : > { %v5573_v47 = vpop.permute.xlu0 %1832 }
 0x33a   : > { %3539 = vmatpush3.bf16.msra.mxu0 %v6239_v45 }
 0x33b   : > { %3540 = vmatprep.subr.bf16.mxu0 %v6240_v46  ;;  %v5579_v27 = vpop.permute.xlu1 %1757 }
 0x33d   : > { %v5577_v35 = vpop.permute.xlu0 %1752 }
 0x33e   : > { %3541 = vmatpush3.bf16.msra.mxu0 %v6241_v15 }
 0x33f   : > { %v5583_v3 = vpop.permute.xlu1 %1827 }
 0x341   : > { %2063 = vmatmul.mubr.bf16.vlgmr.msra.gmra.mxu0 %v3955_v52  ;;  %v5581_v20 = vpop.permute.xlu0 %1822 }
 0x342   : > { %2070 = vmatprep.mubr.bf16.mxu0 %v3958_v22 }
 0x343   : > { %v5585_v11 = vpop.permute.xlu1 %1747 }
 0x345   : > { %v1743_v55 = vpop.permute.xlu0 %1742 }
 0x347   : > { %v5589_v34 = vpop.permute.xlu1 %1817 }
 0x349   : > { %2071 = vmatmul.mubr.bf16.gmra.mxu0 %v3960_v9  ;;  %v5587_v23 = vpop.permute.xlu0 %1812 }
 0x34a   : > { %2078 = vmatprep.mubr.bf16.mxu0 %v3961_v7 }
 0x34b   : > { %v1738_v21 = vpop.permute.xlu1 %1737 }
 0x34d   : > { %v1733_v48 = vpop.permute.xlu0 %1732 }
 0x34f   : > { %v5593_v24 = vpop.permute.xlu1 %1807 }
 0x351   : > { %2079 = vmatmul.mubr.bf16.gmra.mxu0 %v3963_v2  ;;  %v5591_v26 = vpop.permute.xlu0 %1802 }
 0x352   : > { %2086 = vmatprep.mubr.bf16.mxu0 %v3964_v49 }
 0x353   : > { %v1728_v8 = vpop.permute.xlu1 %1727 }
 0x355   : > { %v1723_v33 = vpop.permute.xlu0 %1722 }
 0x357   : > { %v5597_v45 = vpop.permute.xlu1 %1797 }
 0x359   : > { %2087 = vmatmul.mubr.bf16.gmra.mxu0 %v3966_v40  ;;  %v5595_v32 = vpop.permute.xlu0 %1792 }
 0x35a   : > { %2094 = vmatprep.mubr.bf16.mxu0 %v3967_v61 }
 0x35b   : > { %v1718_v40 = vpop.permute.xlu1 %1717 }
 0x35d   : > { %v1713_v15 = vpop.permute.xlu0 %1712 }
 0x361   : > { %2095 = vmatmul.mubr.bf16.gmra.mxu0 %v3969_v1 }
 0x362   : > { %2102 = vmatprep.mubr.bf16.mxu0 %v3970_v51 }
 0x369   : > { %2103 = vmatmul.mubr.bf16.gmra.mxu0 %v3972_v38 }
 0x36a   : > { %2110 = vmatprep.mubr.bf16.mxu0 %v3973_v12 }
 0x371   : > { %2111 = vmatmul.mubr.bf16.gmra.mxu0 %v3975_v25 }
 0x372   : > { %2118 = vmatprep.mubr.bf16.mxu0 %v3976_v39 }
 0x379   : > { %2119 = vmatmul.mubr.bf16.gmra.mxu0 %v3978_v14 }
 0x37a   : > { %2126 = vmatprep.mubr.bf16.mxu0 %v3979_v37 }
 0x381   : > { %2127 = vmatmul.mubr.bf16.gmra.mxu0 %v3981_v31 }
 0x382   : > { %2134 = vmatprep.mubr.bf16.mxu0 %v3982_v53 }
 0x389   : > { %2135 = vmatmul.mubr.bf16.gmra.mxu0 %v3984_v58 }
 0x38a   : > { %2142 = vmatprep.mubr.bf16.mxu0 %v3985_v29 }
 0x391   : > { %2143 = vmatmul.mubr.bf16.gmra.mxu0 %v3987_v63 }
 0x392   : > { %2150 = vmatprep.mubr.bf16.mxu0 %v3988_v43 }
 0x399   : > { %2151 = vmatmul.mubr.bf16.gmra.mxu0 %v3990_v59 }
 0x39a   : > { %2158 = vmatprep.mubr.bf16.mxu0 %v3991_v0 }
 0x3a1   : > { %2159 = vmatmul.mubr.bf16.gmra.mxu0 %v3993_v30 }
 0x3a2   : > { %2166 = vmatprep.mubr.bf16.mxu0 %v3994_v6 }
 0x3a9   : > { %2167 = vmatmul.mubr.bf16.gmra.mxu0 %v3996_v13 }
 0x3aa   : > { %2174 = vmatprep.mubr.bf16.mxu0 %v3997_v57 }
 0x3b1   : > { %2175 = vmatmul.mubr.bf16.gmra.mxu0 %v3999_v60 }
 0x3b2   : > { %2182 = vmatprep.mubr.bf16.mxu0 %v4000_v50 }
 0x3b9   : > { %2183 = vmatmul.mubr.bf16.gmra.mxu0 %v4002_v4 }
 0x401   : > { %v3542_v28 = vpop.f32.mrf.mxu0 }
 0x403   : > { %v3543_v46 = vpop.f32.mrf.mxu0 }
 0x404   : > { %v3544_v52 = vadd.f32 %v3543_v46, %v3542_v28 }
 0x405   : > { %v3545_v22 = vpop.f32.mrf.mxu0 }
 0x406   : > { %v2065_v9 = vadd.f32 %v3544_v52, %v1713_v15 }
 0x407   : > { %v3546_v7 = vpop.f32.mrf.mxu0 }
 0x408   : > { %v2191_v2 = vmul.f32 0.5, %v2065_v9  ;;  %v3547_v49 = vadd.f32 %v3546_v7, %v3545_v22 }
 0x409   : > { %v3548_v61 = vpop.f32.mrf.mxu0 }
 0x40a   : > { %4179 = vtanh.f32 %v2191_v2  ;;  %v2068_v1 = vadd.f32 %v3547_v49, %v1718_v40 }
 0x40b   : > { %v3549_v51 = vpop.f32.mrf.mxu0 }
 0x40c   : > { %v2192_v38 = vmul.f32 0.5, %v2068_v1  ;;  %v3550_v12 = vadd.f32 %v3549_v51, %v3548_v61 }
 0x40d   : > { %v3551_v25 = vpop.f32.mrf.mxu0 }
 0x40e   : > { %4181 = vtanh.f32 %v2192_v38  ;;  %v2073_v39 = vadd.f32 %v3550_v12, %v1723_v33 }
 0x40f   : > { %v3552_v14 = vpop.f32.mrf.mxu0 }
 0x410   : > { %v2193_v37 = vmul.f32 0.5, %v2073_v39  ;;  %v3553_v31 = vadd.f32 %v3552_v14, %v3551_v25 }
 0x411   : > { %v3554_v53 = vpop.f32.mrf.mxu0 }
 0x412   : > { %4183 = vtanh.f32 %v2193_v37  ;;  %v2076_v58 = vadd.f32 %v3553_v31, %v1728_v8 }
 0x413   : > { %v3555_v29 = vpop.f32.mrf.mxu0 }
 0x414   : > { %v2194_v63 = vmul.f32 0.5, %v2076_v58  ;;  %v3556_v43 = vadd.f32 %v3555_v29, %v3554_v53 }
 0x415   : > { %v3557_v59 = vpop.f32.mrf.mxu0 }
 0x416   : > { %4185 = vtanh.f32 %v2194_v63  ;;  %v2081_v0 = vadd.f32 %v3556_v43, %v1733_v48 }
 0x417   : > { %v4180_v30 = vpop.eup %4179  ;;  %v3558_v6 = vpop.f32.mrf.mxu0 }
 0x418   : > { %v2255_v13 = vmul.f32 0.5, %v4180_v30  ;;  %v2195_v57 = vmul.f32 0.5, %v2081_v0  ;;  %v3559_v60 = vadd.f32 %v3558_v6, %v3557_v59 }
 0x419   : > { %v3560_v50 = vpop.f32.mrf.mxu0 }
 0x41a   : > { %4187 = vtanh.f32 %v2195_v57  ;;  %v2084_v4 = vadd.f32 %v3559_v60, %v1738_v21  ;;  %v2287_v28 = vadd.f32 0.5, %v2255_v13 }
 0x41b   : > { %v4182_v33 = vpop.eup %4181  ;;  %v3561_v46 = vpop.f32.mrf.mxu0 }
 0x41c   : > { %v2256_v52 = vmul.f32 0.5, %v4182_v33  ;;  %v2196_v15 = vmul.f32 0.5, %v2084_v4  ;;  %v3562_v8 = vadd.f32 %v3561_v46, %v3560_v50  ;;  %v5601_v49 = vmul.f32 %v2287_v28, %v2065_v9 }
 0x41d   : > { %v3563_v22 = vpop.f32.mrf.mxu0 }
 0x41e   : > { %v2288_v7 = vadd.f32 0.5, %v2256_v52  ;;  %4189 = vtanh.f32 %v2196_v15  ;;  %v5599_v2 = vadd.f32 %v3562_v8, %v1743_v55 }
 0x41f   : > { %v4184_v48 = vpop.eup %4183  ;;  %v3564_v40 = vpop.f32.mrf.mxu0 }
 0x420   : > { %v5603_v61 = vmul.f32 %v2288_v7, %v2068_v1  ;;  %v2257_v51 = vmul.f32 0.5, %v4184_v48  ;;  %v2197_v21 = vmul.f32 0.5, %v5599_v2  ;;  %v3565_v38 = vadd.f32 %v3564_v40, %v3563_v22 }
 0x421   : > { %v3566_v12 = vpop.f32.mrf.mxu0 }
 0x422   : > { %4191 = vtanh.f32 %v2197_v21  ;;  %v2092_v14 = vadd.f32 %v3565_v38, %v5585_v11  ;;  %v2289_v55 = vadd.f32 0.5, %v2257_v51 }
 0x423   : > { %v4186_v37 = vpop.eup %4185  ;;  %v3567_v31 = vpop.f32.mrf.mxu0 }
 0x424   : > { %v2258_v53 = vmul.f32 0.5, %v4186_v37  ;;  %v2198_v9 = vmul.f32 0.5, %v2092_v14  ;;  %v3568_v29 = vadd.f32 %v3567_v31, %v3566_v12  ;;  %v5612_v30 = vmul.f32 %v2289_v55, %v2073_v39 }
 0x425   : > { %v3569_v63 = vpop.f32.mrf.mxu0 }
 0x426   : > { %v2290_v1 = vadd.f32 0.5, %v2258_v53  ;;  %4193 = vtanh.f32 %v2198_v9  ;;  %v5610_v43 = vadd.f32 %v3568_v29, %v5577_v35 }
 0x427   : > { %v4188_v59 = vpop.eup %4187  ;;  %v3570_v6 = vpop.f32.mrf.mxu0 }
 0x428   : > { %v5614_v13 = vmul.f32 %v2290_v1, %v2076_v58  ;;  %v2259_v57 = vmul.f32 0.5, %v4188_v59  ;;  %v2199_v11 = vmul.f32 0.5, %v5610_v43  ;;  %v3571_v60 = vadd.f32 %v3570_v6, %v3569_v63 }
 0x429   : > { %v3572_v50 = vpop.f32.mrf.mxu0 }
 0x42a   : > { %4195 = vtanh.f32 %v2199_v11  ;;  %v2100_v28 = vadd.f32 %v3571_v60, %v5579_v27  ;;  %v2291_v35 = vadd.f32 0.5, %v2259_v57 }
 0x42b   : > { %v4190_v46 = vpop.eup %4189  ;;  %v3573_v52 = vpop.f32.mrf.mxu0 }
 0x42c   : > { %v2260_v15 = vmul.f32 0.5, %v4190_v46  ;;  %v2200_v39 = vmul.f32 0.5, %v2100_v28  ;;  %v3574_v8 = vadd.f32 %v3573_v52, %v3572_v50  ;;  %v5623_v40 = vmul.f32 %v2291_v35, %v2081_v0  ;;  %v4005_v52 = vld [vmem:[%s6198_s6 + $0x4] ss:$8 sps:$4 sm:$0xff]  }
 0x42d   : > { %v3575_v22 = vpop.f32.mrf.mxu0  ;;  %2783 = vmatprep.mubr.bf16.mxu1 %v4005_v52 }
 0x42e   : > { %v2292_v58 = vadd.f32 0.5, %v2260_v15  ;;  %4197 = vtanh.f32 %v2200_v39  ;;  %v5621_v7 = vadd.f32 %v3574_v8, %v5569_v56 }
 0x42f   : > { %v4192_v48 = vpop.eup %4191  ;;  %v3576_v51 = vpop.f32.mrf.mxu0 }
 0x430   : > { %v5625_v21 = vmul.f32 %v2292_v58, %v2084_v4  ;;  %v2261_v38 = vmul.f32 0.5, %v4192_v48  ;;  %v2201_v27 = vmul.f32 0.5, %v5621_v7  ;;  %v3577_v12 = vadd.f32 %v3576_v51, %v3575_v22 }
 0x431   : > { %v3578_v37 = vpop.f32.mrf.mxu0 }
 0x432   : > { %4199 = vtanh.f32 %v2201_v27  ;;  %v2108_v31 = vadd.f32 %v3577_v12, %v5571_v62  ;;  %v2293_v56 = vadd.f32 0.5, %v2261_v38 }
 0x433   : > { %v4194_v53 = vpop.eup %4193  ;;  %v3579_v9 = vpop.f32.mrf.mxu0 }
 0x434   : > { %v2262_v29 = vmul.f32 0.5, %v4194_v53  ;;  %v2202_v0 = vmul.f32 0.5, %v2108_v31  ;;  %v3580_v63 = vadd.f32 %v3579_v9, %v3578_v37  ;;  %v5635_v57 = vmul.f32 %v2293_v56, %v5599_v2 }
 0x435   : > { %v3581_v1 = vpop.f32.mrf.mxu0 }
 0x436   : > { %v2294_v4 = vadd.f32 0.5, %v2262_v29  ;;  %4201 = vtanh.f32 %v2202_v0  ;;  %v5632_v59 = vadd.f32 %v3580_v63, %v5561_v42 }
 0x437   : > { %v4196_v6 = vpop.eup %4195  ;;  %v3582_v11 = vpop.f32.mrf.mxu0 }
 0x438   : > { %v5637_v60 = vmul.f32 %v2294_v4, %v2092_v14  ;;  %v2263_v62 = vmul.f32 0.5, %v4196_v6  ;;  %v2203_v50 = vmul.f32 0.5, %v5632_v59  ;;  %v3583_v46 = vadd.f32 %v3582_v11, %v3581_v1 }
 0x439   : > { %v3584_v35 = vpop.f32.mrf.mxu0 }
 0x43a   : > { %4203 = vtanh.f32 %v2203_v50  ;;  %v2116_v15 = vadd.f32 %v3583_v46, %v5563_v19  ;;  %v2295_v39 = vadd.f32 0.5, %v2263_v62 }
 0x43b   : > { %v4198_v2 = vpop.eup %4197  ;;  %v3585_v8 = vpop.f32.mrf.mxu0 }
 0x43c   : > { %v2264_v14 = vmul.f32 0.5, %v4198_v2  ;;  %v2204_v22 = vmul.f32 0.5, %v2116_v15  ;;  %v3586_v58 = vadd.f32 %v3585_v8, %v3584_v35  ;;  %v5650_v12 = vmul.f32 %v2295_v39, %v5610_v43 }
 0x43d   : > { %v3587_v48 = vpop.f32.mrf.mxu0 }
 0x43e   : > { %v2296_v51 = vadd.f32 0.5, %v2264_v14  ;;  %4205 = vtanh.f32 %v2204_v22  ;;  %v5647_v38 = vadd.f32 %v3586_v58, %v5550_v10 }
 0x43f   : > { %v4200_v27 = vpop.eup %4199  ;;  %v3588_v37 = vpop.f32.mrf.mxu0 }
 0x440   : > { %v5652_v53 = vmul.f32 %v2296_v51, %v2100_v28  ;;  %v2265_v19 = vmul.f32 0.5, %v4200_v27  ;;  %v2205_v56 = vmul.f32 0.5, %v5647_v38  ;;  %v3589_v9 = vadd.f32 %v3588_v37, %v3587_v48 }
 0x441   : > { %v3590_v29 = vpop.f32.mrf.mxu0 }
 0x442   : > { %4207 = vtanh.f32 %v2205_v56  ;;  %v2124_v63 = vadd.f32 %v3589_v9, %v5552_v54  ;;  %v2297_v1 = vadd.f32 0.5, %v2265_v19 }
 0x443   : > { %v4202_v10 = vpop.eup %4201  ;;  %v3591_v4 = vpop.f32.mrf.mxu0 }
 0x444   : > { %v2266_v6 = vmul.f32 0.5, %v4202_v10  ;;  %v2206_v43 = vmul.f32 0.5, %v2124_v63  ;;  %v3592_v11 = vadd.f32 %v3591_v4, %v3590_v29  ;;  %v5660_v35 = vmul.f32 %v2297_v1, %v5621_v7 }
 0x445   : > { %v3593_v62 = vpop.f32.mrf.mxu0 }
 0x446   : > { %v2298_v28 = vadd.f32 0.5, %v2266_v6  ;;  %4209 = vtanh.f32 %v2206_v43  ;;  %v2129_v50 = vadd.f32 %v3592_v11, %v5595_v32 }
 0x447   : > { %v4204_v46 = vpop.eup %4203  ;;  %v3594_v52 = vpop.f32.mrf.mxu0 }
 0x448   : > { %v5662_v2 = vmul.f32 %v2298_v28, %v2108_v31  ;;  %v2267_v39 = vmul.f32 0.5, %v4204_v46  ;;  %v2207_v54 = vmul.f32 0.5, %v2129_v50  ;;  %v3595_v8 = vadd.f32 %v3594_v52, %v3593_v62 }
 0x449   : > { %v3596_v14 = vpop.f32.mrf.mxu0 }
 0x44a   : > { %4211 = vtanh.f32 %v2207_v54  ;;  %v2132_v58 = vadd.f32 %v3595_v8, %v5597_v45  ;;  %v2299_v51 = vadd.f32 0.5, %v2267_v39 }
 0x44b   : > { %v4206_v48 = vpop.eup %4205  ;;  %v3597_v32 = vpop.f32.mrf.mxu0 }
 0x44c   : > { %v2268_v27 = vmul.f32 0.5, %v4206_v48  ;;  %v2208_v37 = vmul.f32 0.5, %v2132_v58  ;;  %v3598_v7 = vadd.f32 %v3597_v32, %v3596_v14  ;;  %v5669_v29 = vmul.f32 %v2299_v51, %v5632_v59 }
 0x44d   : > { %v3599_v19 = vpop.f32.mrf.mxu0 }
 0x44e   : > { %v2300_v56 = vadd.f32 0.5, %v2268_v27  ;;  %4213 = vtanh.f32 %v2208_v37  ;;  %v2137_v31 = vadd.f32 %v3598_v7, %v5591_v26 }
 0x44f   : > { %v4208_v9 = vpop.eup %4207  ;;  %v3600_v10 = vpop.f32.mrf.mxu0 }
 0x450   : > { %v5671_v1 = vmul.f32 %v2300_v56, %v2116_v15  ;;  %v2269_v4 = vmul.f32 0.5, %v4208_v9  ;;  %v2209_v45 = vmul.f32 0.5, %v2137_v31  ;;  %v3601_v6 = vadd.f32 %v3600_v10, %v3599_v19 }
 0x451   : > { %v5673_v43 = vpop.f32.mrf.mxu0 }
 0x452   : > { %4215 = vtanh.f32 %v2209_v45  ;;  %v2140_v62 = vadd.f32 %v3601_v6, %v5593_v24  ;;  %v2301_v46 = vadd.f32 0.5, %v2269_v4 }
 0x453   : > { %v4210_v28 = vpop.eup %4209  ;;  %v5678_v26 = vpop.f32.mrf.mxu0 }
 0x454   : > { %v2270_v59 = vmul.f32 0.5, %v4210_v28  ;;  %v2210_v52 = vmul.f32 0.5, %v2140_v62  ;;  %v5685_v14 = vmul.f32 %v2301_v46, %v5647_v38 }
 0x455   : > { %v5680_v39 = vpop.f32.mrf.mxu0 }
 0x456   : > { %v2302_v15 = vadd.f32 0.5, %v2270_v59  ;;  %4217 = vtanh.f32 %v2210_v52 }
 0x457   : > { %v4212_v54 = vpop.eup %4211  ;;  %v5682_v8 = vpop.f32.mrf.mxu0 }
 0x458   : > { %v5687_v48 = vmul.f32 %v2302_v15, %v2124_v63  ;;  %v2271_v51 = vmul.f32 0.5, %v4212_v54 }
 0x459   : > { %v3608_v24 = vpop.f32.mrf.mxu0 }
 0x45a   : > { %v2390_v32 = vpack.c.bf16 %v5687_v48, %v5685_v14  ;;  %v2303_v7 = vadd.f32 0.5, %v2271_v51 }
 0x45b   : > { %v4214_v27 = vpop.eup %4213  ;;  %v3609_v37 = vpop.f32.mrf.mxu0 }
 0x45c   : > { %v2272_v19 = vmul.f32 0.5, %v4214_v27  ;;  %v5691_v45 = vmul.f32 %v2303_v7, %v2129_v50 }
 0x45d   : > { %v3611_v56 = vpop.f32.mrf.mxu0 }
 0x45e   : > { %v2304_v9 = vadd.f32 0.5, %v2272_v19 }
 0x45f   : > { %v4216_v10 = vpop.eup %4215  ;;  %v3612_v4 = vpop.f32.mrf.mxu0 }
 0x460   : > { %v5693_v6 = vmul.f32 %v2304_v9, %v2132_v58  ;;  %v2273_v38 = vmul.f32 0.5, %v4216_v10 }
 0x461   : > { %v3614_v63 = vpop.f32.mrf.mxu0 }
 0x462   : > { %v2305_v52 = vadd.f32 0.5, %v2273_v38 }
 0x463   : > { %v4218_v46 = vpop.eup %4217  ;;  %v3615_v59 = vpop.f32.mrf.mxu0 }
 0x464   : > { %v2274_v15 = vmul.f32 0.5, %v4218_v46  ;;  %v5697_v25 = vmul.f32 %v2305_v52, %v2137_v31 }
 0x465   : > { %v3617_v54 = vpop.f32.mrf.mxu0 }
 0x466   : > { %v2306_v51 = vadd.f32 0.5, %v2274_v15 }
 0x467   : > { %v3618_v27 = vpop.f32.mrf.mxu0 }
 0x468   : > { %v5699_v19 = vmul.f32 %v2306_v51, %v2140_v62  ;;  %v3619_v51 = vadd.f32 %v3618_v27, %v3617_v54 }
 0x469   : > { %v3620_v50 = vpop.f32.mrf.mxu0 }
 0x46b   : > { %v3621_v7 = vpop.f32.mrf.mxu0 }
 0x46c   : > { %v3622_v15 = vadd.f32 %v3621_v7, %v3620_v50  ;;  %v3613_v7 = vadd.f32 %v3612_v4, %v3611_v56 }
 0x46d   : > { %v3623_v9 = vpop.f32.mrf.mxu0 }
 0x46e   : > { %v5731_v4 = vadd.f32 %v3613_v7, %v5583_v3 }
 0x46f   : > { %v3624_v10 = vpop.f32.mrf.mxu0 }
 0x470   : > { %v3625_v46 = vadd.f32 %v3624_v10, %v3623_v9 }
 0x471   : > { %v3626_v33 = vpop.f32.mrf.mxu0 }
 0x472   : > { %v5710_v22 = vadd.f32 %v3625_v46, %v5567_v44 }
 0x473   : > { %v3627_v28 = vpop.f32.mrf.mxu0 }
 0x474   : > { %v3628_v55 = vadd.f32 %v3627_v28, %v3626_v33  ;;  %v5714_v28 = vadd.f32 %v3622_v15, %v5565_v41  ;;  %v2218_v44 = vmul.f32 0.5, %v5710_v22  ;;  %v3610_v41 = vadd.f32 %v3609_v37, %v3608_v24 }
 0x475   : > { %v3629_v42 = vpop.f32.mrf.mxu0  ;;  %v3604_v24 = vadd.f32 %v5678_v26, %v5673_v43 }
 0x476   : > { %v5704_v31 = vadd.f32 %v3628_v55, %v5557_v17  ;;  %v3616_v17 = vadd.f32 %v3615_v59, %v3614_v63 }
 0x477   : > { %v3630_v38 = vpop.f32.mrf.mxu0  ;;  %v5744_v3 = vadd.f32 %v3604_v24, %v5587_v23 }
 0x478   : > { %v3631_v0 = vadd.f32 %v3630_v38, %v3629_v42  ;;  %v2219_v42 = vmul.f32 0.5, %v5704_v31  ;;  %v5724_v9 = vadd.f32 %v3616_v17, %v5573_v47  ;;  %v5736_v47 = vadd.f32 %v3610_v41, %v5581_v20 }
 0x479   : > { %v3632_v62 = vpop.f32.mrf.mxu0  ;;  %v2211_v63 = vmul.f32 0.5, %v5744_v3 }
 0x47a   : > { %v5707_v52 = vadd.f32 %v3631_v0, %v5559_v5  ;;  %v5719_v5 = vadd.f32 %v3619_v51, %v5575_v18  ;;  %v3607_v18 = vadd.f32 %v5682_v8, %v5680_v39  ;;  %v2215_v37 = vmul.f32 0.5, %v5724_v9 }
 0x47b   : > { %v3633_v58 = vpop.f32.mrf.mxu0  ;;  %v2214_v39 = vmul.f32 0.5, %v5731_v4  ;;  %v2213_v8 = vmul.f32 0.5, %v5736_v47 }
 0x47c   : > { %v2220_v11 = vmul.f32 0.5, %v5707_v52  ;;  %v3634_v33 = vadd.f32 %v3633_v58, %v3632_v62  ;;  %v2217_v58 = vmul.f32 0.5, %v5714_v28  ;;  %v2216_v56 = vmul.f32 0.5, %v5719_v5 }
 0x47d   : > { %v3635_v50 = vpop.f32.mrf.mxu0 }
 0x47e   : > { %v2185_v55 = vadd.f32 %v3634_v33, %v5540_v16  ;;  %4219 = vtanh.f32 %v2220_v11 }
 0x47f   : > { %v3636_v0 = vpop.f32.mrf.mxu0  ;;  %4221 = vtanh.f32 %v2219_v42 }
 0x480   : > { %v2221_v54 = vmul.f32 0.5, %v2185_v55  ;;  %v3637_v27 = vadd.f32 %v3636_v0, %v3635_v50 }
 0x482   : > { %4223 = vtanh.f32 %v2221_v54  ;;  %v2188_v16 = vadd.f32 %v3637_v27, %v5548_v36  ;;  %v5740_v36 = vadd.f32 %v3607_v18, %v5589_v34 }
 0x483   : > { %4225 = vtanh.f32 %v2218_v44 }
 0x484   : > { %v2222_v11 = vmul.f32 0.5, %v2188_v16  ;;  %4227 = vtanh.f32 %v2217_v58  ;;  %v2212_v43 = vmul.f32 0.5, %v5740_v36 }
 0x486   : > { %4229 = vtanh.f32 %v2222_v11 }
 0x487   : > { %4231 = vtanh.f32 %v2216_v56 }
 0x488   : > { %4233 = vtanh.f32 %v2215_v37 }
 0x489   : > { %4235 = vtanh.f32 %v2214_v39 }
 0x48a   : > { %4237 = vtanh.f32 %v2213_v8 }
 0x48b   : > { %v4220_v20 = vpop.eup %4219  ;;  %4239 = vtanh.f32 %v2212_v43 }
 0x48c   : > { %v4222_v26 = vpop.eup %4221  ;;  %v2284_v34 = vmul.f32 0.5, %v4220_v20  ;;  %4241 = vtanh.f32 %v2211_v63 }
 0x48d   : > { %v2283_v23 = vmul.f32 0.5, %v4222_v26 }
 0x48e   : > { %v2316_v33 = vadd.f32 0.5, %v2284_v34 }
 0x48f   : > { %v4224_v59 = vpop.eup %4223  ;;  %v2315_v7 = vadd.f32 0.5, %v2283_v23 }
 0x490   : > { %v2285_v10 = vmul.f32 0.5, %v4224_v59  ;;  %v4226_v38 = vpop.eup %4225  ;;  %v2348_v58 = vmul.f32 %v2316_v33, %v5707_v52  ;;  %v6244_v33 = vpack.c.bf16 %v5652_v53, %v5650_v12  ;;  %v6248_v12 = vpack.c.bf16 %v5614_v13, %v5612_v30  ;;  %v4008_v30 = vld [vmem:[%s6198_s6 + $0x10] ss:$8 sps:$4 sm:$0xff]   ;;  %v4009_v13 = vld [vmem:[%s6198_s6 + $0x24] ss:$8 sps:$4 sm:$0xff]  }
 0x491   : > { %v4228_v46 = vpop.eup %4227  ;;  %v2282_v51 = vmul.f32 0.5, %v4226_v38  ;;  %v2347_v37 = vmul.f32 %v2315_v7, %v5704_v31  ;;  %v6249_v53 = vpack.c.bf16 %v5693_v6, %v5691_v45  ;;  %v4017_v45 = vld [vmem:[%s6198_s6 + $0x40] ss:$8 sps:$4 sm:$0xff]   ;;  %v4018_v6 = vld [vmem:[%s6198_s6 + $0x54] ss:$8 sps:$4 sm:$0xff]  }
 0x492   : > { %v2317_v42 = vadd.f32 0.5, %v2285_v10  ;;  %v2281_v17 = vmul.f32 0.5, %v4228_v46  ;;  %v4029_v7 = vld [vmem:[%s6198_s6 + $0x80] ss:$8 sps:$4 sm:$0xff]  }
 0x493   : > { %v4230_v15 = vpop.eup %4229  ;;  %v2314_v27 = vadd.f32 0.5, %v2282_v51  ;;  %v2397_v63 = vpack.c.bf16 %v2348_v58, %v2347_v37  ;;  %v4036_v58 = vld [vmem:[%s6198_s6 + $0xb4] ss:$8 sps:$4 sm:$0xff]   ;;  %v4047_v37 = vld [vmem:[%s6198_s6 + $0xe4] ss:$8 sps:$4 sm:$0xff]  }
 0x494   : > { %v4232_v62 = vpop.eup %4231  ;;  %v2286_v50 = vmul.f32 0.5, %v4230_v15  ;;  %v2349_v41 = vmul.f32 %v2317_v42, %v2185_v55  ;;  %v2313_v24 = vadd.f32 0.5, %v2281_v17  ;;  %v6245_v42 = vpack.c.bf16 %v5637_v60, %v5635_v57  ;;  %v4003_v57 = vld [vmem:[%s6198_s6] ss:$8 sps:$4 sm:$0xff]   ;;  %v4015_v60 = vld [vmem:[%s6198_s6 + $0x44] ss:$8 sps:$4 sm:$0xff]  }
 0x495   : > { %v4234_v44 = vpop.eup %4233  ;;  %v2280_v54 = vmul.f32 0.5, %v4232_v62  ;;  %v2346_v26 = vmul.f32 %v2314_v27, %v5710_v22  ;;  %v6242_v22 = vpack.c.bf16 %v5671_v1, %v5669_v29  ;;  %v6243_v62 = vpack.c.bf16 %v5662_v2, %v5660_v35  ;;  %v4027_v17 = vld [vmem:[%s6198_s6 + $0x84] ss:$8 sps:$4 sm:$0xff]   ;;  %v4035_v27 = vld [vmem:[%s6198_s6 + $0xa0] ss:$8 sps:$4 sm:$0xff]  }
 0x496   : > { %v2318_v0 = vadd.f32 0.5, %v2286_v50  ;;  %v4236_v18 = vpop.eup %4235  ;;  %v2279_v11 = vmul.f32 0.5, %v4234_v44  ;;  %v6246_v35 = vpack.c.bf16 %v5625_v21, %v5623_v40  ;;  %v6247_v2 = vpack.c.bf16 %v5699_v19, %v5697_v25  ;;  %v4006_v25 = vld [vmem:[%s6198_s6 + $0x14] ss:$8 sps:$4 sm:$0xff]   ;;  %v4014_v21 = vld [vmem:[%s6198_s6 + $0x30] ss:$8 sps:$4 sm:$0xff]  }
 0x497   : > { %v4238_v8 = vpop.eup %4237  ;;  %v2278_v43 = vmul.f32 0.5, %v4236_v18  ;;  %v2312_v20 = vadd.f32 0.5, %v2280_v54  ;;  %v6250_v40 = vpack.c.bf16 %v5603_v61, %v5601_v49  ;;  %v4011_v49 = vld [vmem:[%s6198_s6 + $0x20] ss:$8 sps:$4 sm:$0xff]   ;;  %v4012_v61 = vld [vmem:[%s6198_s6 + $0x34] ss:$8 sps:$4 sm:$0xff]  }
 0x498   : > { %v2350_v56 = vmul.f32 %v2318_v0, %v2188_v16  ;;  %v4240_v59 = vpop.eup %4239  ;;  %v2277_v52 = vmul.f32 0.5, %v4238_v8  ;;  %v2311_v55 = vadd.f32 0.5, %v2279_v11  ;;  %v2345_v16 = vmul.f32 %v2313_v24, %v5714_v28  ;;  %v4020_v19 = vld [vmem:[%s6198_s6 + $0x50] ss:$8 sps:$4 sm:$0xff]   ;;  %v4030_v0 = vld [vmem:[%s6198_s6 + $0x94] ss:$8 sps:$4 sm:$0xff]  }
 0x499   : > { %v4242_v34 = vpop.eup %4241  ;;  %v2276_v31 = vmul.f32 0.5, %v4240_v59  ;;  %v2310_v10 = vadd.f32 0.5, %v2278_v43  ;;  %v2344_v38 = vmul.f32 %v2312_v20, %v5719_v5  ;;  %v4026_v50 = vld [vmem:[%s6198_s6 + $0x70] ss:$8 sps:$4 sm:$0xff]   ;;  %v4033_v54 = vld [vmem:[%s6198_s6 + $0xa4] ss:$8 sps:$4 sm:$0xff]   ;;  %v5881_v20 = vpop.permute.xlu1 %2588 }
 0x49a   : > { %v2398_v39 = vpack.c.bf16 %v2350_v56, %v2349_v41  ;;  %v2396_v46 = vpack.c.bf16 %v2346_v26, %v2345_v16  ;;  %v2275_v23 = vmul.f32 0.5, %v4242_v34  ;;  %v2309_v15 = vadd.f32 0.5, %v2277_v52  ;;  %v4032_v44 = vld [vmem:[%s6198_s6 + $0x90] ss:$8 sps:$4 sm:$0xff]   ;;  %v4041_v56 = vld [vmem:[%s6198_s6 + $0xc4] ss:$8 sps:$4 sm:$0xff]  }
 0x49b   : > { %v2343_v14 = vmul.f32 %v2311_v55, %v5724_v9  ;;  %v2308_v48 = vadd.f32 0.5, %v2276_v31  ;;  %v4038_v41 = vld [vmem:[%s6198_s6 + $0xb0] ss:$8 sps:$4 sm:$0xff]   ;;  %v4039_v18 = vld [vmem:[%s6198_s6 + $0xc0] ss:$8 sps:$4 sm:$0xff]  }
 0x49c   : > { %3638 = vmatprep.subr.bf16.mxu1 %v2398_v39  ;;  %v2307_v51 = vadd.f32 0.5, %v2275_v23  ;;  %v2341_v5 = vmul.f32 %v2309_v15, %v5736_v47  ;;  %v4021_v47 = vld [vmem:[%s6198_s6 + $0x64] ss:$8 sps:$4 sm:$0xff]   ;;  %v4044_v11 = vld [vmem:[%s6198_s6 + $0xd4] ss:$8 sps:$4 sm:$0xff]   ;;  %v5873_v39 = vpop.permute.xlu0 %2583 }
 0x49d   : > { %3639 = vmatpush3.bf16.msra.mxu1 %v2390_v32  ;;  %v2342_v32 = vmul.f32 %v2310_v10, %v5731_v4  ;;  %v2395_v28 = vpack.c.bf16 %v2344_v38, %v2343_v14  ;;  %v2340_v29 = vmul.f32 %v2308_v48, %v5740_v36  ;;  %v4023_v36 = vld [vmem:[%s6198_s6 + $0x60] ss:$8 sps:$4 sm:$0xff]   ;;  %v4042_v24 = vld [vmem:[%s6198_s6 + $0xd0] ss:$8 sps:$4 sm:$0xff]   ;;  %v4050_v43 = vld [vmem:[%s6198_s6 + $0xf4] ss:$8 sps:$4 sm:$0xff]  }
 0x49e   : > { %3640 = vmatprep.subr.bf16.mxu1 %v2397_v63  ;;  %v2339_v9 = vmul.f32 %v2307_v51, %v5744_v3  ;;  %v4024_v3 = vld [vmem:[%s6198_s6 + $0x74] ss:$8 sps:$4 sm:$0xff]   ;;  %v4045_v8 = vld [vmem:[%s6198_s6 + $0xe0] ss:$8 sps:$4 sm:$0xff]   ;;  %v5885_v63 = vpop.permute.xlu1 %2508  ;;  %v4048_v59 = vld [vmem:[%s6198_s6 + $0xf0] ss:$8 sps:$4 sm:$0xff]  }
 0x49f   : > { %v2394_v1 = vpack.c.bf16 %v2342_v32, %v2341_v5 }
 0x4a0   : > { %v2393_v4 = vpack.c.bf16 %v2340_v29, %v2339_v9  ;;  %v5883_v26 = vpop.permute.xlu0 %2503 }
 0x4a1   : > { %3641 = vmatpush3.bf16.msra.mxu1 %v6242_v22 }
 0x4a2   : > { %3642 = vmatprep.subr.bf16.mxu1 %v2396_v46  ;;  %v5892_v55 = vpop.permute.xlu1 %2578 }
 0x4a4   : > { %v5890_v52 = vpop.permute.xlu0 %2573 }
 0x4a5   : > { %3643 = vmatpush3.bf16.msra.mxu1 %v6243_v62 }
 0x4a6   : > { %3644 = vmatprep.subr.bf16.mxu1 %v2395_v28  ;;  %v5896_v34 = vpop.permute.xlu1 %2498 }
 0x4a8   : > { %v5894_v16 = vpop.permute.xlu0 %2493 }
 0x4a9   : > { %3645 = vmatpush3.bf16.msra.mxu1 %v6244_v33 }
 0x4aa   : > { %3646 = vmatprep.subr.bf16.mxu1 %v2394_v1  ;;  %v5900_v10 = vpop.permute.xlu1 %2568 }
 0x4ac   : > { %v5898_v31 = vpop.permute.xlu0 %2563 }
 0x4ad   : > { %3647 = vmatpush3.bf16.msra.mxu1 %v6245_v42 }
 0x4ae   : > { %3648 = vmatprep.subr.bf16.mxu1 %v2393_v4  ;;  %v5904_v46 = vpop.permute.xlu1 %2488 }
 0x4b0   : > { %v5902_v38 = vpop.permute.xlu0 %2483 }
 0x4b1   : > { %3649 = vmatpush3.bf16.msra.mxu1 %v6246_v35 }
 0x4b2   : > { %3650 = vmatprep.subr.bf16.mxu1 %v6247_v2  ;;  %v5908_v23 = vpop.permute.xlu1 %2558 }
 0x4b4   : > { %v5906_v22 = vpop.permute.xlu0 %2553 }
 0x4b5   : > { %3651 = vmatpush3.bf16.msra.mxu1 %v6248_v12 }
 0x4b6   : > { %3652 = vmatprep.subr.bf16.mxu1 %v6249_v53  ;;  %v5912_v14 = vpop.permute.xlu1 %2478 }
 0x4b8   : > { %v5910_v15 = vpop.permute.xlu0 %2473 }
 0x4b9   : > { %3653 = vmatpush3.bf16.msra.mxu1 %v6250_v40 }
 0x4ba   : > { %v5916_v32 = vpop.permute.xlu1 %2548 }
 0x4bc   : > { %2784 = vmatmul.mubr.bf16.vlgmr.msra.gmra.mxu1 %v4003_v57  ;;  %v5914_v48 = vpop.permute.xlu0 %2543 }
 0x4bd   : > { %2791 = vmatprep.mubr.bf16.mxu1 %v4006_v25 }
 0x4be   : > { %v5918_v62 = vpop.permute.xlu1 %2468 }
 0x4c0   : > { %v2464_v28 = vpop.permute.xlu0 %2463 }
 0x4c2   : > { %v5922_v5 = vpop.permute.xlu1 %2538 }
 0x4c4   : > { %2792 = vmatmul.mubr.bf16.gmra.mxu1 %v4008_v30  ;;  %v5920_v51 = vpop.permute.xlu0 %2533 }
 0x4c5   : > { %2799 = vmatprep.mubr.bf16.mxu1 %v4009_v13 }
 0x4c6   : > { %v2459_v1 = vpop.permute.xlu1 %2458 }
 0x4c8   : > { %v2454_v29 = vpop.permute.xlu0 %2453 }
 0x4ca   : > { %v5926_v9 = vpop.permute.xlu1 %2528 }
 0x4cc   : > { %2800 = vmatmul.mubr.bf16.gmra.mxu1 %v4011_v49  ;;  %v5924_v33 = vpop.permute.xlu0 %2523 }
 0x4cd   : > { %2807 = vmatprep.mubr.bf16.mxu1 %v4012_v61 }
 0x4ce   : > { %v2449_v42 = vpop.permute.xlu1 %2448 }
 0x4d0   : > { %v2444_v4 = vpop.permute.xlu0 %2443 }
 0x4d2   : > { %v5930_v12 = vpop.permute.xlu1 %2518 }
 0x4d4   : > { %2808 = vmatmul.mubr.bf16.gmra.mxu1 %v4014_v21  ;;  %v5928_v35 = vpop.permute.xlu0 %2513 }
 0x4d5   : > { %2815 = vmatprep.mubr.bf16.mxu1 %v4015_v60 }
 0x4d6   : > { %v2439_v21 = vpop.permute.xlu1 %2438 }
 0x4d8   : > { %v2434_v40 = vpop.permute.xlu0 %2433 }
 0x4dc   : > { %2816 = vmatmul.mubr.bf16.gmra.mxu1 %v4017_v45 }
 0x4dd   : > { %2823 = vmatprep.mubr.bf16.mxu1 %v4018_v6 }
 0x4e4   : > { %2824 = vmatmul.mubr.bf16.gmra.mxu1 %v4020_v19 }
 0x4e5   : > { %2831 = vmatprep.mubr.bf16.mxu1 %v4021_v47 }
 0x4ec   : > { %2832 = vmatmul.mubr.bf16.gmra.mxu1 %v4023_v36 }
 0x4ed   : > { %2839 = vmatprep.mubr.bf16.mxu1 %v4024_v3 }
 0x4f4   : > { %2840 = vmatmul.mubr.bf16.gmra.mxu1 %v4026_v50 }
 0x4f5   : > { %2847 = vmatprep.mubr.bf16.mxu1 %v4027_v17 }
 0x4fc   : > { %2848 = vmatmul.mubr.bf16.gmra.mxu1 %v4029_v7 }
 0x4fd   : > { %2855 = vmatprep.mubr.bf16.mxu1 %v4030_v0 }
 0x504   : > { %2856 = vmatmul.mubr.bf16.gmra.mxu1 %v4032_v44 }
 0x505   : > { %2863 = vmatprep.mubr.bf16.mxu1 %v4033_v54 }
 0x50c   : > { %2864 = vmatmul.mubr.bf16.gmra.mxu1 %v4035_v27 }
 0x50d   : > { %2871 = vmatprep.mubr.bf16.mxu1 %v4036_v58 }
 0x514   : > { %2872 = vmatmul.mubr.bf16.gmra.mxu1 %v4038_v41 }
 0x515   : > { %2879 = vmatprep.mubr.bf16.mxu1 %v4041_v56 }
 0x51c   : > { %2880 = vmatmul.mubr.bf16.gmra.mxu1 %v4039_v18 }
 0x51d   : > { %2887 = vmatprep.mubr.bf16.mxu1 %v4044_v11 }
 0x524   : > { %2888 = vmatmul.mubr.bf16.gmra.mxu1 %v4042_v24 }
 0x525   : > { %2895 = vmatprep.mubr.bf16.mxu1 %v4047_v37 }
 0x52c   : > { %2896 = vmatmul.mubr.bf16.gmra.mxu1 %v4045_v8 }
 0x52d   : > { %2903 = vmatprep.mubr.bf16.mxu1 %v4050_v43 }
 0x534   : > { %2904 = vmatmul.mubr.bf16.gmra.mxu1 %v4048_v59 }
 0x57c   : > { %v3654_v2 = vpop.f32.mrf.mxu1 }
 0x57e   : > { %v3655_v53 = vpop.f32.mrf.mxu1 }
 0x57f   : > { %v3656_v57 = vadd.f32 %v3655_v53, %v3654_v2 }
 0x580   : > { %v3657_v25 = vpop.f32.mrf.mxu1 }
 0x581   : > { %v2786_v30 = vadd.f32 %v3656_v57, %v2434_v40 }
 0x582   : > { %v3658_v13 = vpop.f32.mrf.mxu1 }
 0x583   : > { %v2912_v49 = vmul.f32 0.5, %v2786_v30  ;;  %v3659_v61 = vadd.f32 %v3658_v13, %v3657_v25 }
 0x584   : > { %v3660_v60 = vpop.f32.mrf.mxu1 }
 0x585   : > { %4243 = vtanh.f32 %v2912_v49  ;;  %v2789_v45 = vadd.f32 %v3659_v61, %v2439_v21 }
 0x586   : > { %v3661_v6 = vpop.f32.mrf.mxu1 }
 0x587   : > { %v2913_v19 = vmul.f32 0.5, %v2789_v45  ;;  %v3662_v47 = vadd.f32 %v3661_v6, %v3660_v60 }
 0x588   : > { %v3663_v36 = vpop.f32.mrf.mxu1 }
 0x589   : > { %4245 = vtanh.f32 %v2913_v19  ;;  %v2794_v3 = vadd.f32 %v3662_v47, %v2444_v4 }
 0x58a   : > { %v3664_v50 = vpop.f32.mrf.mxu1 }
 0x58b   : > { %v2914_v17 = vmul.f32 0.5, %v2794_v3  ;;  %v3665_v7 = vadd.f32 %v3664_v50, %v3663_v36 }
 0x58c   : > { %v3666_v0 = vpop.f32.mrf.mxu1 }
 0x58d   : > { %4247 = vtanh.f32 %v2914_v17  ;;  %v2797_v44 = vadd.f32 %v3665_v7, %v2449_v42 }
 0x58e   : > { %v3667_v54 = vpop.f32.mrf.mxu1 }
 0x58f   : > { %v2915_v27 = vmul.f32 0.5, %v2797_v44  ;;  %v3668_v58 = vadd.f32 %v3667_v54, %v3666_v0 }
 0x590   : > { %v3669_v41 = vpop.f32.mrf.mxu1 }
 0x591   : > { %4249 = vtanh.f32 %v2915_v27  ;;  %v2802_v56 = vadd.f32 %v3668_v58, %v2454_v29 }
 0x592   : > { %v4244_v18 = vpop.eup %4243  ;;  %v3670_v11 = vpop.f32.mrf.mxu1 }
 0x593   : > { %v2976_v24 = vmul.f32 0.5, %v4244_v18  ;;  %v2916_v37 = vmul.f32 0.5, %v2802_v56  ;;  %v3671_v8 = vadd.f32 %v3670_v11, %v3669_v41 }
 0x594   : > { %v3672_v43 = vpop.f32.mrf.mxu1 }
 0x595   : > { %4251 = vtanh.f32 %v2916_v37  ;;  %v2805_v59 = vadd.f32 %v3671_v8, %v2459_v1  ;;  %v3008_v2 = vadd.f32 0.5, %v2976_v24 }
 0x596   : > { %v4246_v4 = vpop.eup %4245  ;;  %v3673_v53 = vpop.f32.mrf.mxu1 }
 0x597   : > { %v2977_v57 = vmul.f32 0.5, %v4246_v4  ;;  %v2917_v40 = vmul.f32 0.5, %v2805_v59  ;;  %v3674_v42 = vadd.f32 %v3673_v53, %v3672_v43  ;;  %v5934_v61 = vmul.f32 %v3008_v2, %v2786_v30 }
 0x598   : > { %v3675_v25 = vpop.f32.mrf.mxu1 }
 0x599   : > { %v3009_v13 = vadd.f32 0.5, %v2977_v57  ;;  %4253 = vtanh.f32 %v2917_v40  ;;  %v5932_v49 = vadd.f32 %v3674_v42, %v2464_v28 }
 0x59a   : > { %v4248_v29 = vpop.eup %4247  ;;  %v3676_v21 = vpop.f32.mrf.mxu1 }
 0x59b   : > { %v5936_v60 = vmul.f32 %v3009_v13, %v2789_v45  ;;  %v2978_v6 = vmul.f32 0.5, %v4248_v29  ;;  %v2918_v1 = vmul.f32 0.5, %v5932_v49  ;;  %v3677_v19 = vadd.f32 %v3676_v21, %v3675_v25 }
 0x59c   : > { %v3678_v47 = vpop.f32.mrf.mxu1 }
 0x59d   : > { %4255 = vtanh.f32 %v2918_v1  ;;  %v5942_v50 = vadd.f32 %v3677_v19, %v5918_v62  ;;  %v3010_v17 = vadd.f32 0.5, %v2978_v6 }
 0x59e   : > { %v4250_v28 = vpop.eup %4249  ;;  %v3679_v7 = vpop.f32.mrf.mxu1 }
 0x59f   : > { %v2979_v30 = vmul.f32 0.5, %v4250_v28  ;;  %v2919_v0 = vmul.f32 0.5, %v5942_v50  ;;  %v3680_v45 = vadd.f32 %v3679_v7, %v3678_v47  ;;  %v5948_v18 = vmul.f32 %v3010_v17, %v2794_v3 }
 0x5a0   : > { %v3681_v54 = vpop.f32.mrf.mxu1 }
 0x5a1   : > { %v3011_v27 = vadd.f32 0.5, %v2979_v30  ;;  %4257 = vtanh.f32 %v2919_v0  ;;  %v5946_v58 = vadd.f32 %v3680_v45, %v5910_v15  ;;  %v3095_v30 = vlaneseq }
 0x5a2   : > { %v4252_v41 = vpop.eup %4251  ;;  %v3682_v11 = vpop.f32.mrf.mxu1 }
 0x5a3   : > { %v5950_v24 = vmul.f32 %v3011_v27, %v2797_v44  ;;  %v2980_v62 = vmul.f32 0.5, %v4252_v41  ;;  %v2920_v37 = vmul.f32 0.5, %v5946_v58  ;;  %v3683_v8 = vadd.f32 %v3682_v11, %v3681_v54 }
 0x5a4   : > { %v3684_v43 = vpop.f32.mrf.mxu1  ;;  %v4438_v41 = vmov 1966171168  }
 0x5a5   : > { %4259 = vtanh.f32 %v2920_v37  ;;  %v5956_v2 = vadd.f32 %v3683_v8, %v5912_v14  ;;  %v3012_v53 = vadd.f32 0.5, %v2980_v62  ;;  %v3109_v11 = vunpack.c.l.s4 %v4438_v41 }
 0x5a6   : > { %v4254_v15 = vpop.eup %4253  ;;  %v3685_v57 = vpop.f32.mrf.mxu1 }
 0x5a7   : > { %v2981_v3 = vmul.f32 0.5, %v4254_v15  ;;  %v2921_v40 = vmul.f32 0.5, %v5956_v2  ;;  %v3686_v44 = vadd.f32 %v3685_v57, %v3684_v43  ;;  %v5962_v21 = vmul.f32 %v3012_v53, %v2802_v56 }
 0x5a8   : > { %v3687_v42 = vpop.f32.mrf.mxu1  ;;  %v5981_v43 = vshrl.u32 %v3095_v30, 7 }
 0x5a9   : > { %v3013_v25 = vadd.f32 0.5, %v2981_v3  ;;  %4261 = vtanh.f32 %v2921_v40  ;;  %v5960_v13 = vadd.f32 %v3686_v44, %v5902_v38  ;;  %v3110_v3 = vunpack.c.0.s8 %v3109_v11 }
 0x5aa   : > { %v4256_v29 = vpop.eup %4255  ;;  %v3688_v6 = vpop.f32.mrf.mxu1  ;;  %6251 = vst [vmem:[#allocation14_spill] sm:$0xff] %v5981_v43 }
 0x5ab   : > { %v5964_v1 = vmul.f32 %v3013_v25, %v2805_v59  ;;  %v2982_v14 = vmul.f32 0.5, %v4256_v29  ;;  %v2922_v19 = vmul.f32 0.5, %v5960_v13  ;;  %v3689_v47 = vadd.f32 %v3688_v6, %v3687_v42 }
 0x5ac   : > { %v3690_v28 = vpop.f32.mrf.mxu1  ;;  %v5993_v29 = vsub.s32 %v3110_v3, %v5981_v43 }
 0x5ad   : > { %4263 = vtanh.f32 %v2922_v19  ;;  %v5970_v7 = vadd.f32 %v3689_v47, %v5904_v46  ;;  %v3014_v0 = vadd.f32 0.5, %v2982_v14  ;;  %v5979_v46 = vld.sshfl [vmem:[%s6200_s8] sm:$0x11 pattern:$0x75316420] }
 0x5ae   : > { %v4258_v38 = vpop.eup %4257  ;;  %v3691_v56 = vpop.f32.mrf.mxu1  ;;  %v3107_v57 = vcombine.high %v5979_v46, %v5979_v46  ;;  %6252 = vst [vmem:[#allocation15_spill] sm:$0xff] %v5993_v29 }
 0x5af   : > { %v2983_v45 = vmul.f32 0.5, %v4258_v38  ;;  %v2923_v59 = vmul.f32 0.5, %v5970_v7  ;;  %v3692_v54 = vadd.f32 %v3691_v56, %v3690_v28  ;;  %v5984_v15 = vmul.f32 %v3014_v0, %v5932_v49 }
 0x5b0   : > { %v3693_v27 = vpop.f32.mrf.mxu1  ;;  %v3121_v28 = vrot.slane %v3107_v57, %v5993_v29 }
 0x5b1   : > { %v3015_v62 = vadd.f32 0.5, %v2983_v45  ;;  %4265 = vtanh.f32 %v2923_v59  ;;  %v5974_v37 = vadd.f32 %v3692_v54, %v5894_v16 }
 0x5b2   : > { %v4260_v8 = vpop.eup %4259  ;;  %v3694_v53 = vpop.f32.mrf.mxu1  ;;  %3156 = vmatprep.mubr.bf16.mxu0 %v3121_v28 }
 0x5b3   : > { %v5989_v40 = vmul.f32 %v3015_v62, %v5942_v50  ;;  %v2984_v16 = vmul.f32 0.5, %v4260_v8  ;;  %v2924_v44 = vmul.f32 0.5, %v5974_v37  ;;  %v3695_v42 = vadd.f32 %v3694_v53, %v3693_v27 }
 0x5b4   : > { %v3696_v25 = vpop.f32.mrf.mxu1 }
 0x5b5   : > { %4267 = vtanh.f32 %v2924_v44  ;;  %v2837_v6 = vadd.f32 %v3695_v42, %v5896_v34  ;;  %v3016_v19 = vadd.f32 0.5, %v2984_v16 }
 0x5b6   : > { %v4262_v14 = vpop.eup %4261  ;;  %v3697_v47 = vpop.f32.mrf.mxu1 }
 0x5b7   : > { %v2985_v38 = vmul.f32 0.5, %v4262_v14  ;;  %v2925_v30 = vmul.f32 0.5, %v2837_v6  ;;  %v3698_v0 = vadd.f32 %v3697_v47, %v3696_v25  ;;  %v6005_v34 = vmul.f32 %v3016_v19, %v5946_v58 }
 0x5b8   : > { %v3699_v56 = vpop.f32.mrf.mxu1 }
 0x5b9   : > { %v3017_v45 = vadd.f32 0.5, %v2985_v38  ;;  %4269 = vtanh.f32 %v2925_v30  ;;  %v6002_v59 = vadd.f32 %v3698_v0, %v5883_v26 }
 0x5ba   : > { %v4264_v54 = vpop.eup %4263  ;;  %v3700_v27 = vpop.f32.mrf.mxu1 }
 0x5bb   : > { %v6008_v41 = vmul.f32 %v3017_v45, %v5956_v2  ;;  %v2986_v11 = vmul.f32 0.5, %v4264_v54  ;;  %v2926_v62 = vmul.f32 0.5, %v6002_v59  ;;  %v3701_v8 = vadd.f32 %v3700_v27, %v3699_v56 }
 0x5bc   : > { %v3702_v53 = vpop.f32.mrf.mxu1 }
 0x5bd   : > { %4271 = vtanh.f32 %v2926_v62  ;;  %v2845_v26 = vadd.f32 %v3701_v8, %v5885_v63  ;;  %v3018_v16 = vadd.f32 0.5, %v2986_v11 }
 0x5be   : > { %v4266_v3 = vpop.eup %4265  ;;  %v3703_v44 = vpop.f32.mrf.mxu1 }
 0x5bf   : > { %v2987_v58 = vmul.f32 0.5, %v4266_v3  ;;  %v2927_v42 = vmul.f32 0.5, %v2845_v26  ;;  %v3704_v25 = vadd.f32 %v3703_v44, %v3702_v53  ;;  %v6016_v28 = vmul.f32 %v3018_v16, %v5960_v13 }
 0x5c0   : > { %v3705_v14 = vpop.f32.mrf.mxu1 }
 0x5c1   : > { %v3019_v2 = vadd.f32 0.5, %v2987_v58  ;;  %4273 = vtanh.f32 %v2927_v42  ;;  %v2850_v19 = vadd.f32 %v3704_v25, %v5928_v35 }
 0x5c2   : > { %v4268_v47 = vpop.eup %4267  ;;  %v3706_v38 = vpop.f32.mrf.mxu1 }
 0x5c3   : > { %v6019_v30 = vmul.f32 %v3019_v2, %v5970_v7  ;;  %v2988_v63 = vmul.f32 0.5, %v4268_v47  ;;  %v2928_v0 = vmul.f32 0.5, %v2850_v19  ;;  %v3707_v56 = vadd.f32 %v3706_v38, %v3705_v14 }
 0x5c4   : > { %v3708_v45 = vpop.f32.mrf.mxu1 }
 0x5c5   : > { %4275 = vtanh.f32 %v2928_v0  ;;  %v2853_v27 = vadd.f32 %v3707_v56, %v5930_v12  ;;  %v3020_v35 = vadd.f32 0.5, %v2988_v63 }
 0x5c6   : > { %v4270_v11 = vpop.eup %4269  ;;  %v3709_v62 = vpop.f32.mrf.mxu1 }
 0x5c7   : > { %v2989_v8 = vmul.f32 0.5, %v4270_v11  ;;  %v2929_v13 = vmul.f32 0.5, %v2853_v27  ;;  %v3710_v53 = vadd.f32 %v3709_v62, %v3708_v45  ;;  %v6026_v58 = vmul.f32 %v3020_v35, %v5974_v37 }
 0x5c8   : > { %v3711_v3 = vpop.f32.mrf.mxu1 }
 0x5c9   : > { %v3021_v16 = vadd.f32 0.5, %v2989_v8  ;;  %4277 = vtanh.f32 %v2929_v13  ;;  %v2858_v7 = vadd.f32 %v3710_v53, %v5924_v33 }
 0x5ca   : > { %v4272_v44 = vpop.eup %4271  ;;  %v3712_v42 = vpop.f32.mrf.mxu1 }
 0x5cb   : > { %v6028_v25 = vmul.f32 %v3021_v16, %v2837_v6  ;;  %v2990_v14 = vmul.f32 0.5, %v4272_v44  ;;  %v2930_v12 = vmul.f32 0.5, %v2858_v7  ;;  %v3713_v2 = vadd.f32 %v3712_v42, %v3711_v3 }
 0x5cc   : > { %v6030_v47 = vpop.f32.mrf.mxu1 }
 0x5cd   : > { %4279 = vtanh.f32 %v2930_v12  ;;  %v2861_v63 = vadd.f32 %v3713_v2, %v5926_v9  ;;  %v3022_v56 = vadd.f32 0.5, %v2990_v14 }
 0x5ce   : > { %v4274_v0 = vpop.eup %4273  ;;  %v6035_v33 = vpop.f32.mrf.mxu1 }
 0x5cf   : > { %v2991_v37 = vmul.f32 0.5, %v4274_v0  ;;  %v2931_v45 = vmul.f32 0.5, %v2861_v63  ;;  %v6042_v8 = vmul.f32 %v3022_v56, %v6002_v59 }
 0x5d0   : > { %v6037_v11 = vpop.f32.mrf.mxu1 }
 0x5d1   : > { %v3023_v6 = vadd.f32 0.5, %v2991_v37  ;;  %4281 = vtanh.f32 %v2931_v45 }
 0x5d2   : > { %v4276_v35 = vpop.eup %4275  ;;  %v6039_v62 = vpop.f32.mrf.mxu1 }
 0x5d3   : > { %v6044_v13 = vmul.f32 %v3023_v6, %v2845_v26  ;;  %v2992_v53 = vmul.f32 0.5, %v4276_v35 }
 0x5d4   : > { %v3720_v9 = vpop.f32.mrf.mxu1 }
 0x5d5   : > { %v3024_v42 = vadd.f32 0.5, %v2992_v53 }
 0x5d6   : > { %v4278_v16 = vpop.eup %4277  ;;  %v3721_v44 = vpop.f32.mrf.mxu1 }
 0x5d7   : > { %v2993_v14 = vmul.f32 0.5, %v4278_v16  ;;  %v6048_v45 = vmul.f32 %v3024_v42, %v2850_v19 }
 0x5d8   : > { %v3723_v12 = vpop.f32.mrf.mxu1 }
 0x5d9   : > { %v3025_v2 = vadd.f32 0.5, %v2993_v14 }
 0x5da   : > { %v4280_v0 = vpop.eup %4279  ;;  %v3724_v37 = vpop.f32.mrf.mxu1 }
 0x5db   : > { %v6050_v50 = vmul.f32 %v3025_v2, %v2853_v27  ;;  %v2994_v59 = vmul.f32 0.5, %v4280_v0 }
 0x5dc   : > { %v3726_v26 = vpop.f32.mrf.mxu1 }
 0x5dd   : > { %v3026_v36 = vadd.f32 0.5, %v2994_v59 }
 0x5de   : > { %v4282_v6 = vpop.eup %4281  ;;  %v3727_v35 = vpop.f32.mrf.mxu1 }
 0x5df   : > { %v2995_v4 = vmul.f32 0.5, %v4282_v6  ;;  %v6054_v49 = vmul.f32 %v3026_v36, %v2858_v7 }
 0x5e0   : > { %v3729_v17 = vpop.f32.mrf.mxu1 }
 0x5e1   : > { %v3027_v53 = vadd.f32 0.5, %v2995_v4 }
 0x5e2   : > { %v3730_v16 = vpop.f32.mrf.mxu1 }
 0x5e3   : > { %v6056_v14 = vmul.f32 %v3027_v53, %v2861_v63  ;;  %v3731_v53 = vadd.f32 %v3730_v16, %v3729_v17 }
 0x5e4   : > { %v3732_v19 = vpop.f32.mrf.mxu1 }
 0x5e6   : > { %v3733_v42 = vpop.f32.mrf.mxu1 }
 0x5e7   : > { %v3734_v4 = vadd.f32 %v3733_v42, %v3732_v19  ;;  %v3725_v42 = vadd.f32 %v3724_v37, %v3723_v12 }
 0x5e8   : > { %v3735_v2 = vpop.f32.mrf.mxu1 }
 0x5e9   : > { %v6088_v37 = vadd.f32 %v3725_v42, %v5916_v32 }
 0x5ea   : > { %v3736_v0 = vpop.f32.mrf.mxu1 }
 0x5eb   : > { %v3737_v6 = vadd.f32 %v3736_v0, %v3735_v2 }
 0x5ec   : > { %v3738_v57 = vpop.f32.mrf.mxu1 }
 0x5ed   : > { %v6067_v43 = vadd.f32 %v3737_v6, %v5900_v10 }
 0x5ee   : > { %v3739_v56 = vpop.f32.mrf.mxu1 }
 0x5ef   : > { %v3740_v54 = vadd.f32 %v3739_v56, %v3738_v57  ;;  %v6071_v56 = vadd.f32 %v3734_v4, %v5898_v31  ;;  %v2939_v10 = vmul.f32 0.5, %v6067_v43  ;;  %v3722_v31 = vadd.f32 %v3721_v44, %v3720_v9 }
 0x5f0   : > { %v3741_v38 = vpop.f32.mrf.mxu1  ;;  %v3716_v9 = vadd.f32 %v6035_v33, %v6030_v47 }
 0x5f1   : > { %v6061_v36 = vadd.f32 %v3740_v54, %v5890_v52  ;;  %v3728_v52 = vadd.f32 %v3727_v35, %v3726_v26 }
 0x5f2   : > { %v3742_v59 = vpop.f32.mrf.mxu1  ;;  %v6101_v32 = vadd.f32 %v3716_v9, %v5920_v51 }
 0x5f3   : > { %v3743_v3 = vadd.f32 %v3742_v59, %v3741_v38  ;;  %v2940_v38 = vmul.f32 0.5, %v6061_v36  ;;  %v6081_v2 = vadd.f32 %v3728_v52, %v5906_v22  ;;  %v6093_v22 = vadd.f32 %v3722_v31, %v5914_v48 }
 0x5f4   : > { %v3744_v7 = vpop.f32.mrf.mxu1  ;;  %v2932_v26 = vmul.f32 0.5, %v6101_v32 }
 0x5f5   : > { %v6064_v63 = vadd.f32 %v3743_v3, %v5892_v55  ;;  %v6076_v55 = vadd.f32 %v3731_v53, %v5908_v23  ;;  %v3719_v23 = vadd.f32 %v6039_v62, %v6037_v11  ;;  %v2936_v44 = vmul.f32 0.5, %v6081_v2 }
 0x5f6   : > { %v3745_v27 = vpop.f32.mrf.mxu1  ;;  %v2935_v11 = vmul.f32 0.5, %v6088_v37  ;;  %v2934_v62 = vmul.f32 0.5, %v6093_v22 }
 0x5f7   : > { %v2941_v29 = vmul.f32 0.5, %v6064_v63  ;;  %v3746_v57 = vadd.f32 %v3745_v27, %v3744_v7  ;;  %v2938_v27 = vmul.f32 0.5, %v6071_v56  ;;  %v2937_v12 = vmul.f32 0.5, %v6076_v55 }
 0x5f8   : > { %v3747_v19 = vpop.f32.mrf.mxu1 }
 0x5f9   : > { %v2906_v54 = vadd.f32 %v3746_v57, %v5873_v39  ;;  %4283 = vtanh.f32 %v2941_v29 }
 0x5fa   : > { %v3748_v17 = vpop.f32.mrf.mxu1  ;;  %4285 = vtanh.f32 %v2940_v38 }
 0x5fb   : > { %v2942_v3 = vmul.f32 0.5, %v2906_v54  ;;  %v3749_v16 = vadd.f32 %v3748_v17, %v3747_v19 }
 0x5fd   : > { %4287 = vtanh.f32 %v2942_v3  ;;  %v2909_v39 = vadd.f32 %v3749_v16, %v5881_v20  ;;  %v6097_v20 = vadd.f32 %v3719_v23, %v5922_v5 }
 0x5fe   : > { %4289 = vtanh.f32 %v2939_v10 }
 0x5ff   : > { %v2943_v29 = vmul.f32 0.5, %v2909_v39  ;;  %4291 = vtanh.f32 %v2938_v27  ;;  %v2933_v47 = vmul.f32 0.5, %v6097_v20 }
 0x601   : > { %4293 = vtanh.f32 %v2943_v29 }
 0x602   : > { %4295 = vtanh.f32 %v2937_v12 }
 0x603   : > { %4297 = vtanh.f32 %v2936_v44 }
 0x604   : > { %4299 = vtanh.f32 %v2935_v11 }
 0x605   : > { %4301 = vtanh.f32 %v2934_v62 }
 0x606   : > { %v4284_v48 = vpop.eup %4283  ;;  %4303 = vtanh.f32 %v2933_v47 }
 0x607   : > { %v4286_v33 = vpop.eup %4285  ;;  %v3005_v5 = vmul.f32 0.5, %v4284_v48  ;;  %4305 = vtanh.f32 %v2932_v26 }
 0x608   : > { %v3004_v51 = vmul.f32 0.5, %v4286_v33 }
 0x609   : > { %v3037_v57 = vadd.f32 0.5, %v3005_v5  ;;  %v6253_v5 = vpack.c.bf16 %v6044_v13, %v6042_v8 }
 0x60a   : > { %v4288_v35 = vpop.eup %4287  ;;  %v3036_v42 = vadd.f32 0.5, %v3004_v51 }
 0x60b   : > { %v3006_v0 = vmul.f32 0.5, %v4288_v35  ;;  %v4290_v59 = vpop.eup %4289  ;;  %v3069_v27 = vmul.f32 %v3037_v57, %v6064_v63  ;;  %v6255_v57 = vpack.c.bf16 %v6019_v30, %v6016_v28  ;;  %v6258_v28 = vpack.c.bf16 %v5964_v1, %v5962_v21  ;;  %v6263_v21 = vld [vmem:[#allocation15_spill] sm:$0xff] }
 0x60c   : > { %v4292_v6 = vpop.eup %4291  ;;  %v3003_v53 = vmul.f32 0.5, %v4290_v59  ;;  %v3068_v44 = vmul.f32 %v3036_v42, %v6061_v36  ;;  %v6259_v30 = vpack.c.bf16 %v6056_v14, %v6054_v49  ;;  %v6264_v1 = vrot.slane %v5979_v46, %v6263_v21  ;;  %v3093_v14 = vpop.permute.xlu0 %3092 }
 0x60d   : > { %v3038_v38 = vadd.f32 0.5, %v3006_v0  ;;  %v3002_v52 = vmul.f32 0.5, %v4292_v6 }
 0x60e   : > { %v4294_v4 = vpop.eup %4293  ;;  %v3035_v16 = vadd.f32 0.5, %v3003_v53  ;;  %v3087_v26 = vpack.c.bf16 %v3069_v27, %v3068_v44 }
 0x60f   : > { %v4296_v7 = vpop.eup %4295  ;;  %v3007_v19 = vmul.f32 0.5, %v4294_v4  ;;  %v3070_v31 = vmul.f32 %v3038_v38, %v2906_v54  ;;  %v3034_v9 = vadd.f32 0.5, %v3002_v52  ;;  %v6257_v52 = vpack.c.bf16 %v5989_v40, %v5984_v15  ;;  %v6265_v40 = vld [vmem:[#allocation14_spill] sm:$0xff] }
 0x610   : > { %v4298_v10 = vpop.eup %4297  ;;  %v3001_v3 = vmul.f32 0.5, %v4296_v7  ;;  %v3067_v33 = vmul.f32 %v3035_v16, %v6067_v43  ;;  %v6254_v43 = vpack.c.bf16 %v6028_v25, %v6026_v58  ;;  %v6262_v15 = vpack.c.bf16 %v5936_v60, %v5934_v61 }
 0x611   : > { %v3039_v17 = vadd.f32 0.5, %v3007_v19  ;;  %v4300_v23 = vpop.eup %4299  ;;  %v3000_v29 = vmul.f32 0.5, %v4298_v10  ;;  %v6256_v19 = vpack.c.bf16 %v6008_v41, %v6005_v34  ;;  %v6260_v34 = vpack.c.bf16 %v5950_v24, %v5948_v18 }
 0x612   : > { %v4302_v62 = vpop.eup %4301  ;;  %v2999_v47 = vmul.f32 0.5, %v4300_v23  ;;  %v3033_v48 = vadd.f32 0.5, %v3001_v3  ;;  %v6261_v41 = vpack.c.bf16 %v6050_v50, %v6048_v45  ;;  %v3097_v49 = vsub.s32 0, %v6265_v40 }
 0x613   : > { %v3071_v12 = vmul.f32 %v3039_v17, %v2909_v39  ;;  %v4304_v35 = vpop.eup %4303  ;;  %v2998_v63 = vmul.f32 0.5, %v4302_v62  ;;  %v3032_v54 = vadd.f32 0.5, %v3000_v29  ;;  %v3066_v39 = vmul.f32 %v3034_v9, %v6071_v56 }
 0x614   : > { %v4306_v0 = vpop.eup %4305  ;;  %v2997_v36 = vmul.f32 0.5, %v4304_v35  ;;  %v3031_v59 = vadd.f32 0.5, %v2999_v47  ;;  %v3065_v6 = vmul.f32 %v3033_v48, %v6076_v55  ;;  %v3098_v24 = vrot.slane %v3093_v14, %v3097_v49 }
 0x615   : > { %v3088_v11 = vpack.c.bf16 %v3071_v12, %v3070_v31  ;;  %v3086_v51 = vpack.c.bf16 %v3067_v33, %v3066_v39  ;;  %v2996_v4 = vmul.f32 0.5, %v4306_v0  ;;  %v3030_v7 = vadd.f32 0.5, %v2998_v63 }
 0x616   : > { %v3064_v8 = vmul.f32 %v3032_v54, %v6081_v2  ;;  %v3029_v13 = vadd.f32 0.5, %v2997_v36  ;;  %v3063_v53 = vmul.f32 %v3031_v59, %v6088_v37 }
 0x617   : > { %3750 = vmatprep.subr.bf16.mxu0 %v3088_v11  ;;  %v3028_v38 = vadd.f32 0.5, %v2996_v4  ;;  %v3062_v55 = vmul.f32 %v3030_v7, %v6093_v22 }
 0x618   : > { %3751 = vmatpush3.bf16.msra.mxu0 %v6253_v5  ;;  %v3085_v56 = vpack.c.bf16 %v3065_v6, %v3064_v8  ;;  %v3061_v58 = vmul.f32 %v3029_v13, %v6097_v20 }
 0x619   : > { %3752 = vmatprep.subr.bf16.mxu0 %v3087_v26  ;;  %v3084_v25 = vpack.c.bf16 %v3063_v53, %v3062_v55  ;;  %v3060_v2 = vmul.f32 %v3028_v38, %v6101_v32 }
 0x61b   : > { %v3083_v37 = vpack.c.bf16 %v3061_v58, %v3060_v2 }
 0x61c   : > { %3753 = vmatpush3.bf16.msra.mxu0 %v6254_v43 }
 0x61d   : > { %3754 = vmatprep.subr.bf16.mxu0 %v3086_v51 }
 0x620   : > { %3755 = vmatpush3.bf16.msra.mxu0 %v6255_v57 }
 0x621   : > { %3756 = vmatprep.subr.bf16.mxu0 %v3085_v56 }
 0x624   : > { %3757 = vmatpush3.bf16.msra.mxu0 %v6256_v19 }
 0x625   : > { %3758 = vmatprep.subr.bf16.mxu0 %v3084_v25 }
 0x628   : > { %3759 = vmatpush3.bf16.msra.mxu0 %v6257_v52 }
 0x629   : > { %3760 = vmatprep.subr.bf16.mxu0 %v3083_v37 }
 0x62c   : > { %3761 = vmatpush3.bf16.msra.mxu0 %v6258_v28 }
 0x62d   : > { %3762 = vmatprep.subr.bf16.mxu0 %v6259_v30 }
 0x630   : > { %3763 = vmatpush3.bf16.msra.mxu0 %v6260_v34 }
 0x631   : > { %3764 = vmatprep.subr.bf16.mxu0 %v6261_v41 }
 0x634   : > { %3765 = vmatpush3.bf16.msra.mxu0 %v6262_v15 }
 0x637   : > { %3157 = vmatmul.mubr.bf16.vlgmr.msra.gmra.mxu0 %v6264_v1 }
 0x6f7   : > { %v3766_v22 = vpop.f32.mrf.mxu0 }
 0x6f9   : > { %v3767_v18 = vpop.f32.mrf.mxu0 }
 0x6fa   : > { %v3768_v20 = vadd.f32 %v3767_v18, %v3766_v22 }
 0x6fb   : > { %v3769_v32 = vpop.f32.mrf.mxu0 }
 0x6fc   : > { %v3159_v50 = vadd.f32 %v3768_v20, %v3098_v24 }
 0x6fd   : > { %v3770_v45 = vpop.f32.mrf.mxu0 }
 0x6fe   : > { %4307 = vtanh.f32 %v3159_v50 }
 0x70b   : > { %v4308_v61 = vpop.eup %4307 }
 0x70c   : > { %3165 = vst [vmem:[%s393_s30] sm:$0x1] %v4308_v61 }
 0x70d   : > { %4376 = shalt.err (!%p4373_p0)
}
 0x70e   : > { %s4377_s28 = scalar_lea.hbm %s6155_s29, 16  ;;  %s4381_s24 = scalar_lea.hbm %s6202_s10, 32 }
 0x70f   : > { %p4378_p5 = scmp.ne.s32.totalorder %s6155_s29, %s4377_s28  ;;  %p4382_p4 = scmp.lt.s32.totalorder %s6155_s29, %s6202_s10 }
 0x710   : > { %p4383_p6 = scmp.lt.s32.totalorder %s4381_s24, %s4377_s28 }
 0x711   : > { %p4379_p2 = pnand %p4378_p5, %p6266_p11 }
 0x712   : > { %p4384_p8 = por %p4383_p6, %p4382_p4 }
 0x713   : > { %p4380_p1 = pneg %p4379_p2 }
 0x715   : > { %p4385_p3 = pnand %p4384_p8, %p4380_p1 }
 0x717   : > { %4388 = shalt.err (!%p4385_p3)
}
 0x718   : > { %3826 = dma.vmem_to_hbm [thread:$0]  (%p6266_p11), %s3180_s26, 16, %s6155_s29, %s3167_s20  }
 0x719 PF: > { %s6267_s30 = sld [smem:[#allocation12_spill]]  ;;  %s3191_s1 = sand.u32 1, %s4419_s15  }
 0x71a   : > { %p6269_p9 = scmp.ge.s32.totalorder %s4431_s18, 2  ;;  %s3192_s25 = scalar_lea.sflag [#allocation5], %s3191_s1 }
 0x71f   : > { %p6268_p7 = scmp.ne.s32.totalorder %s6267_s30, 0 }
 0x721   : > { %p3837_p10 = pnand %p6269_p9, %p6268_p7 }
 0x723   : > { %p3838_p12 = pneg %p3837_p10 }
 0x725   : > { %4414 = dma.done.wait (%p3838_p12), %s3192_s25, 16  }
 0x726   : > { %4416 = vsyncadd (%p3838_p12), %s3192_s25, 4294967280  ;;  %s6270_s18 = sld [smem:[#allocation13_spill]]  ;;  %s6271_s15 = smov %s4423_s16 }
 0x727   : > { %s6272_s16 = smov %s4427_s17  ;;  %s6273_s17 = smov %s4572_s14 }
 0x72c   : > { %p26_p13 = scmp.ge.s32.totalorder %s6270_s18, 4  }
 0x72e   :  { %28 = sbr.rel (!%p26_p13) target bundleno = 9 (0x9), region = 109 }
 0x733   :  { %3196 = vsyncpa [#allocation4], 1 }
 0x734   :  { %3198 = vsyncpa [#allocation4 + $0x1], 1 }
 0x735   :  { %3199 = vsyncpa [#allocation7], 1 }
 0x736   :  { %3200 = vsyncpa [#allocation5], 1 }
 0x737   :  { %3202 = vsyncpa [#allocation5 + $0x1], 1 }

</bundles_post_ra>
